<compile_context>
chip_gen: v5e
topology: v5e:2x2
jax: 0.10.0
libtpu: 0.0.40
codegen_flags: <defaults>
</compile_context>

<pallas_src>
import math
import functools

import jax
import jax.numpy as jnp
from jax.experimental import pallas as pl
from jax.experimental.pallas import tpu as pltpu

LANE = 128
SUBLANE = 16  # bf16-safe sublane multiple for the padded T / S dims


def _round_up(x, m):
    return ((x + m - 1) // m) * m


# ----------------------------------------------------------------------------
# Fused all-layers decoder kernel (grid = (n_layers,), activation resident)
# ----------------------------------------------------------------------------
def _decoder_kernel(x_ref, enc_ref, bias_self_ref, bias_cross_ref,
                    attn_w_ref, attn_b_ref, ln_g_ref, ln_b_ref,
                    w1_ref, b1_ref, w2_ref, b2_ref,
                    out_ref,
                    *, n_head, d_model, n_batch, t_pad, s_pad, eps=1e-5):
    layer = pl.program_id(0)
    d_k = d_model // n_head

    # Layer 0: seed the resident activation (out_ref index_map is constant over
    # the layer axis, so this VMEM buffer lives across all grid steps and is
    # written back to HBM only once, after the last layer).
    @pl.when(layer == 0)
    def _():
        out_ref[...] = x_ref[...]

    x = out_ref[...]                              # (B*TP, DP) f32, folded rows
    M, DP = x.shape
    enc_b = enc_ref[...]                          # (B*SP, DP) bf16

    # ---- per-layer constants / masks (cheap iota work, built once per step) --
    col = jax.lax.broadcasted_iota(jnp.int32, (1, DP), 1)
    dmask = (col < d_model).astype(jnp.float32)   # valid model columns
    head_masks = [
        jnp.logical_and(col >= h * d_k, col < (h + 1) * d_k).astype(jnp.float32)
        for h in range(n_head)
    ]
    inv_d = jnp.float32(1.0 / d_model)
    inv_sqrt_dk = jnp.float32(1.0 / math.sqrt(d_k))

    attn_b = attn_b_ref[...]                      # (8, DP)  f32
    ln_g = ln_g_ref[...]                          # (3, DP)
    ln_b = ln_b_ref[...]                          # (3, DP)

    def attention(xq_b16, kv_b16, base, bias_ref, s_kv):
        # Fused Q/K/V/O projections over folded rows (M = B*TP or B*SP rows).
        q = jnp.dot(xq_b16, attn_w_ref[base + 0],
                    preferred_element_type=jnp.float32) + attn_b[base + 0:base + 1, :]
        k = jnp.dot(kv_b16, attn_w_ref[base + 1],
                    preferred_element_type=jnp.float32) + attn_b[base + 1:base + 2, :]
        v = jnp.dot(kv_b16, attn_w_ref[base + 2],
                    preferred_element_type=jnp.float32) + attn_b[base + 2:base + 3, :]
        k_b = k.astype(jnp.bfloat16)

        # Hoisted out of the head/batch loops: pre-scaled + per-head masked
        # operands in bf16, computed exactly once per attention.
        q_scaled = q * inv_sqrt_dk
        qh_all = [(q_scaled * hm).astype(jnp.bfloat16) for hm in head_masks]
        vh_all = [(v * hm).astype(jnp.bfloat16) for hm in head_masks]

        # Per-batch attention (static row slices keep the score matmuls at
        # their true (TP, SKV) size instead of a block-diagonal B*TP square).
        ctx_parts = []
        for b in range(n_batch):
            r0 = b * t_pad
            kv0 = b * s_kv
            bias_b = bias_ref[b]                  # (TP, SKV) f32 additive mask
            kb = k_b[kv0:kv0 + s_kv, :]
            ctx_b = jnp.zeros((t_pad, DP), jnp.float32)
            for h in range(n_head):
                qh = qh_all[h][r0:r0 + t_pad, :]
                s = jax.lax.dot_general(qh, kb, (((1,), (1,)), ((), ())),
                                        preferred_element_type=jnp.float32)
                s = s + bias_b                    # key-len (+causal) mask
                s = s - jnp.max(s, axis=-1, keepdims=True)
                p = jnp.exp(s)
                p = p * pl.reciprocal(jnp.sum(p, axis=-1, keepdims=True),
                                      approx=True)
                ctx_b = ctx_b + jnp.dot(p.astype(jnp.bfloat16),
                                        vh_all[h][kv0:kv0 + s_kv, :],
                                        preferred_element_type=jnp.float32)
            ctx_parts.append(ctx_b)
        ctx = jnp.concatenate(ctx_parts, axis=0)  # (M, DP)
        return jnp.dot(ctx.astype(jnp.bfloat16), attn_w_ref[base + 3],
                       preferred_element_type=jnp.float32) + attn_b[base + 3:base + 4, :]

    def add_layer_norm(a, res, idx):
        h = (a + res) * dmask                     # cheap insurance: padded cols = 0
        mean = jnp.sum(h, axis=-1, keepdims=True) * inv_d
        cent = (h - mean) * dmask
        var = jnp.sum(cent * cent, axis=-1, keepdims=True) * inv_d
        y = cent * jax.lax.rsqrt(var + jnp.float32(eps))
        return y * ln_g[idx:idx + 1, :] + ln_b[idx:idx + 1, :]

    # ---- sublayer chain, fully fused ----------------------------------------
    x_b16 = x.astype(jnp.bfloat16)
    sa = attention(x_b16, x_b16, 0, bias_self_ref, t_pad)     # masked self-attn
    h1 = add_layer_norm(sa, x, 0)
    h1_b16 = h1.astype(jnp.bfloat16)
    ca = attention(h1_b16, enc_b, 4, bias_cross_ref, s_pad)   # enc-dec attn
    h2 = add_layer_norm(ca, h1, 1)
    hid = jnp.dot(h2.astype(jnp.bfloat16), w1_ref[...],
                  preferred_element_type=jnp.float32) + b1_ref[...]
    hid = jnp.maximum(hid, 0.0)                               # ReLU (dropout = id)
    ff = jnp.dot(hid.astype(jnp.bfloat16), w2_ref[...],
                 preferred_element_type=jnp.float32) + b2_ref[...]
    out_ref[...] = add_layer_norm(ff, h2, 2).astype(out_ref.dtype)


def _decoder_stack(x_rows, enc_rows, bias_self, bias_cross, params,
                   *, n_head, d_model, n_batch, t_pad, s_pad):
    n_layers = params["attn_w"].shape[0]
    M, DP = x_rows.shape
    BSP = enc_rows.shape[0]
    DFP = params["w1"].shape[-1]
    B, TP, SP = n_batch, t_pad, s_pad

    kernel = functools.partial(_decoder_kernel, n_head=n_head, d_model=d_model,
                               n_batch=n_batch, t_pad=t_pad, s_pad=s_pad)

    grid_spec = pltpu.PrefetchScalarGridSpec(
        num_scalar_prefetch=0,
        grid=(n_layers,),
        in_specs=[
            pl.BlockSpec((M, DP), lambda l: (0, 0)),              # x (fetched once)
            pl.BlockSpec((BSP, DP), lambda l: (0, 0)),            # enc rows (bf16)
            pl.BlockSpec((B, TP, TP), lambda l: (0, 0, 0)),       # self-attn bias
            pl.BlockSpec((B, TP, SP), lambda l: (0, 0, 0)),       # cross-attn bias
            pl.BlockSpec((None, 8, DP, DP), lambda l: (l, 0, 0, 0)),  # attn W (bf16)
            pl.BlockSpec((None, 8, DP), lambda l: (l, 0, 0)),         # attn b
            pl.BlockSpec((None, 3, DP), lambda l: (l, 0, 0)),         # LN gamma
            pl.BlockSpec((None, 3, DP), lambda l: (l, 0, 0)),         # LN beta
            pl.BlockSpec((None, DP, DFP), lambda l: (l, 0, 0)),       # w1 (bf16)
            pl.BlockSpec((None, 1, DFP), lambda l: (l, 0, 0)),        # b1
            pl.BlockSpec((None, DFP, DP), lambda l: (l, 0, 0)),       # w2 (bf16)
            pl.BlockSpec((None, 1, DP), lambda l: (l, 0, 0)),         # b2
        ],
        out_specs=pl.BlockSpec((M, DP), lambda l: (0, 0)),        # resident activation
    )

    # Explicit VMEM budget: double-buffered blocks + working-set headroom.
    def _bytes(shape, dtype):
        n = 1
        for s in shape:
            n *= s
        return n * jnp.dtype(dtype).itemsize

    block_bytes = (
        2 * _bytes((M, DP), jnp.float32) +            # x in + resident out
        _bytes((BSP, DP), jnp.bfloat16) +
        _bytes((B, TP, TP), jnp.float32) +
        _bytes((B, TP, SP), jnp.float32) +
        _bytes((8, DP, DP), jnp.bfloat16) +
        _bytes((8, DP), jnp.float32) +
        2 * _bytes((3, DP), jnp.float32) +
        _bytes((DP, DFP), jnp.bfloat16) + _bytes((1, DFP), jnp.float32) +
        _bytes((DFP, DP), jnp.bfloat16) + _bytes((1, DP), jnp.float32)
    )
    vmem_limit = int(2 * block_bytes + (8 << 20))

    return pl.pallas_call(
        kernel,
        out_shape=jax.ShapeDtypeStruct((M, DP), jnp.float32),
        grid_spec=grid_spec,
        compiler_params=pltpu.CompilerParams(
            dimension_semantics=("arbitrary",),      # sequential over layers
            vmem_limit_bytes=vmem_limit),
    )(x_rows, enc_rows, bias_self, bias_cross,
      params["attn_w"], params["attn_b"], params["ln_g"], params["ln_b"],
      params["w1"], params["b1"], params["w2"], params["b2"])


# ----------------------------------------------------------------------------
# Parameter construction (deterministic, synthetic) — pre-padded & layer-stacked
# ----------------------------------------------------------------------------
def _linear_params(key, d_in, d_out):
    k1, k2 = jax.random.split(key)
    w = jax.random.normal(k1, (d_in, d_out), jnp.float32) * 0.05
    b = jax.random.normal(k2, (d_out,), jnp.float32) * 0.01
    return w, b


def _pad_w(w, rows, cols):
    return jnp.pad(w, ((0, rows - w.shape[0]), (0, cols - w.shape[1])))


def _pad_v(v, n):
    return jnp.pad(v, (0, n - v.shape[0]))


def make_params(key, size, n_vocab, n_layers, max_len=5000):
    DP = _round_up(size, LANE)
    DFP = _round_up(4 * size, LANE)
    keys = jax.random.split(key, n_layers + 1)
    embed = jax.random.normal(keys[0], (n_vocab, size), jnp.float32) * 0.1

    # positional encoding table (same formula as the PyTorch module)
    position = jnp.arange(max_len, dtype=jnp.float32)[:, None]
    div_term = jnp.exp(jnp.arange(0, size, 2, dtype=jnp.float32)
                       * (-math.log(10000.0) / size))
    pe = jnp.zeros((max_len, size), jnp.float32)
    pe = pe.at[:, 0::2].set(jnp.sin(position * div_term))
    pe = pe.at[:, 1::2].set(jnp.cos(position * div_term))

    gamma = _pad_v(jnp.ones((size,), jnp.float32), DP)   # padded cols -> 0
    zero = jnp.zeros((DP,), jnp.float32)

    attn_w, attn_b, ln_g, ln_b, w1s, b1s, w2s, b2s = ([] for _ in range(8))
    for i in range(n_layers):
        lk = jax.random.split(keys[i + 1], 10)
        ws, bs = [], []
        for j in range(8):                       # self: q,k,v,o ; cross: q,k,v,o
            w, bvec = _linear_params(lk[j], size, size)
            ws.append(_pad_w(w, DP, DP))
            bs.append(_pad_v(bvec, DP))
        attn_w.append(jnp.stack(ws))
        attn_b.append(jnp.stack(bs))
        w1, b1 = _linear_params(lk[8], size, 4 * size)
        w2, b2 = _linear_params(lk[9], 4 * size, size)
        w1s.append(_pad_w(w1, DP, DFP))
        b1s.append(_pad_v(b1, DFP)[None, :])
        w2s.append(_pad_w(w2, DFP, DP))
        b2s.append(_pad_v(b2, DP)[None, :])
        ln_g.append(jnp.stack([gamma, gamma, gamma]))
        ln_b.append(jnp.stack([zero, zero, zero]))

    return dict(
        embed=embed, pe=pe,
        attn_w=jnp.stack(attn_w).astype(jnp.bfloat16),    # (L, 8, DP, DP)
        attn_b=jnp.stack(attn_b).astype(jnp.float32),     # (L, 8, DP)
        ln_g=jnp.stack(ln_g).astype(jnp.float32),         # (L, 3, DP)
        ln_b=jnp.stack(ln_b).astype(jnp.float32),         # (L, 3, DP)
        w1=jnp.stack(w1s).astype(jnp.bfloat16),           # (L, DP, DFP)
        b1=jnp.stack(b1s).astype(jnp.float32),            # (L, 1, DFP)
        w2=jnp.stack(w2s).astype(jnp.bfloat16),           # (L, DFP, DP)
        b2=jnp.stack(b2s).astype(jnp.float32),            # (L, 1, DP)
    )


# ----------------------------------------------------------------------------
# Full TransformerDecoder forward (inference; dropout layers are identities)
# ----------------------------------------------------------------------------
def transformer_decoder(tokens, seq_lens, enc_outputs, enc_seq_lens, params, n_head):
    D = params["embed"].shape[1]
    B, T = tokens.shape
    S = enc_outputs.shape[1]
    DP = params["attn_w"].shape[-1]
    TP = _round_up(T, SUBLANE)      # sublane-only padding (not 128)
    SP = _round_up(S, SUBLANE)

    # TransformerEmbedding: lookup * sqrt(embed_size); PositionalEncoding: + pe[:T]
    x = jnp.take(params["embed"], tokens, axis=0) * math.sqrt(D)
    x = x + params["pe"][:T][None, :, :]

    # Pad once to lane-dense (D -> DP) / sublane-aligned (T -> TP, S -> SP)
    # slabs and fold batch into the row dim for the big matmuls.
    x_rows = jnp.pad(x, ((0, 0), (0, TP - T), (0, DP - D))
                     ).astype(jnp.float32).reshape(B * TP, DP)
    enc_rows = jnp.pad(enc_outputs, ((0, 0), (0, SP - S), (0, DP - D))
                       ).astype(jnp.bfloat16).reshape(B * SP, DP)

    # Additive attention biases (0 = valid, -1e30 = masked), built once in the
    # wrapper and DMA'd once; shared by every layer.
    neg = jnp.float32(-1e30)
    sl = seq_lens.astype(jnp.int32)
    el = enc_seq_lens.astype(jnp.int32)
    q_idx = jnp.arange(TP, dtype=jnp.int32)
    k_idx = jnp.arange(TP, dtype=jnp.int32)
    s_idx = jnp.arange(SP, dtype=jnp.int32)
    self_ok = jnp.logical_and(k_idx[None, None, :] < sl[:, None, None],
                              k_idx[None, None, :] <= q_idx[None, :, None])
    bias_self = jnp.where(self_ok, jnp.float32(0.0), neg)               # (B,TP,TP)
    cross_ok = jnp.broadcast_to(s_idx[None, None, :] < el[:, None, None],
                                (B, TP, SP))
    bias_cross = jnp.where(cross_ok, jnp.float32(0.0), neg)             # (B,TP,SP)
    # TODO(synk): DotAttn source not provided; query_lens are not applied. Padded
    # query rows are computed but never influence valid rows and are sliced off.

    out_rows = _decoder_stack(x_rows, enc_rows, bias_self, bias_cross, params,
                              n_head=n_head, d_model=D, n_batch=B,
                              t_pad=TP, s_pad=SP)
    out = out_rows.reshape(B, TP, DP)[:, :T, :D]
    return out, seq_lens


if __name__ == "__main__":
    B, T, S = 2, 8, 10         # batch, decoder seq len, encoder seq len
    SIZE, N_HEAD = 32, 4       # model dim, heads (d_k = 8)
    N_VOCAB, N_LAYERS = 50, 2

    key = jax.random.PRNGKey(0)
    k_tok, k_enc, k_par = jax.random.split(key, 3)

    tokens = jax.random.randint(k_tok, (B, T), 0, N_VOCAB, dtype=jnp.int32)
    seq_lens = jnp.array([T, T - 2], dtype=jnp.int32)
    enc_outputs = jax.random.normal(k_enc, (B, S, SIZE), jnp.float32)
    enc_seq_lens = jnp.array([S, S - 3], dtype=jnp.int32)

    params = make_params(k_par, SIZE, N_VOCAB, N_LAYERS)

    fwd = jax.jit(transformer_decoder, static_argnames=("n_head",))
    out, out_lens = fwd(tokens, seq_lens, enc_outputs, enc_seq_lens, params,
                        n_head=N_HEAD)
    out = jax.block_until_ready(out)
    assert out.shape == (B, T, SIZE)
    assert bool(jnp.all(jnp.isfinite(out)))
    print("KERNEL_OK")
</pallas_src>

<mosaic_0001>
module attributes {stable_mosaic.version = 11 : i64} {
  func.func @_decoder_kernel(%arg0: i32, %arg1: memref<32x128xf32, #tpu.memory_space<vmem>>, %arg2: memref<32x128xbf16, #tpu.memory_space<vmem>>, %arg3: memref<2x16x16xf32, #tpu.memory_space<vmem>>, %arg4: memref<2x16x16xf32, #tpu.memory_space<vmem>>, %arg5: memref<1x8x128x128xbf16, #tpu.memory_space<vmem>>, %arg6: memref<1x8x128xf32, #tpu.memory_space<vmem>>, %arg7: memref<1x3x128xf32, #tpu.memory_space<vmem>>, %arg8: memref<1x3x128xf32, #tpu.memory_space<vmem>>, %arg9: memref<1x128x128xbf16, #tpu.memory_space<vmem>>, %arg10: memref<1x1x128xf32, #tpu.memory_space<vmem>>, %arg11: memref<1x128x128xbf16, #tpu.memory_space<vmem>>, %arg12: memref<1x1x128xf32, #tpu.memory_space<vmem>>, %arg13: memref<32x128xf32, #tpu.memory_space<vmem>>) attributes {dimension_semantics = [#tpu.dimension_semantics<arbitrary>], iteration_bounds = array<i64: 2>, scalar_prefetch = 0 : i64, scratch_operands = 0 : i64, tpu.core_type = #tpu.core_type<tc>, window_params = [{pipeline_mode = #tpu.pipeline_mode<synchronous>, transform_indices = @transform_0, window_bounds = array<i64: 32, 128>}, {pipeline_mode = #tpu.pipeline_mode<synchronous>, transform_indices = @transform_1, window_bounds = array<i64: 32, 128>}, {pipeline_mode = #tpu.pipeline_mode<synchronous>, transform_indices = @transform_2, window_bounds = array<i64: 2, 16, 16>}, {pipeline_mode = #tpu.pipeline_mode<synchronous>, transform_indices = @transform_3, window_bounds = array<i64: 2, 16, 16>}, {transform_indices = @transform_4, window_bounds = array<i64: 1, 8, 128, 128>}, {transform_indices = @transform_5, window_bounds = array<i64: 1, 8, 128>}, {transform_indices = @transform_6, window_bounds = array<i64: 1, 3, 128>}, {transform_indices = @transform_7, window_bounds = array<i64: 1, 3, 128>}, {transform_indices = @transform_8, window_bounds = array<i64: 1, 128, 128>}, {transform_indices = @transform_9, window_bounds = array<i64: 1, 1, 128>}, {transform_indices = @transform_10, window_bounds = array<i64: 1, 128, 128>}, {transform_indices = @transform_11, window_bounds = array<i64: 1, 1, 128>}, {pipeline_mode = #tpu.pipeline_mode<synchronous>, transform_indices = @transform_12, window_bounds = array<i64: 32, 128>}]} {
    %c0_i32 = arith.constant 0 : i32
    %0 = arith.cmpi eq, %arg0, %c0_i32 : i32
    %1 = arith.extui %0 : i1 to i32
    %c0_i32_0 = arith.constant 0 : i32
    %2 = arith.cmpi ne, %1, %c0_i32_0 : i32
    scf.if %2 {
      %c0_164 = arith.constant 0 : index
      %c0_165 = arith.constant 0 : index
      %540 = vector.load %arg1[%c0_164, %c0_165] : memref<32x128xf32, #tpu.memory_space<vmem>>, vector<32x128xf32>
      %c0_166 = arith.constant 0 : index
      %c0_167 = arith.constant 0 : index
      %541 = vector.load %arg13[%c0_166, %c0_167] : memref<32x128xf32, #tpu.memory_space<vmem>>, vector<32x128xf32>
      tpu.vector_store %arg13[%c0_166, %c0_167], %540 {strides = array<i32>} : memref<32x128xf32, #tpu.memory_space<vmem>>, vector<32x128xf32>,
    } else {
    }
    %c0 = arith.constant 0 : index
    %c0_1 = arith.constant 0 : index
    %3 = vector.load %arg13[%c0, %c0_1] : memref<32x128xf32, #tpu.memory_space<vmem>>, vector<32x128xf32>
    %c0_2 = arith.constant 0 : index
    %c0_3 = arith.constant 0 : index
    %4 = vector.load %arg2[%c0_2, %c0_3] : memref<32x128xbf16, #tpu.memory_space<vmem>>, vector<32x128xbf16>
    %5 = tpu.iota {dimensions = array<i32: 1>} : vector<1x128xi32>
    %c32_i32 = arith.constant 32 : i32
    %6 = vector.broadcast %c32_i32 : i32 to vector<1x128xi32>
    %7 = arith.cmpi slt, %5, %6 : vector<1x128xi32>
    %8 = arith.extui %7 : vector<1x128xi1> to vector<1x128xi32>
    %9 = arith.sitofp %8 : vector<1x128xi32> to vector<1x128xf32>
    %c0_i32_4 = arith.constant 0 : i32
    %10 = vector.broadcast %c0_i32_4 : i32 to vector<1x128xi32>
    %11 = arith.cmpi sge, %5, %10 : vector<1x128xi32>
    %c8_i32 = arith.constant 8 : i32
    %12 = vector.broadcast %c8_i32 : i32 to vector<1x128xi32>
    %13 = arith.cmpi slt, %5, %12 : vector<1x128xi32>
    %14 = arith.andi %11, %13 : vector<1x128xi1>
    %15 = arith.extui %14 : vector<1x128xi1> to vector<1x128xi32>
    %16 = arith.sitofp %15 : vector<1x128xi32> to vector<1x128xf32>
    %c8_i32_5 = arith.constant 8 : i32
    %17 = vector.broadcast %c8_i32_5 : i32 to vector<1x128xi32>
    %18 = arith.cmpi sge, %5, %17 : vector<1x128xi32>
    %c16_i32 = arith.constant 16 : i32
    %19 = vector.broadcast %c16_i32 : i32 to vector<1x128xi32>
    %20 = arith.cmpi slt, %5, %19 : vector<1x128xi32>
    %21 = arith.andi %18, %20 : vector<1x128xi1>
    %22 = arith.extui %21 : vector<1x128xi1> to vector<1x128xi32>
    %23 = arith.sitofp %22 : vector<1x128xi32> to vector<1x128xf32>
    %c16_i32_6 = arith.constant 16 : i32
    %24 = vector.broadcast %c16_i32_6 : i32 to vector<1x128xi32>
    %25 = arith.cmpi sge, %5, %24 : vector<1x128xi32>
    %c24_i32 = arith.constant 24 : i32
    %26 = vector.broadcast %c24_i32 : i32 to vector<1x128xi32>
    %27 = arith.cmpi slt, %5, %26 : vector<1x128xi32>
    %28 = arith.andi %25, %27 : vector<1x128xi1>
    %29 = arith.extui %28 : vector<1x128xi1> to vector<1x128xi32>
    %30 = arith.sitofp %29 : vector<1x128xi32> to vector<1x128xf32>
    %c24_i32_7 = arith.constant 24 : i32
    %31 = vector.broadcast %c24_i32_7 : i32 to vector<1x128xi32>
    %32 = arith.cmpi sge, %5, %31 : vector<1x128xi32>
    %c32_i32_8 = arith.constant 32 : i32
    %33 = vector.broadcast %c32_i32_8 : i32 to vector<1x128xi32>
    %34 = arith.cmpi slt, %5, %33 : vector<1x128xi32>
    %35 = arith.andi %32, %34 : vector<1x128xi1>
    %36 = arith.extui %35 : vector<1x128xi1> to vector<1x128xi32>
    %37 = arith.sitofp %36 : vector<1x128xi32> to vector<1x128xf32>
    %c0_9 = arith.constant 0 : index
    %c0_10 = arith.constant 0 : index
    %c0_11 = arith.constant 0 : index
    %38 = vector.load %arg6[%c0_9, %c0_10, %c0_11] : memref<1x8x128xf32, #tpu.memory_space<vmem>>, vector<1x8x128xf32>
    %39 = vector.shape_cast %38 : vector<1x8x128xf32> to vector<8x128xf32>
    %c0_12 = arith.constant 0 : index
    %c0_13 = arith.constant 0 : index
    %c0_14 = arith.constant 0 : index
    %40 = vector.load %arg7[%c0_12, %c0_13, %c0_14] : memref<1x3x128xf32, #tpu.memory_space<vmem>>, vector<1x3x128xf32>
    %41 = vector.shape_cast %40 : vector<1x3x128xf32> to vector<3x128xf32>
    %c0_15 = arith.constant 0 : index
    %c0_16 = arith.constant 0 : index
    %c0_17 = arith.constant 0 : index
    %42 = vector.load %arg8[%c0_15, %c0_16, %c0_17] : memref<1x3x128xf32, #tpu.memory_space<vmem>>, vector<1x3x128xf32>
    %43 = vector.shape_cast %42 : vector<1x3x128xf32> to vector<3x128xf32>
    %44 = arith.truncf %3 : vector<32x128xf32> to vector<32x128xbf16>
    %c0_18 = arith.constant 0 : index
    %c0_19 = arith.constant 0 : index
    %c0_20 = arith.constant 0 : index
    %c0_21 = arith.constant 0 : index
    %45 = vector.load %arg5[%c0_18, %c0_19, %c0_20, %c0_21] : memref<1x8x128x128xbf16, #tpu.memory_space<vmem>>, vector<1x1x128x128xbf16>
    %46 = vector.shape_cast %45 : vector<1x1x128x128xbf16> to vector<128x128xbf16>
    %cst = arith.constant dense<0.000000e+00> : vector<32x128xf32>
    %47 = tpu.matmul %44, %46, %cst {dimension_numbers = #tpu.dot_dimension_numbers<[1], [0], [0], [1], [0, 0, 1, 1], [], []>} : vector<32x128xbf16>, vector<128x128xbf16>, vector<32x128xf32> -> vector<32x128xf32>
    %48 = vector.extract_strided_slice %39 {offsets = [0, 0], sizes = [1, 128], strides = [1, 1]} : vector<8x128xf32> to vector<1x128xf32>
    %49 = vector.broadcast %48 : vector<1x128xf32> to vector<32x128xf32>
    %50 = arith.addf %47, %49 : vector<32x128xf32>
    %c0_22 = arith.constant 0 : index
    %c1 = arith.constant 1 : index
    %c0_23 = arith.constant 0 : index
    %c0_24 = arith.constant 0 : index
    %51 = vector.load %arg5[%c0_22, %c1, %c0_23, %c0_24] : memref<1x8x128x128xbf16, #tpu.memory_space<vmem>>, vector<1x1x128x128xbf16>
    %52 = vector.shape_cast %51 : vector<1x1x128x128xbf16> to vector<128x128xbf16>
    %cst_25 = arith.constant dense<0.000000e+00> : vector<32x128xf32>
    %53 = tpu.matmul %44, %52, %cst_25 {dimension_numbers = #tpu.dot_dimension_numbers<[1], [0], [0], [1], [0, 0, 1, 1], [], []>} : vector<32x128xbf16>, vector<128x128xbf16>, vector<32x128xf32> -> vector<32x128xf32>
    %54 = vector.extract_strided_slice %39 {offsets = [1, 0], sizes = [1, 128], strides = [1, 1]} : vector<8x128xf32> to vector<1x128xf32>
    %55 = vector.broadcast %54 : vector<1x128xf32> to vector<32x128xf32>
    %56 = arith.addf %53, %55 : vector<32x128xf32>
    %c0_26 = arith.constant 0 : index
    %c2 = arith.constant 2 : index
    %c0_27 = arith.constant 0 : index
    %c0_28 = arith.constant 0 : index
    %57 = vector.load %arg5[%c0_26, %c2, %c0_27, %c0_28] : memref<1x8x128x128xbf16, #tpu.memory_space<vmem>>, vector<1x1x128x128xbf16>
    %58 = vector.shape_cast %57 : vector<1x1x128x128xbf16> to vector<128x128xbf16>
    %cst_29 = arith.constant dense<0.000000e+00> : vector<32x128xf32>
    %59 = tpu.matmul %44, %58, %cst_29 {dimension_numbers = #tpu.dot_dimension_numbers<[1], [0], [0], [1], [0, 0, 1, 1], [], []>} : vector<32x128xbf16>, vector<128x128xbf16>, vector<32x128xf32> -> vector<32x128xf32>
    %60 = vector.extract_strided_slice %39 {offsets = [2, 0], sizes = [1, 128], strides = [1, 1]} : vector<8x128xf32> to vector<1x128xf32>
    %61 = vector.broadcast %60 : vector<1x128xf32> to vector<32x128xf32>
    %62 = arith.addf %59, %61 : vector<32x128xf32>
    %63 = arith.truncf %56 : vector<32x128xf32> to vector<32x128xbf16>
    %cst_30 = arith.constant 0.353553385 : f32
    %64 = vector.broadcast %cst_30 : f32 to vector<32x128xf32>
    %65 = arith.mulf %50, %64 : vector<32x128xf32>
    %66 = vector.broadcast %16 : vector<1x128xf32> to vector<32x128xf32>
    %67 = arith.mulf %65, %66 : vector<32x128xf32>
    %68 = arith.truncf %67 : vector<32x128xf32> to vector<32x128xbf16>
    %69 = vector.broadcast %23 : vector<1x128xf32> to vector<32x128xf32>
    %70 = arith.mulf %65, %69 : vector<32x128xf32>
    %71 = arith.truncf %70 : vector<32x128xf32> to vector<32x128xbf16>
    %72 = vector.broadcast %30 : vector<1x128xf32> to vector<32x128xf32>
    %73 = arith.mulf %65, %72 : vector<32x128xf32>
    %74 = arith.truncf %73 : vector<32x128xf32> to vector<32x128xbf16>
    %75 = vector.broadcast %37 : vector<1x128xf32> to vector<32x128xf32>
    %76 = arith.mulf %65, %75 : vector<32x128xf32>
    %77 = arith.truncf %76 : vector<32x128xf32> to vector<32x128xbf16>
    %78 = vector.broadcast %16 : vector<1x128xf32> to vector<32x128xf32>
    %79 = arith.mulf %62, %78 : vector<32x128xf32>
    %80 = arith.truncf %79 : vector<32x128xf32> to vector<32x128xbf16>
    %81 = vector.broadcast %23 : vector<1x128xf32> to vector<32x128xf32>
    %82 = arith.mulf %62, %81 : vector<32x128xf32>
    %83 = arith.truncf %82 : vector<32x128xf32> to vector<32x128xbf16>
    %84 = vector.broadcast %30 : vector<1x128xf32> to vector<32x128xf32>
    %85 = arith.mulf %62, %84 : vector<32x128xf32>
    %86 = arith.truncf %85 : vector<32x128xf32> to vector<32x128xbf16>
    %87 = vector.broadcast %37 : vector<1x128xf32> to vector<32x128xf32>
    %88 = arith.mulf %62, %87 : vector<32x128xf32>
    %89 = arith.truncf %88 : vector<32x128xf32> to vector<32x128xbf16>
    %c0_31 = arith.constant 0 : index
    %c0_32 = arith.constant 0 : index
    %c0_33 = arith.constant 0 : index
    %90 = vector.load %arg3[%c0_31, %c0_32, %c0_33] : memref<2x16x16xf32, #tpu.memory_space<vmem>>, vector<1x16x16xf32>
    %91 = vector.shape_cast %90 : vector<1x16x16xf32> to vector<16x16xf32>
    %92 = vector.extract_strided_slice %63 {offsets = [0, 0], sizes = [16, 128], strides = [1, 1]} : vector<32x128xbf16> to vector<16x128xbf16>
    %cst_34 = arith.constant 0.000000e+00 : f32
    %93 = vector.broadcast %cst_34 : f32 to vector<16x128xf32>
    %94 = vector.extract_strided_slice %68 {offsets = [0, 0], sizes = [16, 128], strides = [1, 1]} : vector<32x128xbf16> to vector<16x128xbf16>
    %cst_35 = arith.constant dense<0.000000e+00> : vector<16x16xf32>
    %95 = tpu.matmul %94, %92, %cst_35 {dimension_numbers = #tpu.dot_dimension_numbers<[1], [1], [0], [0], [0, 0, 1, 0], [], []>} : vector<16x128xbf16>, vector<16x128xbf16>, vector<16x16xf32> -> vector<16x16xf32>
    %96 = arith.addf %95, %91 : vector<16x16xf32>
    %cst_36 = arith.constant dense<0xFF800000> : vector<16xf32>
    %97 = vector.multi_reduction <maximumf>, %96, %cst_36 [1] : vector<16x16xf32> to vector<16xf32>
    %98 = vector.shape_cast %97 : vector<16xf32> to vector<16x1xf32>
    %99 = vector.broadcast %98 : vector<16x1xf32> to vector<16x16xf32>
    %100 = arith.subf %96, %99 : vector<16x16xf32>
    %101 = math.exp %100 : vector<16x16xf32>
    %cst_37 = arith.constant dense<0.000000e+00> : vector<16xf32>
    %102 = vector.multi_reduction <add>, %101, %cst_37 [1] : vector<16x16xf32> to vector<16xf32>
    %103 = vector.shape_cast %102 : vector<16xf32> to vector<16x1xf32>
    %104 = tpu.reciprocal %103 {approx = true} : vector<16x1xf32> -> vector<16x1xf32>
    %105 = vector.broadcast %104 : vector<16x1xf32> to vector<16x16xf32>
    %106 = arith.mulf %101, %105 : vector<16x16xf32>
    %107 = arith.truncf %106 : vector<16x16xf32> to vector<16x16xbf16>
    %108 = vector.extract_strided_slice %80 {offsets = [0, 0], sizes = [16, 128], strides = [1, 1]} : vector<32x128xbf16> to vector<16x128xbf16>
    %cst_38 = arith.constant dense<0.000000e+00> : vector<16x128xf32>
    %109 = tpu.matmul %107, %108, %cst_38 {dimension_numbers = #tpu.dot_dimension_numbers<[1], [0], [0], [1], [0, 0, 1, 1], [], []>} : vector<16x16xbf16>, vector<16x128xbf16>, vector<16x128xf32> -> vector<16x128xf32>
    %110 = arith.addf %93, %109 : vector<16x128xf32>
    %111 = vector.extract_strided_slice %71 {offsets = [0, 0], sizes = [16, 128], strides = [1, 1]} : vector<32x128xbf16> to vector<16x128xbf16>
    %cst_39 = arith.constant dense<0.000000e+00> : vector<16x16xf32>
    %112 = tpu.matmul %111, %92, %cst_39 {dimension_numbers = #tpu.dot_dimension_numbers<[1], [1], [0], [0], [0, 0, 1, 0], [], []>} : vector<16x128xbf16>, vector<16x128xbf16>, vector<16x16xf32> -> vector<16x16xf32>
    %113 = arith.addf %112, %91 : vector<16x16xf32>
    %cst_40 = arith.constant dense<0xFF800000> : vector<16xf32>
    %114 = vector.multi_reduction <maximumf>, %113, %cst_40 [1] : vector<16x16xf32> to vector<16xf32>
    %115 = vector.shape_cast %114 : vector<16xf32> to vector<16x1xf32>
    %116 = vector.broadcast %115 : vector<16x1xf32> to vector<16x16xf32>
    %117 = arith.subf %113, %116 : vector<16x16xf32>
    %118 = math.exp %117 : vector<16x16xf32>
    %cst_41 = arith.constant dense<0.000000e+00> : vector<16xf32>
    %119 = vector.multi_reduction <add>, %118, %cst_41 [1] : vector<16x16xf32> to vector<16xf32>
    %120 = vector.shape_cast %119 : vector<16xf32> to vector<16x1xf32>
    %121 = tpu.reciprocal %120 {approx = true} : vector<16x1xf32> -> vector<16x1xf32>
    %122 = vector.broadcast %121 : vector<16x1xf32> to vector<16x16xf32>
    %123 = arith.mulf %118, %122 : vector<16x16xf32>
    %124 = arith.truncf %123 : vector<16x16xf32> to vector<16x16xbf16>
    %125 = vector.extract_strided_slice %83 {offsets = [0, 0], sizes = [16, 128], strides = [1, 1]} : vector<32x128xbf16> to vector<16x128xbf16>
    %cst_42 = arith.constant dense<0.000000e+00> : vector<16x128xf32>
    %126 = tpu.matmul %124, %125, %cst_42 {dimension_numbers = #tpu.dot_dimension_numbers<[1], [0], [0], [1], [0, 0, 1, 1], [], []>} : vector<16x16xbf16>, vector<16x128xbf16>, vector<16x128xf32> -> vector<16x128xf32>
    %127 = arith.addf %110, %126 : vector<16x128xf32>
    %128 = vector.extract_strided_slice %74 {offsets = [0, 0], sizes = [16, 128], strides = [1, 1]} : vector<32x128xbf16> to vector<16x128xbf16>
    %cst_43 = arith.constant dense<0.000000e+00> : vector<16x16xf32>
    %129 = tpu.matmul %128, %92, %cst_43 {dimension_numbers = #tpu.dot_dimension_numbers<[1], [1], [0], [0], [0, 0, 1, 0], [], []>} : vector<16x128xbf16>, vector<16x128xbf16>, vector<16x16xf32> -> vector<16x16xf32>
    %130 = arith.addf %129, %91 : vector<16x16xf32>
    %cst_44 = arith.constant dense<0xFF800000> : vector<16xf32>
    %131 = vector.multi_reduction <maximumf>, %130, %cst_44 [1] : vector<16x16xf32> to vector<16xf32>
    %132 = vector.shape_cast %131 : vector<16xf32> to vector<16x1xf32>
    %133 = vector.broadcast %132 : vector<16x1xf32> to vector<16x16xf32>
    %134 = arith.subf %130, %133 : vector<16x16xf32>
    %135 = math.exp %134 : vector<16x16xf32>
    %cst_45 = arith.constant dense<0.000000e+00> : vector<16xf32>
    %136 = vector.multi_reduction <add>, %135, %cst_45 [1] : vector<16x16xf32> to vector<16xf32>
    %137 = vector.shape_cast %136 : vector<16xf32> to vector<16x1xf32>
    %138 = tpu.reciprocal %137 {approx = true} : vector<16x1xf32> -> vector<16x1xf32>
    %139 = vector.broadcast %138 : vector<16x1xf32> to vector<16x16xf32>
    %140 = arith.mulf %135, %139 : vector<16x16xf32>
    %141 = arith.truncf %140 : vector<16x16xf32> to vector<16x16xbf16>
    %142 = vector.extract_strided_slice %86 {offsets = [0, 0], sizes = [16, 128], strides = [1, 1]} : vector<32x128xbf16> to vector<16x128xbf16>
    %cst_46 = arith.constant dense<0.000000e+00> : vector<16x128xf32>
    %143 = tpu.matmul %141, %142, %cst_46 {dimension_numbers = #tpu.dot_dimension_numbers<[1], [0], [0], [1], [0, 0, 1, 1], [], []>} : vector<16x16xbf16>, vector<16x128xbf16>, vector<16x128xf32> -> vector<16x128xf32>
    %144 = arith.addf %127, %143 : vector<16x128xf32>
    %145 = vector.extract_strided_slice %77 {offsets = [0, 0], sizes = [16, 128], strides = [1, 1]} : vector<32x128xbf16> to vector<16x128xbf16>
    %cst_47 = arith.constant dense<0.000000e+00> : vector<16x16xf32>
    %146 = tpu.matmul %145, %92, %cst_47 {dimension_numbers = #tpu.dot_dimension_numbers<[1], [1], [0], [0], [0, 0, 1, 0], [], []>} : vector<16x128xbf16>, vector<16x128xbf16>, vector<16x16xf32> -> vector<16x16xf32>
    %147 = arith.addf %146, %91 : vector<16x16xf32>
    %cst_48 = arith.constant dense<0xFF800000> : vector<16xf32>
    %148 = vector.multi_reduction <maximumf>, %147, %cst_48 [1] : vector<16x16xf32> to vector<16xf32>
    %149 = vector.shape_cast %148 : vector<16xf32> to vector<16x1xf32>
    %150 = vector.broadcast %149 : vector<16x1xf32> to vector<16x16xf32>
    %151 = arith.subf %147, %150 : vector<16x16xf32>
    %152 = math.exp %151 : vector<16x16xf32>
    %cst_49 = arith.constant dense<0.000000e+00> : vector<16xf32>
    %153 = vector.multi_reduction <add>, %152, %cst_49 [1] : vector<16x16xf32> to vector<16xf32>
    %154 = vector.shape_cast %153 : vector<16xf32> to vector<16x1xf32>
    %155 = tpu.reciprocal %154 {approx = true} : vector<16x1xf32> -> vector<16x1xf32>
    %156 = vector.broadcast %155 : vector<16x1xf32> to vector<16x16xf32>
    %157 = arith.mulf %152, %156 : vector<16x16xf32>
    %158 = arith.truncf %157 : vector<16x16xf32> to vector<16x16xbf16>
    %159 = vector.extract_strided_slice %89 {offsets = [0, 0], sizes = [16, 128], strides = [1, 1]} : vector<32x128xbf16> to vector<16x128xbf16>
    %cst_50 = arith.constant dense<0.000000e+00> : vector<16x128xf32>
    %160 = tpu.matmul %158, %159, %cst_50 {dimension_numbers = #tpu.dot_dimension_numbers<[1], [0], [0], [1], [0, 0, 1, 1], [], []>} : vector<16x16xbf16>, vector<16x128xbf16>, vector<16x128xf32> -> vector<16x128xf32>
    %161 = arith.addf %144, %160 : vector<16x128xf32>
    %c1_51 = arith.constant 1 : index
    %c0_52 = arith.constant 0 : index
    %c0_53 = arith.constant 0 : index
    %162 = vector.load %arg3[%c1_51, %c0_52, %c0_53] : memref<2x16x16xf32, #tpu.memory_space<vmem>>, vector<1x16x16xf32>
    %163 = vector.shape_cast %162 : vector<1x16x16xf32> to vector<16x16xf32>
    %164 = vector.extract_strided_slice %63 {offsets = [16, 0], sizes = [16, 128], strides = [1, 1]} : vector<32x128xbf16> to vector<16x128xbf16>
    %cst_54 = arith.constant 0.000000e+00 : f32
    %165 = vector.broadcast %cst_54 : f32 to vector<16x128xf32>
    %166 = vector.extract_strided_slice %68 {offsets = [16, 0], sizes = [16, 128], strides = [1, 1]} : vector<32x128xbf16> to vector<16x128xbf16>
    %cst_55 = arith.constant dense<0.000000e+00> : vector<16x16xf32>
    %167 = tpu.matmul %166, %164, %cst_55 {dimension_numbers = #tpu.dot_dimension_numbers<[1], [1], [0], [0], [0, 0, 1, 0], [], []>} : vector<16x128xbf16>, vector<16x128xbf16>, vector<16x16xf32> -> vector<16x16xf32>
    %168 = arith.addf %167, %163 : vector<16x16xf32>
    %cst_56 = arith.constant dense<0xFF800000> : vector<16xf32>
    %169 = vector.multi_reduction <maximumf>, %168, %cst_56 [1] : vector<16x16xf32> to vector<16xf32>
    %170 = vector.shape_cast %169 : vector<16xf32> to vector<16x1xf32>
    %171 = vector.broadcast %170 : vector<16x1xf32> to vector<16x16xf32>
    %172 = arith.subf %168, %171 : vector<16x16xf32>
    %173 = math.exp %172 : vector<16x16xf32>
    %cst_57 = arith.constant dense<0.000000e+00> : vector<16xf32>
    %174 = vector.multi_reduction <add>, %173, %cst_57 [1] : vector<16x16xf32> to vector<16xf32>
    %175 = vector.shape_cast %174 : vector<16xf32> to vector<16x1xf32>
    %176 = tpu.reciprocal %175 {approx = true} : vector<16x1xf32> -> vector<16x1xf32>
    %177 = vector.broadcast %176 : vector<16x1xf32> to vector<16x16xf32>
    %178 = arith.mulf %173, %177 : vector<16x16xf32>
    %179 = arith.truncf %178 : vector<16x16xf32> to vector<16x16xbf16>
    %180 = vector.extract_strided_slice %80 {offsets = [16, 0], sizes = [16, 128], strides = [1, 1]} : vector<32x128xbf16> to vector<16x128xbf16>
    %cst_58 = arith.constant dense<0.000000e+00> : vector<16x128xf32>
    %181 = tpu.matmul %179, %180, %cst_58 {dimension_numbers = #tpu.dot_dimension_numbers<[1], [0], [0], [1], [0, 0, 1, 1], [], []>} : vector<16x16xbf16>, vector<16x128xbf16>, vector<16x128xf32> -> vector<16x128xf32>
    %182 = arith.addf %165, %181 : vector<16x128xf32>
    %183 = vector.extract_strided_slice %71 {offsets = [16, 0], sizes = [16, 128], strides = [1, 1]} : vector<32x128xbf16> to vector<16x128xbf16>
    %cst_59 = arith.constant dense<0.000000e+00> : vector<16x16xf32>
    %184 = tpu.matmul %183, %164, %cst_59 {dimension_numbers = #tpu.dot_dimension_numbers<[1], [1], [0], [0], [0, 0, 1, 0], [], []>} : vector<16x128xbf16>, vector<16x128xbf16>, vector<16x16xf32> -> vector<16x16xf32>
    %185 = arith.addf %184, %163 : vector<16x16xf32>
    %cst_60 = arith.constant dense<0xFF800000> : vector<16xf32>
    %186 = vector.multi_reduction <maximumf>, %185, %cst_60 [1] : vector<16x16xf32> to vector<16xf32>
    %187 = vector.shape_cast %186 : vector<16xf32> to vector<16x1xf32>
    %188 = vector.broadcast %187 : vector<16x1xf32> to vector<16x16xf32>
    %189 = arith.subf %185, %188 : vector<16x16xf32>
    %190 = math.exp %189 : vector<16x16xf32>
    %cst_61 = arith.constant dense<0.000000e+00> : vector<16xf32>
    %191 = vector.multi_reduction <add>, %190, %cst_61 [1] : vector<16x16xf32> to vector<16xf32>
    %192 = vector.shape_cast %191 : vector<16xf32> to vector<16x1xf32>
    %193 = tpu.reciprocal %192 {approx = true} : vector<16x1xf32> -> vector<16x1xf32>
    %194 = vector.broadcast %193 : vector<16x1xf32> to vector<16x16xf32>
    %195 = arith.mulf %190, %194 : vector<16x16xf32>
    %196 = arith.truncf %195 : vector<16x16xf32> to vector<16x16xbf16>
    %197 = vector.extract_strided_slice %83 {offsets = [16, 0], sizes = [16, 128], strides = [1, 1]} : vector<32x128xbf16> to vector<16x128xbf16>
    %cst_62 = arith.constant dense<0.000000e+00> : vector<16x128xf32>
    %198 = tpu.matmul %196, %197, %cst_62 {dimension_numbers = #tpu.dot_dimension_numbers<[1], [0], [0], [1], [0, 0, 1, 1], [], []>} : vector<16x16xbf16>, vector<16x128xbf16>, vector<16x128xf32> -> vector<16x128xf32>
    %199 = arith.addf %182, %198 : vector<16x128xf32>
    %200 = vector.extract_strided_slice %74 {offsets = [16, 0], sizes = [16, 128], strides = [1, 1]} : vector<32x128xbf16> to vector<16x128xbf16>
    %cst_63 = arith.constant dense<0.000000e+00> : vector<16x16xf32>
    %201 = tpu.matmul %200, %164, %cst_63 {dimension_numbers = #tpu.dot_dimension_numbers<[1], [1], [0], [0], [0, 0, 1, 0], [], []>} : vector<16x128xbf16>, vector<16x128xbf16>, vector<16x16xf32> -> vector<16x16xf32>
    %202 = arith.addf %201, %163 : vector<16x16xf32>
    %cst_64 = arith.constant dense<0xFF800000> : vector<16xf32>
    %203 = vector.multi_reduction <maximumf>, %202, %cst_64 [1] : vector<16x16xf32> to vector<16xf32>
    %204 = vector.shape_cast %203 : vector<16xf32> to vector<16x1xf32>
    %205 = vector.broadcast %204 : vector<16x1xf32> to vector<16x16xf32>
    %206 = arith.subf %202, %205 : vector<16x16xf32>
    %207 = math.exp %206 : vector<16x16xf32>
    %cst_65 = arith.constant dense<0.000000e+00> : vector<16xf32>
    %208 = vector.multi_reduction <add>, %207, %cst_65 [1] : vector<16x16xf32> to vector<16xf32>
    %209 = vector.shape_cast %208 : vector<16xf32> to vector<16x1xf32>
    %210 = tpu.reciprocal %209 {approx = true} : vector<16x1xf32> -> vector<16x1xf32>
    %211 = vector.broadcast %210 : vector<16x1xf32> to vector<16x16xf32>
    %212 = arith.mulf %207, %211 : vector<16x16xf32>
    %213 = arith.truncf %212 : vector<16x16xf32> to vector<16x16xbf16>
    %214 = vector.extract_strided_slice %86 {offsets = [16, 0], sizes = [16, 128], strides = [1, 1]} : vector<32x128xbf16> to vector<16x128xbf16>
    %cst_66 = arith.constant dense<0.000000e+00> : vector<16x128xf32>
    %215 = tpu.matmul %213, %214, %cst_66 {dimension_numbers = #tpu.dot_dimension_numbers<[1], [0], [0], [1], [0, 0, 1, 1], [], []>} : vector<16x16xbf16>, vector<16x128xbf16>, vector<16x128xf32> -> vector<16x128xf32>
    %216 = arith.addf %199, %215 : vector<16x128xf32>
    %217 = vector.extract_strided_slice %77 {offsets = [16, 0], sizes = [16, 128], strides = [1, 1]} : vector<32x128xbf16> to vector<16x128xbf16>
    %cst_67 = arith.constant dense<0.000000e+00> : vector<16x16xf32>
    %218 = tpu.matmul %217, %164, %cst_67 {dimension_numbers = #tpu.dot_dimension_numbers<[1], [1], [0], [0], [0, 0, 1, 0], [], []>} : vector<16x128xbf16>, vector<16x128xbf16>, vector<16x16xf32> -> vector<16x16xf32>
    %219 = arith.addf %218, %163 : vector<16x16xf32>
    %cst_68 = arith.constant dense<0xFF800000> : vector<16xf32>
    %220 = vector.multi_reduction <maximumf>, %219, %cst_68 [1] : vector<16x16xf32> to vector<16xf32>
    %221 = vector.shape_cast %220 : vector<16xf32> to vector<16x1xf32>
    %222 = vector.broadcast %221 : vector<16x1xf32> to vector<16x16xf32>
    %223 = arith.subf %219, %222 : vector<16x16xf32>
    %224 = math.exp %223 : vector<16x16xf32>
    %cst_69 = arith.constant dense<0.000000e+00> : vector<16xf32>
    %225 = vector.multi_reduction <add>, %224, %cst_69 [1] : vector<16x16xf32> to vector<16xf32>
    %226 = vector.shape_cast %225 : vector<16xf32> to vector<16x1xf32>
    %227 = tpu.reciprocal %226 {approx = true} : vector<16x1xf32> -> vector<16x1xf32>
    %228 = vector.broadcast %227 : vector<16x1xf32> to vector<16x16xf32>
    %229 = arith.mulf %224, %228 : vector<16x16xf32>
    %230 = arith.truncf %229 : vector<16x16xf32> to vector<16x16xbf16>
    %231 = vector.extract_strided_slice %89 {offsets = [16, 0], sizes = [16, 128], strides = [1, 1]} : vector<32x128xbf16> to vector<16x128xbf16>
    %cst_70 = arith.constant dense<0.000000e+00> : vector<16x128xf32>
    %232 = tpu.matmul %230, %231, %cst_70 {dimension_numbers = #tpu.dot_dimension_numbers<[1], [0], [0], [1], [0, 0, 1, 1], [], []>} : vector<16x16xbf16>, vector<16x128xbf16>, vector<16x128xf32> -> vector<16x128xf32>
    %233 = arith.addf %216, %232 : vector<16x128xf32>
    %234 = tpu.concatenate %161, %233 in 0 : vector<16x128xf32>, vector<16x128xf32> -> vector<32x128xf32>
    %235 = arith.truncf %234 : vector<32x128xf32> to vector<32x128xbf16>
    %c0_71 = arith.constant 0 : index
    %c3 = arith.constant 3 : index
    %c0_72 = arith.constant 0 : index
    %c0_73 = arith.constant 0 : index
    %236 = vector.load %arg5[%c0_71, %c3, %c0_72, %c0_73] : memref<1x8x128x128xbf16, #tpu.memory_space<vmem>>, vector<1x1x128x128xbf16>
    %237 = vector.shape_cast %236 : vector<1x1x128x128xbf16> to vector<128x128xbf16>
    %cst_74 = arith.constant dense<0.000000e+00> : vector<32x128xf32>
    %238 = tpu.matmul %235, %237, %cst_74 {dimension_numbers = #tpu.dot_dimension_numbers<[1], [0], [0], [1], [0, 0, 1, 1], [], []>} : vector<32x128xbf16>, vector<128x128xbf16>, vector<32x128xf32> -> vector<32x128xf32>
    %239 = vector.extract_strided_slice %39 {offsets = [3, 0], sizes = [1, 128], strides = [1, 1]} : vector<8x128xf32> to vector<1x128xf32>
    %240 = vector.broadcast %239 : vector<1x128xf32> to vector<32x128xf32>
    %241 = arith.addf %238, %240 : vector<32x128xf32>
    %242 = arith.addf %241, %3 : vector<32x128xf32>
    %243 = vector.broadcast %9 : vector<1x128xf32> to vector<32x128xf32>
    %244 = arith.mulf %242, %243 : vector<32x128xf32>
    %cst_75 = arith.constant dense<0.000000e+00> : vector<32xf32>
    %245 = vector.multi_reduction <add>, %244, %cst_75 [1] : vector<32x128xf32> to vector<32xf32>
    %246 = vector.shape_cast %245 : vector<32xf32> to vector<32x1xf32>
    %cst_76 = arith.constant 3.125000e-02 : f32
    %247 = vector.broadcast %cst_76 : f32 to vector<32x1xf32>
    %248 = arith.mulf %246, %247 : vector<32x1xf32>
    %249 = vector.broadcast %248 : vector<32x1xf32> to vector<32x128xf32>
    %250 = arith.subf %244, %249 : vector<32x128xf32>
    %251 = vector.broadcast %9 : vector<1x128xf32> to vector<32x128xf32>
    %252 = arith.mulf %250, %251 : vector<32x128xf32>
    %253 = arith.mulf %252, %252 : vector<32x128xf32>
    %cst_77 = arith.constant dense<0.000000e+00> : vector<32xf32>
    %254 = vector.multi_reduction <add>, %253, %cst_77 [1] : vector<32x128xf32> to vector<32xf32>
    %255 = vector.shape_cast %254 : vector<32xf32> to vector<32x1xf32>
    %cst_78 = arith.constant 3.125000e-02 : f32
    %256 = vector.broadcast %cst_78 : f32 to vector<32x1xf32>
    %257 = arith.mulf %255, %256 : vector<32x1xf32>
    %cst_79 = arith.constant 9.99999974E-6 : f32
    %258 = vector.broadcast %cst_79 : f32 to vector<32x1xf32>
    %259 = arith.addf %257, %258 : vector<32x1xf32>
    %260 = math.rsqrt %259 : vector<32x1xf32>
    %261 = vector.broadcast %260 : vector<32x1xf32> to vector<32x128xf32>
    %262 = arith.mulf %252, %261 : vector<32x128xf32>
    %263 = vector.extract_strided_slice %41 {offsets = [0, 0], sizes = [1, 128], strides = [1, 1]} : vector<3x128xf32> to vector<1x128xf32>
    %264 = vector.broadcast %263 : vector<1x128xf32> to vector<32x128xf32>
    %265 = arith.mulf %262, %264 : vector<32x128xf32>
    %266 = vector.extract_strided_slice %43 {offsets = [0, 0], sizes = [1, 128], strides = [1, 1]} : vector<3x128xf32> to vector<1x128xf32>
    %267 = vector.broadcast %266 : vector<1x128xf32> to vector<32x128xf32>
    %268 = arith.addf %265, %267 : vector<32x128xf32>
    %269 = arith.truncf %268 : vector<32x128xf32> to vector<32x128xbf16>
    %c0_80 = arith.constant 0 : index
    %c4 = arith.constant 4 : index
    %c0_81 = arith.constant 0 : index
    %c0_82 = arith.constant 0 : index
    %270 = vector.load %arg5[%c0_80, %c4, %c0_81, %c0_82] : memref<1x8x128x128xbf16, #tpu.memory_space<vmem>>, vector<1x1x128x128xbf16>
    %271 = vector.shape_cast %270 : vector<1x1x128x128xbf16> to vector<128x128xbf16>
    %cst_83 = arith.constant dense<0.000000e+00> : vector<32x128xf32>
    %272 = tpu.matmul %269, %271, %cst_83 {dimension_numbers = #tpu.dot_dimension_numbers<[1], [0], [0], [1], [0, 0, 1, 1], [], []>} : vector<32x128xbf16>, vector<128x128xbf16>, vector<32x128xf32> -> vector<32x128xf32>
    %273 = vector.extract_strided_slice %39 {offsets = [4, 0], sizes = [1, 128], strides = [1, 1]} : vector<8x128xf32> to vector<1x128xf32>
    %274 = vector.broadcast %273 : vector<1x128xf32> to vector<32x128xf32>
    %275 = arith.addf %272, %274 : vector<32x128xf32>
    %c0_84 = arith.constant 0 : index
    %c5 = arith.constant 5 : index
    %c0_85 = arith.constant 0 : index
    %c0_86 = arith.constant 0 : index
    %276 = vector.load %arg5[%c0_84, %c5, %c0_85, %c0_86] : memref<1x8x128x128xbf16, #tpu.memory_space<vmem>>, vector<1x1x128x128xbf16>
    %277 = vector.shape_cast %276 : vector<1x1x128x128xbf16> to vector<128x128xbf16>
    %cst_87 = arith.constant dense<0.000000e+00> : vector<32x128xf32>
    %278 = tpu.matmul %4, %277, %cst_87 {dimension_numbers = #tpu.dot_dimension_numbers<[1], [0], [0], [1], [0, 0, 1, 1], [], []>} : vector<32x128xbf16>, vector<128x128xbf16>, vector<32x128xf32> -> vector<32x128xf32>
    %279 = vector.extract_strided_slice %39 {offsets = [5, 0], sizes = [1, 128], strides = [1, 1]} : vector<8x128xf32> to vector<1x128xf32>
    %280 = vector.broadcast %279 : vector<1x128xf32> to vector<32x128xf32>
    %281 = arith.addf %278, %280 : vector<32x128xf32>
    %c0_88 = arith.constant 0 : index
    %c6 = arith.constant 6 : index
    %c0_89 = arith.constant 0 : index
    %c0_90 = arith.constant 0 : index
    %282 = vector.load %arg5[%c0_88, %c6, %c0_89, %c0_90] : memref<1x8x128x128xbf16, #tpu.memory_space<vmem>>, vector<1x1x128x128xbf16>
    %283 = vector.shape_cast %282 : vector<1x1x128x128xbf16> to vector<128x128xbf16>
    %cst_91 = arith.constant dense<0.000000e+00> : vector<32x128xf32>
    %284 = tpu.matmul %4, %283, %cst_91 {dimension_numbers = #tpu.dot_dimension_numbers<[1], [0], [0], [1], [0, 0, 1, 1], [], []>} : vector<32x128xbf16>, vector<128x128xbf16>, vector<32x128xf32> -> vector<32x128xf32>
    %285 = vector.extract_strided_slice %39 {offsets = [6, 0], sizes = [1, 128], strides = [1, 1]} : vector<8x128xf32> to vector<1x128xf32>
    %286 = vector.broadcast %285 : vector<1x128xf32> to vector<32x128xf32>
    %287 = arith.addf %284, %286 : vector<32x128xf32>
    %288 = arith.truncf %281 : vector<32x128xf32> to vector<32x128xbf16>
    %cst_92 = arith.constant 0.353553385 : f32
    %289 = vector.broadcast %cst_92 : f32 to vector<32x128xf32>
    %290 = arith.mulf %275, %289 : vector<32x128xf32>
    %291 = vector.broadcast %16 : vector<1x128xf32> to vector<32x128xf32>
    %292 = arith.mulf %290, %291 : vector<32x128xf32>
    %293 = arith.truncf %292 : vector<32x128xf32> to vector<32x128xbf16>
    %294 = vector.broadcast %23 : vector<1x128xf32> to vector<32x128xf32>
    %295 = arith.mulf %290, %294 : vector<32x128xf32>
    %296 = arith.truncf %295 : vector<32x128xf32> to vector<32x128xbf16>
    %297 = vector.broadcast %30 : vector<1x128xf32> to vector<32x128xf32>
    %298 = arith.mulf %290, %297 : vector<32x128xf32>
    %299 = arith.truncf %298 : vector<32x128xf32> to vector<32x128xbf16>
    %300 = vector.broadcast %37 : vector<1x128xf32> to vector<32x128xf32>
    %301 = arith.mulf %290, %300 : vector<32x128xf32>
    %302 = arith.truncf %301 : vector<32x128xf32> to vector<32x128xbf16>
    %303 = vector.broadcast %16 : vector<1x128xf32> to vector<32x128xf32>
    %304 = arith.mulf %287, %303 : vector<32x128xf32>
    %305 = arith.truncf %304 : vector<32x128xf32> to vector<32x128xbf16>
    %306 = vector.broadcast %23 : vector<1x128xf32> to vector<32x128xf32>
    %307 = arith.mulf %287, %306 : vector<32x128xf32>
    %308 = arith.truncf %307 : vector<32x128xf32> to vector<32x128xbf16>
    %309 = vector.broadcast %30 : vector<1x128xf32> to vector<32x128xf32>
    %310 = arith.mulf %287, %309 : vector<32x128xf32>
    %311 = arith.truncf %310 : vector<32x128xf32> to vector<32x128xbf16>
    %312 = vector.broadcast %37 : vector<1x128xf32> to vector<32x128xf32>
    %313 = arith.mulf %287, %312 : vector<32x128xf32>
    %314 = arith.truncf %313 : vector<32x128xf32> to vector<32x128xbf16>
    %c0_93 = arith.constant 0 : index
    %c0_94 = arith.constant 0 : index
    %c0_95 = arith.constant 0 : index
    %315 = vector.load %arg4[%c0_93, %c0_94, %c0_95] : memref<2x16x16xf32, #tpu.memory_space<vmem>>, vector<1x16x16xf32>
    %316 = vector.shape_cast %315 : vector<1x16x16xf32> to vector<16x16xf32>
    %317 = vector.extract_strided_slice %288 {offsets = [0, 0], sizes = [16, 128], strides = [1, 1]} : vector<32x128xbf16> to vector<16x128xbf16>
    %cst_96 = arith.constant 0.000000e+00 : f32
    %318 = vector.broadcast %cst_96 : f32 to vector<16x128xf32>
    %319 = vector.extract_strided_slice %293 {offsets = [0, 0], sizes = [16, 128], strides = [1, 1]} : vector<32x128xbf16> to vector<16x128xbf16>
    %cst_97 = arith.constant dense<0.000000e+00> : vector<16x16xf32>
    %320 = tpu.matmul %319, %317, %cst_97 {dimension_numbers = #tpu.dot_dimension_numbers<[1], [1], [0], [0], [0, 0, 1, 0], [], []>} : vector<16x128xbf16>, vector<16x128xbf16>, vector<16x16xf32> -> vector<16x16xf32>
    %321 = arith.addf %320, %316 : vector<16x16xf32>
    %cst_98 = arith.constant dense<0xFF800000> : vector<16xf32>
    %322 = vector.multi_reduction <maximumf>, %321, %cst_98 [1] : vector<16x16xf32> to vector<16xf32>
    %323 = vector.shape_cast %322 : vector<16xf32> to vector<16x1xf32>
    %324 = vector.broadcast %323 : vector<16x1xf32> to vector<16x16xf32>
    %325 = arith.subf %321, %324 : vector<16x16xf32>
    %326 = math.exp %325 : vector<16x16xf32>
    %cst_99 = arith.constant dense<0.000000e+00> : vector<16xf32>
    %327 = vector.multi_reduction <add>, %326, %cst_99 [1] : vector<16x16xf32> to vector<16xf32>
    %328 = vector.shape_cast %327 : vector<16xf32> to vector<16x1xf32>
    %329 = tpu.reciprocal %328 {approx = true} : vector<16x1xf32> -> vector<16x1xf32>
    %330 = vector.broadcast %329 : vector<16x1xf32> to vector<16x16xf32>
    %331 = arith.mulf %326, %330 : vector<16x16xf32>
    %332 = arith.truncf %331 : vector<16x16xf32> to vector<16x16xbf16>
    %333 = vector.extract_strided_slice %305 {offsets = [0, 0], sizes = [16, 128], strides = [1, 1]} : vector<32x128xbf16> to vector<16x128xbf16>
    %cst_100 = arith.constant dense<0.000000e+00> : vector<16x128xf32>
    %334 = tpu.matmul %332, %333, %cst_100 {dimension_numbers = #tpu.dot_dimension_numbers<[1], [0], [0], [1], [0, 0, 1, 1], [], []>} : vector<16x16xbf16>, vector<16x128xbf16>, vector<16x128xf32> -> vector<16x128xf32>
    %335 = arith.addf %318, %334 : vector<16x128xf32>
    %336 = vector.extract_strided_slice %296 {offsets = [0, 0], sizes = [16, 128], strides = [1, 1]} : vector<32x128xbf16> to vector<16x128xbf16>
    %cst_101 = arith.constant dense<0.000000e+00> : vector<16x16xf32>
    %337 = tpu.matmul %336, %317, %cst_101 {dimension_numbers = #tpu.dot_dimension_numbers<[1], [1], [0], [0], [0, 0, 1, 0], [], []>} : vector<16x128xbf16>, vector<16x128xbf16>, vector<16x16xf32> -> vector<16x16xf32>
    %338 = arith.addf %337, %316 : vector<16x16xf32>
    %cst_102 = arith.constant dense<0xFF800000> : vector<16xf32>
    %339 = vector.multi_reduction <maximumf>, %338, %cst_102 [1] : vector<16x16xf32> to vector<16xf32>
    %340 = vector.shape_cast %339 : vector<16xf32> to vector<16x1xf32>
    %341 = vector.broadcast %340 : vector<16x1xf32> to vector<16x16xf32>
    %342 = arith.subf %338, %341 : vector<16x16xf32>
    %343 = math.exp %342 : vector<16x16xf32>
    %cst_103 = arith.constant dense<0.000000e+00> : vector<16xf32>
    %344 = vector.multi_reduction <add>, %343, %cst_103 [1] : vector<16x16xf32> to vector<16xf32>
    %345 = vector.shape_cast %344 : vector<16xf32> to vector<16x1xf32>
    %346 = tpu.reciprocal %345 {approx = true} : vector<16x1xf32> -> vector<16x1xf32>
    %347 = vector.broadcast %346 : vector<16x1xf32> to vector<16x16xf32>
    %348 = arith.mulf %343, %347 : vector<16x16xf32>
    %349 = arith.truncf %348 : vector<16x16xf32> to vector<16x16xbf16>
    %350 = vector.extract_strided_slice %308 {offsets = [0, 0], sizes = [16, 128], strides = [1, 1]} : vector<32x128xbf16> to vector<16x128xbf16>
    %cst_104 = arith.constant dense<0.000000e+00> : vector<16x128xf32>
    %351 = tpu.matmul %349, %350, %cst_104 {dimension_numbers = #tpu.dot_dimension_numbers<[1], [0], [0], [1], [0, 0, 1, 1], [], []>} : vector<16x16xbf16>, vector<16x128xbf16>, vector<16x128xf32> -> vector<16x128xf32>
    %352 = arith.addf %335, %351 : vector<16x128xf32>
    %353 = vector.extract_strided_slice %299 {offsets = [0, 0], sizes = [16, 128], strides = [1, 1]} : vector<32x128xbf16> to vector<16x128xbf16>
    %cst_105 = arith.constant dense<0.000000e+00> : vector<16x16xf32>
    %354 = tpu.matmul %353, %317, %cst_105 {dimension_numbers = #tpu.dot_dimension_numbers<[1], [1], [0], [0], [0, 0, 1, 0], [], []>} : vector<16x128xbf16>, vector<16x128xbf16>, vector<16x16xf32> -> vector<16x16xf32>
    %355 = arith.addf %354, %316 : vector<16x16xf32>
    %cst_106 = arith.constant dense<0xFF800000> : vector<16xf32>
    %356 = vector.multi_reduction <maximumf>, %355, %cst_106 [1] : vector<16x16xf32> to vector<16xf32>
    %357 = vector.shape_cast %356 : vector<16xf32> to vector<16x1xf32>
    %358 = vector.broadcast %357 : vector<16x1xf32> to vector<16x16xf32>
    %359 = arith.subf %355, %358 : vector<16x16xf32>
    %360 = math.exp %359 : vector<16x16xf32>
    %cst_107 = arith.constant dense<0.000000e+00> : vector<16xf32>
    %361 = vector.multi_reduction <add>, %360, %cst_107 [1] : vector<16x16xf32> to vector<16xf32>
    %362 = vector.shape_cast %361 : vector<16xf32> to vector<16x1xf32>
    %363 = tpu.reciprocal %362 {approx = true} : vector<16x1xf32> -> vector<16x1xf32>
    %364 = vector.broadcast %363 : vector<16x1xf32> to vector<16x16xf32>
    %365 = arith.mulf %360, %364 : vector<16x16xf32>
    %366 = arith.truncf %365 : vector<16x16xf32> to vector<16x16xbf16>
    %367 = vector.extract_strided_slice %311 {offsets = [0, 0], sizes = [16, 128], strides = [1, 1]} : vector<32x128xbf16> to vector<16x128xbf16>
    %cst_108 = arith.constant dense<0.000000e+00> : vector<16x128xf32>
    %368 = tpu.matmul %366, %367, %cst_108 {dimension_numbers = #tpu.dot_dimension_numbers<[1], [0], [0], [1], [0, 0, 1, 1], [], []>} : vector<16x16xbf16>, vector<16x128xbf16>, vector<16x128xf32> -> vector<16x128xf32>
    %369 = arith.addf %352, %368 : vector<16x128xf32>
    %370 = vector.extract_strided_slice %302 {offsets = [0, 0], sizes = [16, 128], strides = [1, 1]} : vector<32x128xbf16> to vector<16x128xbf16>
    %cst_109 = arith.constant dense<0.000000e+00> : vector<16x16xf32>
    %371 = tpu.matmul %370, %317, %cst_109 {dimension_numbers = #tpu.dot_dimension_numbers<[1], [1], [0], [0], [0, 0, 1, 0], [], []>} : vector<16x128xbf16>, vector<16x128xbf16>, vector<16x16xf32> -> vector<16x16xf32>
    %372 = arith.addf %371, %316 : vector<16x16xf32>
    %cst_110 = arith.constant dense<0xFF800000> : vector<16xf32>
    %373 = vector.multi_reduction <maximumf>, %372, %cst_110 [1] : vector<16x16xf32> to vector<16xf32>
    %374 = vector.shape_cast %373 : vector<16xf32> to vector<16x1xf32>
    %375 = vector.broadcast %374 : vector<16x1xf32> to vector<16x16xf32>
    %376 = arith.subf %372, %375 : vector<16x16xf32>
    %377 = math.exp %376 : vector<16x16xf32>
    %cst_111 = arith.constant dense<0.000000e+00> : vector<16xf32>
    %378 = vector.multi_reduction <add>, %377, %cst_111 [1] : vector<16x16xf32> to vector<16xf32>
    %379 = vector.shape_cast %378 : vector<16xf32> to vector<16x1xf32>
    %380 = tpu.reciprocal %379 {approx = true} : vector<16x1xf32> -> vector<16x1xf32>
    %381 = vector.broadcast %380 : vector<16x1xf32> to vector<16x16xf32>
    %382 = arith.mulf %377, %381 : vector<16x16xf32>
    %383 = arith.truncf %382 : vector<16x16xf32> to vector<16x16xbf16>
    %384 = vector.extract_strided_slice %314 {offsets = [0, 0], sizes = [16, 128], strides = [1, 1]} : vector<32x128xbf16> to vector<16x128xbf16>
    %cst_112 = arith.constant dense<0.000000e+00> : vector<16x128xf32>
    %385 = tpu.matmul %383, %384, %cst_112 {dimension_numbers = #tpu.dot_dimension_numbers<[1], [0], [0], [1], [0, 0, 1, 1], [], []>} : vector<16x16xbf16>, vector<16x128xbf16>, vector<16x128xf32> -> vector<16x128xf32>
    %386 = arith.addf %369, %385 : vector<16x128xf32>
    %c1_113 = arith.constant 1 : index
    %c0_114 = arith.constant 0 : index
    %c0_115 = arith.constant 0 : index
    %387 = vector.load %arg4[%c1_113, %c0_114, %c0_115] : memref<2x16x16xf32, #tpu.memory_space<vmem>>, vector<1x16x16xf32>
    %388 = vector.shape_cast %387 : vector<1x16x16xf32> to vector<16x16xf32>
    %389 = vector.extract_strided_slice %288 {offsets = [16, 0], sizes = [16, 128], strides = [1, 1]} : vector<32x128xbf16> to vector<16x128xbf16>
    %cst_116 = arith.constant 0.000000e+00 : f32
    %390 = vector.broadcast %cst_116 : f32 to vector<16x128xf32>
    %391 = vector.extract_strided_slice %293 {offsets = [16, 0], sizes = [16, 128], strides = [1, 1]} : vector<32x128xbf16> to vector<16x128xbf16>
    %cst_117 = arith.constant dense<0.000000e+00> : vector<16x16xf32>
    %392 = tpu.matmul %391, %389, %cst_117 {dimension_numbers = #tpu.dot_dimension_numbers<[1], [1], [0], [0], [0, 0, 1, 0], [], []>} : vector<16x128xbf16>, vector<16x128xbf16>, vector<16x16xf32> -> vector<16x16xf32>
    %393 = arith.addf %392, %388 : vector<16x16xf32>
    %cst_118 = arith.constant dense<0xFF800000> : vector<16xf32>
    %394 = vector.multi_reduction <maximumf>, %393, %cst_118 [1] : vector<16x16xf32> to vector<16xf32>
    %395 = vector.shape_cast %394 : vector<16xf32> to vector<16x1xf32>
    %396 = vector.broadcast %395 : vector<16x1xf32> to vector<16x16xf32>
    %397 = arith.subf %393, %396 : vector<16x16xf32>
    %398 = math.exp %397 : vector<16x16xf32>
    %cst_119 = arith.constant dense<0.000000e+00> : vector<16xf32>
    %399 = vector.multi_reduction <add>, %398, %cst_119 [1] : vector<16x16xf32> to vector<16xf32>
    %400 = vector.shape_cast %399 : vector<16xf32> to vector<16x1xf32>
    %401 = tpu.reciprocal %400 {approx = true} : vector<16x1xf32> -> vector<16x1xf32>
    %402 = vector.broadcast %401 : vector<16x1xf32> to vector<16x16xf32>
    %403 = arith.mulf %398, %402 : vector<16x16xf32>
    %404 = arith.truncf %403 : vector<16x16xf32> to vector<16x16xbf16>
    %405 = vector.extract_strided_slice %305 {offsets = [16, 0], sizes = [16, 128], strides = [1, 1]} : vector<32x128xbf16> to vector<16x128xbf16>
    %cst_120 = arith.constant dense<0.000000e+00> : vector<16x128xf32>
    %406 = tpu.matmul %404, %405, %cst_120 {dimension_numbers = #tpu.dot_dimension_numbers<[1], [0], [0], [1], [0, 0, 1, 1], [], []>} : vector<16x16xbf16>, vector<16x128xbf16>, vector<16x128xf32> -> vector<16x128xf32>
    %407 = arith.addf %390, %406 : vector<16x128xf32>
    %408 = vector.extract_strided_slice %296 {offsets = [16, 0], sizes = [16, 128], strides = [1, 1]} : vector<32x128xbf16> to vector<16x128xbf16>
    %cst_121 = arith.constant dense<0.000000e+00> : vector<16x16xf32>
    %409 = tpu.matmul %408, %389, %cst_121 {dimension_numbers = #tpu.dot_dimension_numbers<[1], [1], [0], [0], [0, 0, 1, 0], [], []>} : vector<16x128xbf16>, vector<16x128xbf16>, vector<16x16xf32> -> vector<16x16xf32>
    %410 = arith.addf %409, %388 : vector<16x16xf32>
    %cst_122 = arith.constant dense<0xFF800000> : vector<16xf32>
    %411 = vector.multi_reduction <maximumf>, %410, %cst_122 [1] : vector<16x16xf32> to vector<16xf32>
    %412 = vector.shape_cast %411 : vector<16xf32> to vector<16x1xf32>
    %413 = vector.broadcast %412 : vector<16x1xf32> to vector<16x16xf32>
    %414 = arith.subf %410, %413 : vector<16x16xf32>
    %415 = math.exp %414 : vector<16x16xf32>
    %cst_123 = arith.constant dense<0.000000e+00> : vector<16xf32>
    %416 = vector.multi_reduction <add>, %415, %cst_123 [1] : vector<16x16xf32> to vector<16xf32>
    %417 = vector.shape_cast %416 : vector<16xf32> to vector<16x1xf32>
    %418 = tpu.reciprocal %417 {approx = true} : vector<16x1xf32> -> vector<16x1xf32>
    %419 = vector.broadcast %418 : vector<16x1xf32> to vector<16x16xf32>
    %420 = arith.mulf %415, %419 : vector<16x16xf32>
    %421 = arith.truncf %420 : vector<16x16xf32> to vector<16x16xbf16>
    %422 = vector.extract_strided_slice %308 {offsets = [16, 0], sizes = [16, 128], strides = [1, 1]} : vector<32x128xbf16> to vector<16x128xbf16>
    %cst_124 = arith.constant dense<0.000000e+00> : vector<16x128xf32>
    %423 = tpu.matmul %421, %422, %cst_124 {dimension_numbers = #tpu.dot_dimension_numbers<[1], [0], [0], [1], [0, 0, 1, 1], [], []>} : vector<16x16xbf16>, vector<16x128xbf16>, vector<16x128xf32> -> vector<16x128xf32>
    %424 = arith.addf %407, %423 : vector<16x128xf32>
    %425 = vector.extract_strided_slice %299 {offsets = [16, 0], sizes = [16, 128], strides = [1, 1]} : vector<32x128xbf16> to vector<16x128xbf16>
    %cst_125 = arith.constant dense<0.000000e+00> : vector<16x16xf32>
    %426 = tpu.matmul %425, %389, %cst_125 {dimension_numbers = #tpu.dot_dimension_numbers<[1], [1], [0], [0], [0, 0, 1, 0], [], []>} : vector<16x128xbf16>, vector<16x128xbf16>, vector<16x16xf32> -> vector<16x16xf32>
    %427 = arith.addf %426, %388 : vector<16x16xf32>
    %cst_126 = arith.constant dense<0xFF800000> : vector<16xf32>
    %428 = vector.multi_reduction <maximumf>, %427, %cst_126 [1] : vector<16x16xf32> to vector<16xf32>
    %429 = vector.shape_cast %428 : vector<16xf32> to vector<16x1xf32>
    %430 = vector.broadcast %429 : vector<16x1xf32> to vector<16x16xf32>
    %431 = arith.subf %427, %430 : vector<16x16xf32>
    %432 = math.exp %431 : vector<16x16xf32>
    %cst_127 = arith.constant dense<0.000000e+00> : vector<16xf32>
    %433 = vector.multi_reduction <add>, %432, %cst_127 [1] : vector<16x16xf32> to vector<16xf32>
    %434 = vector.shape_cast %433 : vector<16xf32> to vector<16x1xf32>
    %435 = tpu.reciprocal %434 {approx = true} : vector<16x1xf32> -> vector<16x1xf32>
    %436 = vector.broadcast %435 : vector<16x1xf32> to vector<16x16xf32>
    %437 = arith.mulf %432, %436 : vector<16x16xf32>
    %438 = arith.truncf %437 : vector<16x16xf32> to vector<16x16xbf16>
    %439 = vector.extract_strided_slice %311 {offsets = [16, 0], sizes = [16, 128], strides = [1, 1]} : vector<32x128xbf16> to vector<16x128xbf16>
    %cst_128 = arith.constant dense<0.000000e+00> : vector<16x128xf32>
    %440 = tpu.matmul %438, %439, %cst_128 {dimension_numbers = #tpu.dot_dimension_numbers<[1], [0], [0], [1], [0, 0, 1, 1], [], []>} : vector<16x16xbf16>, vector<16x128xbf16>, vector<16x128xf32> -> vector<16x128xf32>
    %441 = arith.addf %424, %440 : vector<16x128xf32>
    %442 = vector.extract_strided_slice %302 {offsets = [16, 0], sizes = [16, 128], strides = [1, 1]} : vector<32x128xbf16> to vector<16x128xbf16>
    %cst_129 = arith.constant dense<0.000000e+00> : vector<16x16xf32>
    %443 = tpu.matmul %442, %389, %cst_129 {dimension_numbers = #tpu.dot_dimension_numbers<[1], [1], [0], [0], [0, 0, 1, 0], [], []>} : vector<16x128xbf16>, vector<16x128xbf16>, vector<16x16xf32> -> vector<16x16xf32>
    %444 = arith.addf %443, %388 : vector<16x16xf32>
    %cst_130 = arith.constant dense<0xFF800000> : vector<16xf32>
    %445 = vector.multi_reduction <maximumf>, %444, %cst_130 [1] : vector<16x16xf32> to vector<16xf32>
    %446 = vector.shape_cast %445 : vector<16xf32> to vector<16x1xf32>
    %447 = vector.broadcast %446 : vector<16x1xf32> to vector<16x16xf32>
    %448 = arith.subf %444, %447 : vector<16x16xf32>
    %449 = math.exp %448 : vector<16x16xf32>
    %cst_131 = arith.constant dense<0.000000e+00> : vector<16xf32>
    %450 = vector.multi_reduction <add>, %449, %cst_131 [1] : vector<16x16xf32> to vector<16xf32>
    %451 = vector.shape_cast %450 : vector<16xf32> to vector<16x1xf32>
    %452 = tpu.reciprocal %451 {approx = true} : vector<16x1xf32> -> vector<16x1xf32>
    %453 = vector.broadcast %452 : vector<16x1xf32> to vector<16x16xf32>
    %454 = arith.mulf %449, %453 : vector<16x16xf32>
    %455 = arith.truncf %454 : vector<16x16xf32> to vector<16x16xbf16>
    %456 = vector.extract_strided_slice %314 {offsets = [16, 0], sizes = [16, 128], strides = [1, 1]} : vector<32x128xbf16> to vector<16x128xbf16>
    %cst_132 = arith.constant dense<0.000000e+00> : vector<16x128xf32>
    %457 = tpu.matmul %455, %456, %cst_132 {dimension_numbers = #tpu.dot_dimension_numbers<[1], [0], [0], [1], [0, 0, 1, 1], [], []>} : vector<16x16xbf16>, vector<16x128xbf16>, vector<16x128xf32> -> vector<16x128xf32>
    %458 = arith.addf %441, %457 : vector<16x128xf32>
    %459 = tpu.concatenate %386, %458 in 0 : vector<16x128xf32>, vector<16x128xf32> -> vector<32x128xf32>
    %460 = arith.truncf %459 : vector<32x128xf32> to vector<32x128xbf16>
    %c0_133 = arith.constant 0 : index
    %c7 = arith.constant 7 : index
    %c0_134 = arith.constant 0 : index
    %c0_135 = arith.constant 0 : index
    %461 = vector.load %arg5[%c0_133, %c7, %c0_134, %c0_135] : memref<1x8x128x128xbf16, #tpu.memory_space<vmem>>, vector<1x1x128x128xbf16>
    %462 = vector.shape_cast %461 : vector<1x1x128x128xbf16> to vector<128x128xbf16>
    %cst_136 = arith.constant dense<0.000000e+00> : vector<32x128xf32>
    %463 = tpu.matmul %460, %462, %cst_136 {dimension_numbers = #tpu.dot_dimension_numbers<[1], [0], [0], [1], [0, 0, 1, 1], [], []>} : vector<32x128xbf16>, vector<128x128xbf16>, vector<32x128xf32> -> vector<32x128xf32>
    %464 = vector.extract_strided_slice %39 {offsets = [7, 0], sizes = [1, 128], strides = [1, 1]} : vector<8x128xf32> to vector<1x128xf32>
    %465 = vector.broadcast %464 : vector<1x128xf32> to vector<32x128xf32>
    %466 = arith.addf %463, %465 : vector<32x128xf32>
    %467 = arith.addf %466, %268 : vector<32x128xf32>
    %468 = vector.broadcast %9 : vector<1x128xf32> to vector<32x128xf32>
    %469 = arith.mulf %467, %468 : vector<32x128xf32>
    %cst_137 = arith.constant dense<0.000000e+00> : vector<32xf32>
    %470 = vector.multi_reduction <add>, %469, %cst_137 [1] : vector<32x128xf32> to vector<32xf32>
    %471 = vector.shape_cast %470 : vector<32xf32> to vector<32x1xf32>
    %cst_138 = arith.constant 3.125000e-02 : f32
    %472 = vector.broadcast %cst_138 : f32 to vector<32x1xf32>
    %473 = arith.mulf %471, %472 : vector<32x1xf32>
    %474 = vector.broadcast %473 : vector<32x1xf32> to vector<32x128xf32>
    %475 = arith.subf %469, %474 : vector<32x128xf32>
    %476 = vector.broadcast %9 : vector<1x128xf32> to vector<32x128xf32>
    %477 = arith.mulf %475, %476 : vector<32x128xf32>
    %478 = arith.mulf %477, %477 : vector<32x128xf32>
    %cst_139 = arith.constant dense<0.000000e+00> : vector<32xf32>
    %479 = vector.multi_reduction <add>, %478, %cst_139 [1] : vector<32x128xf32> to vector<32xf32>
    %480 = vector.shape_cast %479 : vector<32xf32> to vector<32x1xf32>
    %cst_140 = arith.constant 3.125000e-02 : f32
    %481 = vector.broadcast %cst_140 : f32 to vector<32x1xf32>
    %482 = arith.mulf %480, %481 : vector<32x1xf32>
    %cst_141 = arith.constant 9.99999974E-6 : f32
    %483 = vector.broadcast %cst_141 : f32 to vector<32x1xf32>
    %484 = arith.addf %482, %483 : vector<32x1xf32>
    %485 = math.rsqrt %484 : vector<32x1xf32>
    %486 = vector.broadcast %485 : vector<32x1xf32> to vector<32x128xf32>
    %487 = arith.mulf %477, %486 : vector<32x128xf32>
    %488 = vector.extract_strided_slice %41 {offsets = [1, 0], sizes = [1, 128], strides = [1, 1]} : vector<3x128xf32> to vector<1x128xf32>
    %489 = vector.broadcast %488 : vector<1x128xf32> to vector<32x128xf32>
    %490 = arith.mulf %487, %489 : vector<32x128xf32>
    %491 = vector.extract_strided_slice %43 {offsets = [1, 0], sizes = [1, 128], strides = [1, 1]} : vector<3x128xf32> to vector<1x128xf32>
    %492 = vector.broadcast %491 : vector<1x128xf32> to vector<32x128xf32>
    %493 = arith.addf %490, %492 : vector<32x128xf32>
    %494 = arith.truncf %493 : vector<32x128xf32> to vector<32x128xbf16>
    %c0_142 = arith.constant 0 : index
    %c0_143 = arith.constant 0 : index
    %c0_144 = arith.constant 0 : index
    %495 = vector.load %arg9[%c0_142, %c0_143, %c0_144] : memref<1x128x128xbf16, #tpu.memory_space<vmem>>, vector<1x128x128xbf16>
    %496 = vector.shape_cast %495 : vector<1x128x128xbf16> to vector<128x128xbf16>
    %cst_145 = arith.constant dense<0.000000e+00> : vector<32x128xf32>
    %497 = tpu.matmul %494, %496, %cst_145 {dimension_numbers = #tpu.dot_dimension_numbers<[1], [0], [0], [1], [0, 0, 1, 1], [], []>} : vector<32x128xbf16>, vector<128x128xbf16>, vector<32x128xf32> -> vector<32x128xf32>
    %c0_146 = arith.constant 0 : index
    %c0_147 = arith.constant 0 : index
    %c0_148 = arith.constant 0 : index
    %498 = vector.load %arg10[%c0_146, %c0_147, %c0_148] : memref<1x1x128xf32, #tpu.memory_space<vmem>>, vector<1x1x128xf32>
    %499 = vector.shape_cast %498 : vector<1x1x128xf32> to vector<1x128xf32>
    %500 = vector.broadcast %499 : vector<1x128xf32> to vector<32x128xf32>
    %501 = arith.addf %497, %500 : vector<32x128xf32>
    %cst_149 = arith.constant 0.000000e+00 : f32
    %502 = vector.broadcast %cst_149 : f32 to vector<32x128xf32>
    %503 = arith.maximumf %501, %502 : vector<32x128xf32>
    %504 = arith.truncf %503 : vector<32x128xf32> to vector<32x128xbf16>
    %c0_150 = arith.constant 0 : index
    %c0_151 = arith.constant 0 : index
    %c0_152 = arith.constant 0 : index
    %505 = vector.load %arg11[%c0_150, %c0_151, %c0_152] : memref<1x128x128xbf16, #tpu.memory_space<vmem>>, vector<1x128x128xbf16>
    %506 = vector.shape_cast %505 : vector<1x128x128xbf16> to vector<128x128xbf16>
    %cst_153 = arith.constant dense<0.000000e+00> : vector<32x128xf32>
    %507 = tpu.matmul %504, %506, %cst_153 {dimension_numbers = #tpu.dot_dimension_numbers<[1], [0], [0], [1], [0, 0, 1, 1], [], []>} : vector<32x128xbf16>, vector<128x128xbf16>, vector<32x128xf32> -> vector<32x128xf32>
    %c0_154 = arith.constant 0 : index
    %c0_155 = arith.constant 0 : index
    %c0_156 = arith.constant 0 : index
    %508 = vector.load %arg12[%c0_154, %c0_155, %c0_156] : memref<1x1x128xf32, #tpu.memory_space<vmem>>, vector<1x1x128xf32>
    %509 = vector.shape_cast %508 : vector<1x1x128xf32> to vector<1x128xf32>
    %510 = vector.broadcast %509 : vector<1x128xf32> to vector<32x128xf32>
    %511 = arith.addf %507, %510 : vector<32x128xf32>
    %512 = arith.addf %511, %493 : vector<32x128xf32>
    %513 = vector.broadcast %9 : vector<1x128xf32> to vector<32x128xf32>
    %514 = arith.mulf %512, %513 : vector<32x128xf32>
    %cst_157 = arith.constant dense<0.000000e+00> : vector<32xf32>
    %515 = vector.multi_reduction <add>, %514, %cst_157 [1] : vector<32x128xf32> to vector<32xf32>
    %516 = vector.shape_cast %515 : vector<32xf32> to vector<32x1xf32>
    %cst_158 = arith.constant 3.125000e-02 : f32
    %517 = vector.broadcast %cst_158 : f32 to vector<32x1xf32>
    %518 = arith.mulf %516, %517 : vector<32x1xf32>
    %519 = vector.broadcast %518 : vector<32x1xf32> to vector<32x128xf32>
    %520 = arith.subf %514, %519 : vector<32x128xf32>
    %521 = vector.broadcast %9 : vector<1x128xf32> to vector<32x128xf32>
    %522 = arith.mulf %520, %521 : vector<32x128xf32>
    %523 = arith.mulf %522, %522 : vector<32x128xf32>
    %cst_159 = arith.constant dense<0.000000e+00> : vector<32xf32>
    %524 = vector.multi_reduction <add>, %523, %cst_159 [1] : vector<32x128xf32> to vector<32xf32>
    %525 = vector.shape_cast %524 : vector<32xf32> to vector<32x1xf32>
    %cst_160 = arith.constant 3.125000e-02 : f32
    %526 = vector.broadcast %cst_160 : f32 to vector<32x1xf32>
    %527 = arith.mulf %525, %526 : vector<32x1xf32>
    %cst_161 = arith.constant 9.99999974E-6 : f32
    %528 = vector.broadcast %cst_161 : f32 to vector<32x1xf32>
    %529 = arith.addf %527, %528 : vector<32x1xf32>
    %530 = math.rsqrt %529 : vector<32x1xf32>
    %531 = vector.broadcast %530 : vector<32x1xf32> to vector<32x128xf32>
    %532 = arith.mulf %522, %531 : vector<32x128xf32>
    %533 = vector.extract_strided_slice %41 {offsets = [2, 0], sizes = [1, 128], strides = [1, 1]} : vector<3x128xf32> to vector<1x128xf32>
    %534 = vector.broadcast %533 : vector<1x128xf32> to vector<32x128xf32>
    %535 = arith.mulf %532, %534 : vector<32x128xf32>
    %536 = vector.extract_strided_slice %43 {offsets = [2, 0], sizes = [1, 128], strides = [1, 1]} : vector<3x128xf32> to vector<1x128xf32>
    %537 = vector.broadcast %536 : vector<1x128xf32> to vector<32x128xf32>
    %538 = arith.addf %535, %537 : vector<32x128xf32>
    %c0_162 = arith.constant 0 : index
    %c0_163 = arith.constant 0 : index
    %539 = vector.load %arg13[%c0_162, %c0_163] : memref<32x128xf32, #tpu.memory_space<vmem>>, vector<32x128xf32>
    tpu.vector_store %arg13[%c0_162, %c0_163], %538 {strides = array<i32>} : memref<32x128xf32, #tpu.memory_space<vmem>>, vector<32x128xf32>,
    return
  }
  func.func @transform_0(%arg0: i32) -> (i32, i32) {
    %c0_i32 = arith.constant 0 : i32
    %c0_i32_0 = arith.constant 0 : i32
    %c0_i32_1 = arith.constant 0 : i32
    return %c0_i32, %c0_i32_0 : i32, i32
  }
  func.func @transform_1(%arg0: i32) -> (i32, i32) {
    %c0_i32 = arith.constant 0 : i32
    %c0_i32_0 = arith.constant 0 : i32
    %c0_i32_1 = arith.constant 0 : i32
    return %c0_i32, %c0_i32_0 : i32, i32
  }
  func.func @transform_2(%arg0: i32) -> (i32, i32, i32) {
    %c0_i32 = arith.constant 0 : i32
    %c0_i32_0 = arith.constant 0 : i32
    %c0_i32_1 = arith.constant 0 : i32
    %c0_i32_2 = arith.constant 0 : i32
    return %c0_i32, %c0_i32_0, %c0_i32_1 : i32, i32, i32
  }
  func.func @transform_3(%arg0: i32) -> (i32, i32, i32) {
    %c0_i32 = arith.constant 0 : i32
    %c0_i32_0 = arith.constant 0 : i32
    %c0_i32_1 = arith.constant 0 : i32
    %c0_i32_2 = arith.constant 0 : i32
    return %c0_i32, %c0_i32_0, %c0_i32_1 : i32, i32, i32
  }
  func.func @transform_4(%arg0: i32) -> (i32, i32, i32, i32) {
    %c0_i32 = arith.constant 0 : i32
    %c0_i32_0 = arith.constant 0 : i32
    %c0_i32_1 = arith.constant 0 : i32
    %c0_i32_2 = arith.constant 0 : i32
    return %arg0, %c0_i32, %c0_i32_0, %c0_i32_1 : i32, i32, i32, i32
  }
  func.func @transform_5(%arg0: i32) -> (i32, i32, i32) {
    %c0_i32 = arith.constant 0 : i32
    %c0_i32_0 = arith.constant 0 : i32
    %c0_i32_1 = arith.constant 0 : i32
    return %arg0, %c0_i32, %c0_i32_0 : i32, i32, i32
  }
  func.func @transform_6(%arg0: i32) -> (i32, i32, i32) {
    %c0_i32 = arith.constant 0 : i32
    %c0_i32_0 = arith.constant 0 : i32
    %c0_i32_1 = arith.constant 0 : i32
    return %arg0, %c0_i32, %c0_i32_0 : i32, i32, i32
  }
  func.func @transform_7(%arg0: i32) -> (i32, i32, i32) {
    %c0_i32 = arith.constant 0 : i32
    %c0_i32_0 = arith.constant 0 : i32
    %c0_i32_1 = arith.constant 0 : i32
    return %arg0, %c0_i32, %c0_i32_0 : i32, i32, i32
  }
  func.func @transform_8(%arg0: i32) -> (i32, i32, i32) {
    %c0_i32 = arith.constant 0 : i32
    %c0_i32_0 = arith.constant 0 : i32
    %c0_i32_1 = arith.constant 0 : i32
    return %arg0, %c0_i32, %c0_i32_0 : i32, i32, i32
  }
  func.func @transform_9(%arg0: i32) -> (i32, i32, i32) {
    %c0_i32 = arith.constant 0 : i32
    %c0_i32_0 = arith.constant 0 : i32
    %c0_i32_1 = arith.constant 0 : i32
    return %arg0, %c0_i32, %c0_i32_0 : i32, i32, i32
  }
  func.func @transform_10(%arg0: i32) -> (i32, i32, i32) {
    %c0_i32 = arith.constant 0 : i32
    %c0_i32_0 = arith.constant 0 : i32
    %c0_i32_1 = arith.constant 0 : i32
    return %arg0, %c0_i32, %c0_i32_0 : i32, i32, i32
  }
  func.func @transform_11(%arg0: i32) -> (i32, i32, i32) {
    %c0_i32 = arith.constant 0 : i32
    %c0_i32_0 = arith.constant 0 : i32
    %c0_i32_1 = arith.constant 0 : i32
    return %arg0, %c0_i32, %c0_i32_0 : i32, i32, i32
  }
  func.func @transform_12(%arg0: i32) -> (i32, i32) {
    %c0_i32 = arith.constant 0 : i32
    %c0_i32_0 = arith.constant 0 : i32
    %c0_i32_1 = arith.constant 0 : i32
    return %c0_i32, %c0_i32_0 : i32, i32
  }
}

</mosaic_0001>

<bundles_post_ra>
// kernel: transformer_decoder.1
= control target key start
LH: loop header
LB: loop body
LE: loop exit
PB: predicated region body
PF: predicated region fallthrough
CT: control target
= control target key end

     0   :  { %s5008_s0 = inlined_call_operand.vmem [shape: f32[32,128], index: 0, kind: input, shape index: {}]   ;;  %s5009_s1 = inlined_call_operand.vmem [shape: bf16[32,128], index: 1, kind: input, shape index: {}]   ;;  %s5010_s2 = inlined_call_operand.vmem [shape: f32[2,16,16], index: 2, kind: input, shape index: {}]   ;;  %s5011_s3 = inlined_call_operand.vmem [shape: f32[2,16,16], index: 3, kind: input, shape index: {}]   ;;  %s5012_s4 = inlined_call_operand.hbm [shape: bf16[2,8,128,128], index: 4, kind: input, shape index: {}]   ;;  %s5013_s5 = inlined_call_operand.vmem [shape: f32[2,8,128], index: 5, kind: input, shape index: {}]   ;;  %s5014_s6 = inlined_call_operand.vmem [shape: f32[2,3,128], index: 6, kind: input, shape index: {}]   ;;  %s5015_s7 = inlined_call_operand.vmem [shape: f32[2,3,128], index: 7, kind: input, shape index: {}]   ;;  %s5016_s8 = inlined_call_operand.vmem [shape: bf16[2,128,128], index: 8, kind: input, shape index: {}]   ;;  %s5017_s9 = inlined_call_operand.vmem [shape: f32[2,1,128], index: 9, kind: input, shape index: {}]   ;;  %s5018_s10 = inlined_call_operand.vmem [shape: bf16[2,128,128], index: 10, kind: input, shape index: {}]   ;;  %s5019_s11 = inlined_call_operand.vmem [shape: f32[2,1,128], index: 11, kind: input, shape index: {}]   ;;  %s5020_s12 = inlined_call_operand.vmem [shape: f32[32,128], index: 12, kind: output, shape index: {}]  }
   0x1   :  { %5025 = sst [smem:[#allocation9_spill]] %s5012_s4 }
   0x2   :  { %5026 = sst [smem:[#allocation10_spill]] %s5013_s5 }
   0x3   :  { %5027 = sst [smem:[#allocation11_spill]] %s5014_s6 }
   0x4   :  { %17 = vsyncpa [#allocation3], 0 }
   0x5   :  { %19 = vsyncpa [#allocation3 + $0x1], 0  ;;  %s4051_s21 = smov 0   ;;  %s4053_s22 = smov 0  }
   0x6   :  { %s4055_s23 = smov 0   ;;  %s4057_s24 = smov 0  }
   0x7 LB: > { %5028 = sst [smem:[#allocation5_spill]] %s3973_s22  ;;  %s4070_s25 = sadd.s32 4294967295, %s3981_s24   ;;  %s3981_s24 = sphi %s4057_s24, %s5038_s24   ;;  %s3977_s23 = sphi %s4055_s23, %s5041_s23   ;;  %s3973_s22 = sphi %s4053_s22, %s5040_s22   ;;  %s3969_s21 = sphi %s4051_s21, %s5039_s21  }
   0x8   : > { %5029 = sst [smem:[#allocation6_spill]] %s3977_s23  ;;  %s4073_s26 = sadd.s32 1, %s3981_s24  }
   0x9   : > { %5030 = sst [smem:[#allocation7_spill]] %s4073_s26  ;;  %s113_s27 = ssub.s32 %s3981_s24, %s4073_s26 }
   0xa   : > { %s116_s28 = sadd.s32 1, %s3977_s23  ;;  %p114_p0 = scmp.eq.s32.totalorder %s113_s27, 0 }
   0xb   : > { %p123_p1 = scmp.ne.s32.totalorder %s3977_s23, %s3973_s22  ;;  %p124_p2 = scmp.eq.s32.totalorder %s3981_s24, 0 }
   0xc   : > { %p129_p3 = scmp.ne.s32.totalorder %s3973_s22, %s3969_s21  ;;  %p130_p5 = scmp.eq.s32.totalorder %s4070_s25, 0 }
   0xd   : > { %s4083_s29 = scalar_select %p114_p0, %s3977_s23, %s116_s28  }
   0xe   : > { %p4085_p4 = por %p124_p2, %p123_p1  ;;  %p3721_p6 = scmp.lt.s32.totalorder %s3981_s24, 2 }
   0xf   : > { %5031 = sst [smem:[#allocation8_spill]] %s4083_s29  ;;  %p4091_p7 = por %p130_p5, %p129_p3 }
  0x10   : > { %s368_s14 = sand.u32 1, %s3977_s23   ;;  %s3630_s16 = sshll.u32 %s3981_s24, 9 }
  0x11   : > { %s3150_s15 = sshll.u32 %s368_s14, 9  ;;  %s5034_s4 = sld [smem:[#allocation9_spill]] }
  0x12   : > { %s372_s20 = scalar_lea.vmem [#allocation2], %s3150_s15  ;;  %p4102_p8 = pnand %p3721_p6, %p4085_p4 }
  0x13   : > { %s380_s21 = sshll.u32 %s372_s20, 4  ;;  %p3153_p9 = scmp.ge.s32.totalorder %s3981_s24, 1  ;;  %s381_s21 = int_to_ptr.vmem [resolvable:$true] %s380_s21 }
  0x14   : > { %s369_s29 = scalar_lea.sflag [#allocation3], %s368_s14  ;;  %p3921_p11 = pneg %p4102_p8 }
  0x17   : > { %s377_s19 = scalar_lea.hbm %s5034_s4, %s3630_s16  ;;  %s3924_s17 = scalar_lea.hbm %s5034_s4, 1024 }
  0x18   : > { %s378_s27 = sshll.u32 %s377_s19, 4  ;;  %s379_s27 = int_to_ptr.hbm [resolvable:$true] %s378_s27 }
  0x19   : > { %s3917_s23 = sshra.s32 %s379_s27, 4  ;;  %s3918_s23 = int_to_ptr.hbm [resolvable:$true] %s3917_s23 }
  0x1a   : > { %s3919_s26 = scalar_lea.hbm %s3918_s23, 512  ;;  %p3925_p0 = scmp.lt.s32.totalorder %s3918_s23, %s5034_s4 }
  0x1b   : > { %p3920_p10 = scmp.ne.s32.totalorder %s3918_s23, %s3919_s26  ;;  %p3926_p1 = scmp.lt.s32.totalorder %s3924_s17, %s3919_s26 }
  0x1d   : > { %p3922_p12 = pnand %p3921_p11, %p3920_p10  ;;  %p3927_p2 = por %p3926_p1, %p3925_p0 }
  0x1f   : > { %p3923_p13 = pneg %p3922_p12 }
  0x21   : > { %p3928_p3 = pnand %p3927_p2, %p3923_p13 }
  0x23   : > { %3931 = shalt.err (!%p3928_p3)
}
  0x24   : > { %s3983_s14 = smov 64   ;;  %s3984_s19 = smov 4  }
  0x25   : > { %3720 = dma.hbm_to_vmem [thread:$0]  (!%p4102_p8), %s379_s27, 8192, %s381_s21, %s369_s29, %s3983_s14, %s3983_s14, %s3984_s19  }
  0x26   : > { %p437_p4 = scmp.lt.s32.totalorder %s3981_s24, 3 }
  0x28   : > { %p438_p5 = pnand %p3153_p9, %p437_p4 }
  0x29   : > { %s443_s20 = sand.u32 (!%p438_p5), 1, %s3973_s22  }
  0x2a   : > { %441 = sbr.rel (%p438_p5) target bundleno = 4155 (0x103b), region = 68  ;;  %s3154_s15 = sshll.u32 (!%p438_p5), %s443_s20, 9 }
  0x2b   : > { %s444_s23 = scalar_lea.sflag (!%p438_p5), [#allocation3], %s443_s20  ;;  %s4121_s26 = scalar_lea.vmem (!%p438_p5), [#allocation2], %s3154_s15 }
  0x2f   : > { %3964 = dma.done.wait (%p4091_p7), %s444_s23, 8192  }
  0x30   : > { %3966 = vsyncadd (%p4091_p7), %s444_s23, 4294959104  ;;  %p512_p6 = scmp.lt.s32.totalorder %s4070_s25, 1  ;;  %s5036_s5 = sld [smem:[#allocation10_spill]] }
  0x31   : > { %s5037_s6 = sld [smem:[#allocation11_spill]]  ;;  %p3162_p7 = scmp.ne.s32.totalorder %s4070_s25, 0 }
  0x32   : > { %s4129_s29 = scalar_select %p512_p6, %s4070_s25, 1 }
  0x34   : > { %s3155_s24 = sshll.u32 %s4129_s29, 3  ;;  %s3156_s21 = sshll.u32 %s4129_s29, 2 }
  0x35   : > { %s4146_s19 = scalar_lea.vmem %s5015_s7, %s3156_s21  ;;  %s3631_s20 = sshll.u32 %s4129_s29, 6 }
  0x36   : > { %s4136_s16 = scalar_lea.vmem %s5036_s5, %s3155_s24  ;;  %s4152_s4 = scalar_lea.vmem %s5016_s8, %s3631_s20 }
  0x37   : > { %s4141_s30 = scalar_lea.vmem %s5037_s6, %s3156_s21  ;;  %s531_s24 = scalar_lea.vmem %s5017_s9, %s4129_s29 }
  0x38   : > { %s4161_s17 = scalar_lea.vmem %s5018_s10, %s3631_s20  ;;  %s539_s21 = scalar_lea.vmem %s5019_s11, %s4129_s29 }
  0x39   : > { %544 = sbr.rel (%p3162_p7) target bundleno = 67 (0x43), region = 76 }
  0x3e   : > { %v545_v0 = vld [vmem:[%s5008_s0] sm:$0xff]  ;;  %v546_v1 = vld [vmem:[%s5008_s0 + $0x8] sm:$0xff]  ;;  %v547_v2 = vld [vmem:[%s5008_s0 + $0x10] sm:$0xff] }
  0x3f   : > { %549 = vst [vmem:[%s5020_s12] sm:$0xff] %v545_v0  ;;  %v548_v3 = vld [vmem:[%s5008_s0 + $0x18] sm:$0xff] }
  0x40   : > { %550 = vst [vmem:[%s5020_s12 + $0x8] sm:$0xff] %v546_v1 }
  0x41   : > { %551 = vst [vmem:[%s5020_s12 + $0x10] sm:$0xff] %v547_v2 }
  0x42   : > { %552 = vst [vmem:[%s5020_s12 + $0x18] sm:$0xff] %v548_v3 }
  0x43 PF: > { %v3642_v4 = vld [vmem:[%s4121_s26 + $0x38] sm:$0xff]  ;;  %v3641_v6 = vld [vmem:[%s4121_s26 + $0x30] sm:$0xff]  ;;  %v3640_v8 = vld [vmem:[%s4121_s26 + $0x28] sm:$0xff]  ;;  %v561_v34 = vlaneseq  ;;  %v3985_v44 = vmov 0.0   ;;  %vm944_vm10 = vcmask 130048  }
  0x44   : > { %v3650_v5 = vld [vmem:[%s4121_s26 + $0x78] sm:$0xff]  ;;  %655 = vmatpush.bf16.msra.mxu0 %v3642_v4  ;;  %v3649_v7 = vld [vmem:[%s4121_s26 + $0x70] sm:$0xff]  ;;  %v3648_v9 = vld [vmem:[%s4121_s26 + $0x68] sm:$0xff] }
  0x45   : > { %740 = vmatpush.bf16.msra.mxu1 %v3650_v5  ;;  %v3658_v10 = vld [vmem:[%s4121_s26 + $0xb8] sm:$0xff]  ;;  %v3657_v11 = vld [vmem:[%s4121_s26 + $0xb0] sm:$0xff]  ;;  %v3639_v12 = vld [vmem:[%s4121_s26 + $0x20] sm:$0xff]  ;;  %v4234_v35 = vand.u32 127, %v561_v34 }
  0x46   : > { %825 = vmatpush.bf16.msra.mxu2 %v3658_v10  ;;  %v3647_v13 = vld [vmem:[%s4121_s26 + $0x60] sm:$0xff]  ;;  %v3656_v14 = vld [vmem:[%s4121_s26 + $0xa8] sm:$0xff]  ;;  %v3638_v15 = vld [vmem:[%s4121_s26 + $0x18] sm:$0xff] }
  0x47   : > { %v3646_v16 = vld [vmem:[%s4121_s26 + $0x58] sm:$0xff]  ;;  %v3655_v17 = vld [vmem:[%s4121_s26 + $0xa0] sm:$0xff]  ;;  %v3637_v18 = vld [vmem:[%s4121_s26 + $0x10] sm:$0xff]  ;;  %vm576_vm0 = vcmp.ge.s32.totalorder %v4234_v35, 16  ;;  %vm577_vm1 = vcmp.lt.s32.totalorder %v4234_v35, 24  ;;  %vm563_vm3 = vcmp.lt.s32.totalorder %v4234_v35, 32 }
  0x48   : > { %656 = vmatpush.bf16.msra.mxu0 %v3641_v6  ;;  %v3645_v19 = vld [vmem:[%s4121_s26 + $0x50] sm:$0xff]  ;;  %v3654_v20 = vld [vmem:[%s4121_s26 + $0x98] sm:$0xff]  ;;  %v3636_v21 = vld [vmem:[%s4121_s26 + $0x8] sm:$0xff]  ;;  %vm581_vm4 = vcmp.ge.s32.totalorder %v4234_v35, 24  ;;  %vm567_vm5 = vcmp.lt.s32.totalorder %v4234_v35, 8  ;;  %vm571_vm7 = vcmp.ge.s32.totalorder %v4234_v35, 8 }
  0x49   : > { %741 = vmatpush.bf16.msra.mxu1 %v3649_v7  ;;  %v3644_v22 = vld [vmem:[%s4121_s26 + $0x48] sm:$0xff]  ;;  %v3653_v23 = vld [vmem:[%s4121_s26 + $0x90] sm:$0xff]  ;;  %v3635_v24 = vld [vmem:[%s4121_s26] sm:$0xff]  ;;  %v4261_v52 = vsel %vm567_vm5, 1.0, %v3985_v44  ;;  %vm572_vm8 = vcmp.lt.s32.totalorder %v4234_v35, 16 }
  0x4a   : > { %826 = vmatpush.bf16.msra.mxu2 %v3657_v11  ;;  %v3643_v25 = vld [vmem:[%s4121_s26 + $0x40] sm:$0xff]  ;;  %v4222_v27 = vld [vmem:[%s5020_s12 + $0x8] sm:$0xff]  ;;  %v555_v31 = vld [vmem:[%s5020_s12 + $0x10] sm:$0xff] }
  0x4b   : > { %v4217_v26 = vld [vmem:[%s5020_s12] sm:$0xff]  ;;  %v3652_v28 = vld [vmem:[%s4121_s26 + $0x88] sm:$0xff]  ;;  %v556_v32 = vld [vmem:[%s5020_s12 + $0x18] sm:$0xff] }
  0x4c   : > { %657 = vmatpush.bf16.msra.mxu0 %v3640_v8  ;;  %v588_v29 = vpack.c.bf16 %v4222_v27, %v4217_v26  ;;  %v3651_v30 = vld [vmem:[%s4121_s26 + $0x80] sm:$0xff]  ;;  %v589_v33 = vpack.c.bf16 %v556_v32, %v555_v31  ;;  %vm578_vm2 = vmand %vm576_vm0, %vm577_vm1 }
  0x4d   : > { %742 = vmatpush.bf16.msra.mxu1 %v3648_v9  ;;  %v4237_v36 = vld [vmem:[%s4136_s16] sm:$0xff]  ;;  %v4252_v45 = vsel %vm578_vm2, 1.0, %v3985_v44  ;;  %vm582_vm6 = vmand %vm581_vm4, %vm563_vm3 }
  0x4e   : > { %827 = vmatpush.bf16.msra.mxu2 %v3656_v14  ;;  %v4240_v37 = vperm.slane %v4237_v36, 0  ;;  %v4245_v39 = vperm.slane %v4237_v36, 1  ;;  %v4264_v53 = vsel %vm582_vm6, 1.0, %v3985_v44  ;;  %vm573_vm9 = vmand %vm571_vm7, %vm572_vm8 }
  0x50   : > { %658 = vmatpush.bf16.msra.mxu0 %v3639_v12 }
  0x51   : > { %743 = vmatpush.bf16.msra.mxu1 %v3647_v13 }
  0x52   : > { %828 = vmatpush.bf16.msra.mxu2 %v3655_v17 }
  0x54   : > { %659 = vmatpush.bf16.msra.mxu0 %v3638_v15  ;;  %v4285_v15 = vsel %vm573_vm9, 1.0, %v3985_v44 }
  0x55   : > { %744 = vmatpush.bf16.msra.mxu1 %v3646_v16 }
  0x56   : > { %829 = vmatpush.bf16.msra.mxu2 %v3654_v20 }
  0x58   : > { %660 = vmatpush.bf16.msra.mxu0 %v3637_v18 }
  0x59   : > { %745 = vmatpush.bf16.msra.mxu1 %v3645_v19 }
  0x5a   : > { %830 = vmatpush.bf16.msra.mxu2 %v3653_v23 }
  0x5c   : > { %661 = vmatpush.bf16.msra.mxu0 %v3636_v21 }
  0x5d   : > { %746 = vmatpush.bf16.msra.mxu1 %v3644_v22 }
  0x5e   : > { %831 = vmatpush.bf16.msra.mxu2 %v3652_v28  ;;  %v4293_v28 = vld [vmem:[%s5010_s2] sm:$0xff] }
  0x60   : > { %662 = vmatpush.bf16.msra.mxu0 %v3635_v24 }
  0x61   : > { %747 = vmatpush.bf16.msra.mxu1 %v3643_v25 }
  0x62   : > { %832 = vmatpush.bf16.msra.mxu2 %v3651_v30 }
  0x63   : > { %663 = vmatmul.bf16.vlgmr.msra.gmra.mxu0 %v588_v29 }
  0x64   : > { %748 = vmatmul.bf16.vlgmr.msra.gmra.mxu1 %v588_v29 }
  0x65   : > { %833 = vmatmul.bf16.vlgmr.msra.gmra.mxu2 %v588_v29 }
  0x73   : > { %668 = vmatmul.bf16.gmra.mxu0 %v589_v33 }
  0x74   : > { %753 = vmatmul.bf16.gmra.mxu1 %v589_v33 }
  0x75   : > { %838 = vmatmul.bf16.gmra.mxu2 %v589_v33 }
  0xe0   : > { %v664_v38 = vpop.f32.mrf.mxu0 }
  0xe1   : > { %v749_v40 = vpop.f32.mrf.mxu1  ;;  %v665_v41 = vadd.f32 %v664_v38, %v4240_v37 }
  0xe2   : > { %v750_v43 = vadd.f32 %v749_v40, %v4245_v39 }
  0xe3   : > { %v848_v42 = vmul.f32 0.35355338, %v665_v41 }
  0xe4   : > { %v844_v47 = vpack.c.bf16 %v750_v43, %v750_v43 }
  0xe5   : > { %v868_v46 = vmul.f32 %v4252_v45, %v848_v42  ;;  %v852_v58 = vmul.f32 %v4261_v52, %v848_v42  ;;  %v876_v59 = vmul.f32 %v4264_v53, %v848_v42  ;;  %v860_v17 = vmul.f32 %v4285_v15, %v848_v42 }
  0xe6   : > { %v926_v57 = vunpack.c.l.b16 %v844_v47 }
  0xe7   : > { %v872_v56 = vpack.c.bf16 %v868_v46, %v868_v46  ;;  %v856_v4 = vpack.c.bf16 %v852_v58, %v852_v58  ;;  %v880_v5 = vpack.c.bf16 %v876_v59, %v876_v59  ;;  %v864_v19 = vpack.c.bf16 %v860_v17, %v860_v17  ;;  %v4307_v46 = vld [vmem:[%s5010_s2 + $0x8] sm:$0xff] }
  0xe8   : > { %v666_v48 = vpop.f32.mrf.mxu0 }
  0xe9   : > { %v751_v49 = vpop.f32.mrf.mxu1  ;;  %v667_v50 = vadd.f32 %v666_v48, %v4240_v37  ;;  %v4275_v6 = vunpack.c.l.b16 %v872_v56  ;;  %v920_v11 = vunpack.c.l.b16 %v856_v4  ;;  %v1127_v12 = vunpack.c.l.b16 %v880_v5  ;;  %v834_v4 = vpop.f32.mrf.mxu2 }
  0xea   : > { %v752_v51 = vadd.f32 %v751_v49, %v4245_v39  ;;  %v970_v21 = vunpack.c.l.b16 %v864_v19 }
  0xeb   : > { %v849_v54 = vmul.f32 0.35355338, %v667_v50 }
  0xec   : > { %v845_v55 = vpack.c.bf16 %v752_v51, %v752_v51 }
  0xed   : > { %v869_v60 = vmul.f32 %v4252_v45, %v849_v54  ;;  %v853_v62 = vmul.f32 %v4261_v52, %v849_v54  ;;  %v877_v63 = vmul.f32 %v4264_v53, %v849_v54  ;;  %v861_v16 = vmul.f32 %v4285_v15, %v849_v54 }
  0xee   : > { %v927_v61 = vunpack.c.l.b16 %v845_v55 }
  0xef   : > { %v873_v0 = vpack.c.bf16 %v869_v60, %v869_v60  ;;  %v857_v2 = vpack.c.bf16 %v853_v62, %v853_v62  ;;  %v881_v3 = vpack.c.bf16 %v877_v63, %v877_v63  ;;  %v865_v18 = vpack.c.bf16 %v861_v16, %v861_v16 }
  0xf0   : > { %v4271_v1 = vpack.c.b16 %v927_v61, %v926_v57  ;;  %v669_v24 = vpop.f32.mrf.mxu0 }
  0xf1   : > { %v4277_v7 = vunpack.c.l.b16 %v873_v0  ;;  %v921_v8 = vunpack.c.l.b16 %v857_v2  ;;  %v1128_v9 = vunpack.c.l.b16 %v881_v3  ;;  %v971_v20 = vunpack.c.l.b16 %v865_v18  ;;  %v754_v23 = vpop.f32.mrf.mxu1  ;;  %v836_v5 = vpop.f32.mrf.mxu2 }
  0xf2   : > { %937 = vmatpush.bf16.xpose.msra.mxu3 %v4271_v1  ;;  %1138 = vmatpush.bf16.xpose.msrb.mxu2 %v4271_v1  ;;  %v670_v25 = vadd.f32 %v669_v24, %v4240_v37  ;;  %v755_v29 = vadd.f32 %v754_v23, %v4245_v39 }
  0xf3   : > { %v1061_v10 = vpack.c.b16 %v4277_v7, %v4275_v6  ;;  %v922_v13 = vpack.c.b16 %v921_v8, %v920_v11  ;;  %v1129_v14 = vpack.c.b16 %v1128_v9, %v1127_v12  ;;  %v972_v22 = vpack.c.b16 %v971_v20, %v970_v21 }
  0xf4   : > { %v4296_v31 = vmul.f32 0.35355338, %v670_v25  ;;  %v846_v34 = vpack.c.bf16 %v755_v29, %v755_v29 }
  0xf6   : > { %v862_v41 = vmul.f32 %v4285_v15, %v4296_v31  ;;  %v1204_v47 = vunpack.c.l.b16 %v846_v34 }
  0xf8   : > { %v671_v40 = vpop.f32.mrf.mxu0  ;;  %v866_v51 = vpack.c.bf16 %v862_v41, %v862_v41 }
  0xf9   : > { %938 = vmatmul.bf16.vlgmr.msra.gmra.mxu3 %v922_v13  ;;  %1139 = vmatmul.bf16.vlgmr.msrb.gmra.mxu2 %v1129_v14  ;;  %v756_v38 = vpop.f32.mrf.mxu1  ;;  %v672_v43 = vadd.f32 %v671_v40, %v4240_v37  ;;  %v4324_v9 = vpop.f32.mrf.mxu2 }
  0xfa   : > { %981 = vmatpush.bf16.xpose.msrb.mxu3 %v4271_v1  ;;  %v757_v42 = vadd.f32 %v756_v38, %v4245_v39  ;;  %v1247_v58 = vunpack.c.l.b16 %v866_v51 }
  0xfb   : > { %v4309_v49 = vmul.f32 0.35355338, %v672_v43 }
  0xfc   : > { %v847_v48 = vpack.c.bf16 %v757_v42, %v757_v42  ;;  %v4348_v42 = vld [vmem:[%s5010_s2 + $0x18] sm:$0xff] }
  0xfd   : > { %v863_v56 = vmul.f32 %v4285_v15, %v4309_v49 }
  0xfe   : > { %v1205_v55 = vunpack.c.l.b16 %v847_v48 }
  0xff   : > { %v867_v57 = vpack.c.bf16 %v863_v56, %v863_v56 }
 0x100   : > { %v4315_v37 = vpack.c.b16 %v1205_v55, %v1204_v47 }
 0x101   : > { %v1248_v59 = vunpack.c.l.b16 %v867_v57  ;;  %v841_v17 = vpop.f32.mrf.mxu2 }
 0x102   : > { %1258 = vmatpush.bf16.xpose.msrb.mxu1 %v4315_v37  ;;  %1215 = vmatpush.bf16.xpose.msrb.mxu0 %v4315_v37 }
 0x103   : > { %v1249_v61 = vpack.c.b16 %v1248_v59, %v1247_v58 }
 0x109   : > { %982 = vmatmul.bf16.vlgmr.msrb.gmra.mxu3 %v972_v22  ;;  %1259 = vmatmul.bf16.vlgmr.msrb.gmra.mxu1 %v1249_v61 }
 0x10a   : > { %1347 = vmatpush.bf16.xpose.msra.mxu0 %v4315_v37 }
 0x17c   : > { %v939_v30 = vpop.f32.mrf.mxu3  ;;  %v1140_v25 = vpop.f32.mrf.mxu2 }
 0x17d   : > { %v940_v32 = vadd.f32 %v939_v30, %v4293_v28  ;;  %v4335_v29 = vadd.f32 %v1140_v25, %v4293_v28 }
 0x17f   : > { %v945_v33 = vsel %vm944_vm10, %v940_v32, -inf  ;;  %v1145_v41 = vsel %vm944_vm10, %v4335_v29, -inf }
 0x180   : > { %946 = vmax.xlane.f32.xlu1 %v945_v33 }
 0x184   : > { %v941_v50 = vpop.f32.mrf.mxu3 }
 0x185   : > { %v942_v54 = vadd.f32 %v941_v50, %v4307_v46 }
 0x186   : > { %v4337_v33 = vpop.f32.mrf.mxu1 }
 0x187   : > { %v948_v39 = vsel %vm944_vm10, %v942_v54, -inf }
 0x188   : > { %949 = vmax.xlane.f32.xlu1 %v948_v39 }
 0x18c   : > { %v983_v60 = vpop.f32.mrf.mxu3 }
 0x18d   : > { %v984_v62 = vadd.f32 %v983_v60, %v4293_v28 }
 0x18e   : > { %v1262_v43 = vpop.f32.mrf.mxu1 }
 0x18f   : > { %v988_v63 = vsel %vm944_vm10, %v984_v62, -inf  ;;  %v4353_v48 = vadd.f32 %v4348_v42, %v1262_v43 }
 0x190   : > { %989 = vmax.xlane.f32.xlu0 %v988_v63 }
 0x191   : > { %v1268_v51 = vsel %vm944_vm10, %v4353_v48, -inf }
 0x194   : > { %v985_v0 = vpop.f32.mrf.mxu3 }
 0x195   : > { %v986_v2 = vadd.f32 %v985_v0, %v4307_v46 }
 0x197   : > { %v991_v3 = vsel %vm944_vm10, %v986_v2, -inf }
 0x198   : > { %992 = vmax.xlane.f32.xlu0 %v991_v3 }
 0x1f3   : > { %v947_v8 = vpop.xlane.xlu1 %946 }
 0x1f4   : > { %v951_v11 = vsub.f32 %v940_v32, %v947_v8 }
 0x1f6   : > { %v953_v12 = vmul.f32 1.442695, %v951_v11 }
 0x1f8   : > { %3759 = vpow2.f32 %v953_v12 }
 0x1fb   : > { %v950_v13 = vpop.xlane.xlu1 %949 }
 0x1fc   : > { %v952_v14 = vsub.f32 %v942_v54, %v950_v13  ;;  %v776_v54 = vperm.slane %v4237_v36, 2 }
 0x1fe   : > { %v4326_v16 = vpop.eup %3759  ;;  %v955_v18 = vmul.f32 1.442695, %v952_v14  ;;  %v4360_v55 = vadd.f32 %v834_v4, %v776_v54  ;;  %v4366_v57 = vadd.f32 %v836_v5, %v776_v54 }
 0x1ff   : > { %v957_v19 = vsel %vm944_vm10, %v4326_v16, 0.0 }
 0x200   : > { %3761 = vpow2.f32 %v955_v18  ;;  %958 = vadd.xlane.f32.xlu0 %v957_v19  ;;  %v884_v56 = vmul.f32 %v4261_v52, %v4360_v55  ;;  %v892_v39 = vmul.f32 %v4285_v15, %v4360_v55  ;;  %v885_v60 = vmul.f32 %v4261_v52, %v4366_v57 }
 0x201   : > { %v893_v61 = vmul.f32 %v4285_v15, %v4366_v57  ;;  %v909_v63 = vmul.f32 %v4264_v53, %v4366_v57 }
 0x202   : > { %v888_v58 = vpack.c.bf16 %v884_v56, %v884_v56  ;;  %v896_v59 = vpack.c.bf16 %v892_v39, %v892_v39  ;;  %v889_v3 = vpack.c.bf16 %v885_v60, %v885_v60 }
 0x203   : > { %v990_v20 = vpop.xlane.xlu0 %989  ;;  %v897_v0 = vpack.c.bf16 %v893_v61, %v893_v61  ;;  %v913_v12 = vpack.c.bf16 %v909_v63, %v909_v63 }
 0x204   : > { %v994_v21 = vsub.f32 %v984_v62, %v990_v20  ;;  %v908_v62 = vmul.f32 %v4264_v53, %v4360_v55  ;;  %v1036_v4 = vunpack.c.l.b16 %v888_v58  ;;  %v1037_v11 = vunpack.c.l.b16 %v889_v3 }
 0x205   : > { %v1014_v8 = vunpack.c.l.b16 %v897_v0  ;;  %v4378_v19 = vunpack.c.l.b16 %v913_v12  ;;  %v4381_v20 = vadd.f32 %v4324_v9, %v776_v54  ;;  %v854_v9 = vmul.f32 %v4261_v52, %v4296_v31 }
 0x206   : > { %v4330_v22 = vpop.eup %3761  ;;  %v996_v23 = vmul.f32 1.442695, %v994_v21  ;;  %v912_v5 = vpack.c.bf16 %v908_v62, %v908_v62  ;;  %v1038_v14 = vpack.c.b16 %v1037_v11, %v1036_v4  ;;  %v4383_v21 = vadd.f32 %v841_v17, %v776_v54 }
 0x207   : > { %v960_v24 = vsel %vm944_vm10, %v4330_v22, 0.0  ;;  %v855_v17 = vmul.f32 %v4261_v52, %v4309_v49  ;;  %v858_v43 = vpack.c.bf16 %v854_v9, %v854_v9  ;;  %v870_v58 = vmul.f32 %v4252_v45, %v4296_v31 }
 0x208   : > { %3763 = vpow2.f32 %v996_v23  ;;  %961 = vadd.xlane.f32.xlu1 %v960_v24  ;;  %v4376_v18 = vunpack.c.l.b16 %v912_v5  ;;  %v894_v24 = vmul.f32 %v4285_v15, %v4381_v20  ;;  %v895_v25 = vmul.f32 %v4285_v15, %v4383_v21 }
 0x209   : > { %v1198_v54 = vunpack.c.l.b16 %v858_v43  ;;  %v874_v62 = vpack.c.bf16 %v870_v58, %v870_v58  ;;  %v910_v6 = vmul.f32 %v4264_v53, %v4381_v20  ;;  %v911_v7 = vmul.f32 %v4264_v53, %v4383_v21 }
 0x20a   : > { %v1172_v23 = vpack.c.b16 %v4378_v19, %v4376_v18 }
 0x20b   : > { %v993_v30 = vpop.xlane.xlu0 %992  ;;  %v1336_v3 = vunpack.c.l.b16 %v874_v62  ;;  %v914_v58 = vpack.c.bf16 %v910_v6, %v910_v6 }
 0x20c   : > { %v995_v32 = vsub.f32 %v986_v2, %v993_v30  ;;  %v1013_v2 = vunpack.c.l.b16 %v896_v59  ;;  %v898_v30 = vpack.c.bf16 %v894_v24, %v894_v24  ;;  %v871_v59 = vmul.f32 %v4252_v45, %v4309_v49 }
 0x20e   : > { %v4339_v34 = vpop.eup %3763  ;;  %v998_v38 = vmul.f32 1.442695, %v995_v32  ;;  %v1015_v13 = vpack.c.b16 %v1014_v8, %v1013_v2  ;;  %v899_v32 = vpack.c.bf16 %v895_v25, %v895_v25  ;;  %v875_v63 = vpack.c.bf16 %v871_v59, %v871_v59 }
 0x20f   : > { %v1000_v40 = vsel %vm944_vm10, %v4339_v34, 0.0  ;;  %v915_v59 = vpack.c.bf16 %v911_v7, %v911_v7 }
 0x210   : > { %3765 = vpow2.f32 %v998_v38  ;;  %1001 = vadd.xlane.f32.xlu2 %v1000_v40  ;;  %1146 = vmax.xlane.f32.xlu1 %v1145_v41  ;;  %v1290_v38 = vunpack.c.l.b16 %v898_v30  ;;  %v1291_v40 = vunpack.c.l.b16 %v899_v32  ;;  %v1337_v4 = vunpack.c.l.b16 %v875_v63 }
 0x211   : > { %1027 = vmatpush.bf16.msra.mxu3 %v1015_v13 }
 0x212   : > { %v1292_v41 = vpack.c.b16 %v1291_v40, %v1290_v38  ;;  %v1338_v5 = vpack.c.b16 %v1337_v4, %v1336_v3  ;;  %v900_v38 = vmul.f32 %v4252_v45, %v4360_v55  ;;  %v901_v40 = vmul.f32 %v4252_v45, %v4366_v57 }
 0x213   : > { %v4445_v3 = vunpack.c.l.b16 %v915_v59 }
 0x214   : > { %1304 = vmatpush.bf16.msra.mxu2 %v1292_v41  ;;  %v904_v9 = vpack.c.bf16 %v900_v38, %v900_v38 }
 0x215   : > { %1050 = vmatpush.bf16.msrb.mxu3 %v1038_v14 }
 0x216   : > { %v4350_v47 = vpop.eup %3765 }
 0x217   : > { %v1003_v50 = vsel %vm944_vm10, %v4350_v47, 0.0 }
 0x218   : > { %1004 = vadd.xlane.f32.xlu2 %v1003_v50  ;;  %1269 = vmax.xlane.f32.xlu1 %v1268_v51  ;;  %v859_v50 = vpack.c.bf16 %v855_v17, %v855_v17  ;;  %v905_v17 = vpack.c.bf16 %v901_v40, %v901_v40 }
 0x219   : > { %1415 = vmatpush.bf16.xpose.msrb.mxu2 %v4315_v37 }
 0x21a   : > { %v1199_v56 = vunpack.c.l.b16 %v859_v50  ;;  %v1102_v50 = vunpack.c.l.b16 %v904_v9 }
 0x21c   : > { %v1200_v39 = vpack.c.b16 %v1199_v56, %v1198_v54  ;;  %v887_v56 = vmul.f32 %v4261_v52, %v4383_v21 }
 0x21e   : > { %1216 = vmatmul.bf16.vlgmr.msrb.gmra.mxu0 %v1200_v39  ;;  %v903_v39 = vmul.f32 %v4252_v45, %v4383_v21  ;;  %v891_v19 = vpack.c.bf16 %v887_v56, %v887_v56 }
 0x22e   : > { %1348 = vmatmul.bf16.vlgmr.msra.gmra.mxu0 %v1338_v5 }
 0x273   : > { %v959_v25 = vpop.xlane.xlu0 %958 }
 0x27b   : > { %v962_v51 = vpop.xlane.xlu1 %961 }
 0x283   : > { %v1002_v60 = vpop.xlane.xlu2 %1001  ;;  %v1147_v61 = vpop.xlane.xlu1 %1146 }
 0x284   : > { %v1151_v0 = vsub.f32 %v4335_v29, %v1147_v61 }
 0x286   : > { %v1153_v2 = vmul.f32 1.442695, %v1151_v0  ;;  %v4441_v0 = vunpack.c.l.b16 %v891_v19 }
 0x288   : > { %3767 = vpow2.f32 %v1153_v2  ;;  %v4443_v2 = vunpack.c.l.b16 %v914_v58 }
 0x289   : > { %3769 = vrcp.f32 %v1002_v60 }
 0x28a   : > { %v1449_v4 = vpack.c.b16 %v4445_v3, %v4443_v2  ;;  %v3663_v2 = vld [vmem:[%s4121_s26 + $0xe0] sm:$0xff]  ;;  %v3662_v3 = vld [vmem:[%s4121_s26 + $0xd8] sm:$0xff] }
 0x28b   : > { %v1005_v37 = vpop.xlane.xlu2 %1004  ;;  %v1270_v30 = vpop.xlane.xlu1 %1269 }
 0x28c   : > { %3771 = vrcp.f32 %v1005_v37  ;;  %v1272_v32 = vsub.f32 %v4353_v48, %v1270_v30 }
 0x28d   : > { %3773 = vrcp.f32 %v962_v51 }
 0x28e   : > { %v4401_v8 = vpop.eup %3767  ;;  %3775 = vrcp.f32 %v959_v25 }
 0x28f   : > { %v1157_v11 = vsel %vm944_vm10, %v4401_v8, 0.0  ;;  %v3770_v12 = vpop.eup %3769 }
 0x290   : > { %1158 = vadd.xlane.f32.xlu1 %v1157_v11  ;;  %v1008_v14 = vmul.f32 %v3770_v12, %v4339_v34  ;;  %v1275_v34 = vmul.f32 1.442695, %v1272_v32 }
 0x292   : > { %v3772_v13 = vpop.eup %3771  ;;  %3777 = vpow2.f32 %v1275_v34  ;;  %v4466_v34 = vld [vmem:[%s5010_s2 + $0x10] sm:$0xff] }
 0x293   : > { %v1009_v29 = vmul.f32 %v3772_v13, %v4350_v47  ;;  %v3774_v47 = vpop.eup %3773 }
 0x294   : > { %v3776_v41 = vpop.eup %3775  ;;  %v966_v43 = vmul.f32 %v3774_v47, %v4330_v22  ;;  %v902_v22 = vmul.f32 %v4252_v45, %v4381_v20 }
 0x295   : > { %v1010_v24 = vpack.c.bf16 %v1009_v29, %v1008_v14  ;;  %v965_v48 = vmul.f32 %v3776_v41, %v4326_v16  ;;  %v886_v16 = vmul.f32 %v4261_v52, %v4381_v20 }
 0x296   : > { %v906_v18 = vpack.c.bf16 %v902_v22, %v902_v22 }
 0x297   : > { %3296 = vmatmul.msk.bf16.vlgmr.msra.gmra.mxu3 %vm944_vm10, %v1010_v24  ;;  %v967_v54 = vpack.c.bf16 %v966_v43, %v965_v48  ;;  %v1142_v24 = vpop.f32.mrf.mxu2 }
 0x298   : > { %1070 = vmatpush.bf16.xpose.msra.mxu3 %v4271_v1  ;;  %v1103_v1 = vunpack.c.l.b16 %v905_v17  ;;  %v4415_v51 = vpop.eup %3777  ;;  %v1379_v61 = vunpack.c.l.b16 %v906_v18  ;;  %v1143_v25 = vadd.f32 %v1142_v24, %v4307_v46 }
 0x299   : > { %v1280_v55 = vsel %vm944_vm10, %v4415_v51, 0.0 }
 0x29a   : > { %1281 = vadd.xlane.f32.xlu1 %v1280_v55  ;;  %v1104_v57 = vpack.c.b16 %v1103_v1, %v1102_v50  ;;  %v1148_v40 = vsel %vm944_vm10, %v1143_v25, -inf }
 0x29b   : > { %v1217_v56 = vpop.f32.mrf.mxu0 }
 0x29c   : > { %v4475_v18 = vadd.f32 %v4466_v34, %v1217_v56 }
 0x29e   : > { %v1222_v59 = vsel %vm944_vm10, %v4475_v18, -inf }
 0x2a3   : > { %v1219_v58 = vpop.f32.mrf.mxu0 }
 0x2a7   : > { %3297 = vmatmul.msk.bf16.vlgmr.msrb.gmra.mxu3 %vm944_vm10, %v967_v54 }
 0x2a8   : > { %1116 = vmatpush.bf16.msrb.mxu3 %v1104_v57 }
 0x2b7   : > { %1071 = vmatmul.bf16.vlgmr.msra.gmra.mxu3 %v1061_v10  ;;  %v890_v10 = vpack.c.bf16 %v886_v16, %v886_v16 }
 0x2b8   : > { %1184 = vmatpush.bf16.msra.mxu3 %v1172_v23  ;;  %v907_v23 = vpack.c.bf16 %v903_v39, %v903_v39 }
 0x2b9   : > { %v4439_v63 = vunpack.c.l.b16 %v890_v10 }
 0x2ba   : > { %v1380_v62 = vunpack.c.l.b16 %v907_v23 }
 0x2bb   : > { %v1315_v21 = vpack.c.b16 %v4441_v0, %v4439_v63  ;;  %v879_v63 = vmul.f32 %v4264_v53, %v4309_v49 }
 0x2bc   : > { %v1381_v20 = vpack.c.b16 %v1380_v62, %v1379_v61  ;;  %v1349_v62 = vpop.f32.mrf.mxu0 }
 0x2bd   : > { %v883_v56 = vpack.c.bf16 %v879_v63, %v879_v63 }
 0x2be   : > { %1393 = vmatpush.bf16.msra.mxu1 %v1381_v20  ;;  %v1350_v20 = vadd.f32 %v4466_v34, %v1349_v62 }
 0x31a   : > { %v1029_v60 = vpop.f32.mrf.mxu3 }
 0x322   : > { %v4451_v37 = vpop.f32.mrf.mxu3 }
 0x32a   : > { %v1052_v5 = vpop.f32.mrf.mxu3 }
 0x32b   : > { %v4453_v11 = vadd.f32 %v1052_v5, %v1029_v60  ;;  %v1220_v60 = vadd.f32 %v4348_v42, %v1219_v58  ;;  %v1354_v5 = vsel %vm944_vm10, %v1350_v20, -inf  ;;  %v3665_v58 = vld [vmem:[%s4121_s26 + $0xf0] sm:$0xff] }
 0x32d   : > { %v1225_v61 = vsel %vm944_vm10, %v1220_v60, -inf }
 0x332   : > { %v4455_v12 = vpop.f32.mrf.mxu3 }
 0x33a   : > { %v1072_v13 = vpop.f32.mrf.mxu3 }
 0x33b   : > { %v1073_v14 = vadd.f32 %v1072_v13, %v4293_v28  ;;  %v1261_v28 = vadd.f32 %v4466_v34, %v4337_v33  ;;  %v1159_v13 = vpop.xlane.xlu1 %1158 }
 0x33d   : > { %v1077_v29 = vsel %vm944_vm10, %v1073_v14, -inf  ;;  %v1265_v47 = vsel %vm944_vm10, %v1261_v28, -inf }
 0x33e   : > { %1078 = vmax.xlane.f32.xlu2 %v1077_v29 }
 0x342   : > { %v1074_v30 = vpop.f32.mrf.mxu3 }
 0x343   : > { %v1075_v32 = vadd.f32 %v1074_v30, %v4307_v46  ;;  %v1282_v24 = vpop.xlane.xlu1 %1281  ;;  %v3666_v30 = vld [vmem:[%s4121_s26 + $0xf8] sm:$0xff] }
 0x344   : > { %1538 = vmatpush.bf16.msrb.mxu0 %v3666_v30 }
 0x345   : > { %v1080_v38 = vsel %vm944_vm10, %v1075_v32, -inf }
 0x346   : > { %1081 = vmax.xlane.f32.xlu0 %v1080_v38  ;;  %1149 = vmax.xlane.f32.xlu2 %v1148_v40 }
 0x348   : > { %1539 = vmatpush.bf16.msrb.mxu0 %v3665_v58 }
 0x34e   : > { %1266 = vmax.xlane.f32.xlu0 %v1265_v47 }
 0x3b1   : > { %v1079_v9 = vpop.xlane.xlu2 %1078 }
 0x3b2   : > { %v1083_v17 = vsub.f32 %v1073_v14, %v1079_v9 }
 0x3b4   : > { %v1085_v46 = vmul.f32 1.442695, %v1083_v17 }
 0x3b6   : > { %3779 = vpow2.f32 %v1085_v46 }
 0x3b9   : > { %v1082_v41 = vpop.xlane.xlu0 %1081  ;;  %v1150_v43 = vpop.xlane.xlu2 %1149 }
 0x3ba   : > { %v1084_v50 = vsub.f32 %v1075_v32, %v1082_v41  ;;  %v1152_v1 = vsub.f32 %v1143_v25, %v1150_v43 }
 0x3bc   : > { %v3780_v48 = vpop.eup %3779  ;;  %v1087_v55 = vmul.f32 1.442695, %v1084_v50  ;;  %v1155_v54 = vmul.f32 1.442695, %v1152_v1 }
 0x3bd   : > { %v1089_v57 = vsel %vm944_vm10, %v3780_v48, 0.0 }
 0x3be   : > { %3781 = vpow2.f32 %v1087_v55  ;;  %1090 = vadd.xlane.f32.xlu2 %v1089_v57 }
 0x3bf   : > { %3783 = vpow2.f32 %v1155_v54 }
 0x3c1   : > { %v1267_v33 = vpop.xlane.xlu0 %1266 }
 0x3c2   : > { %v1271_v16 = vsub.f32 %v1261_v28, %v1267_v33  ;;  %v878_v33 = vmul.f32 %v4264_v53, %v4296_v31 }
 0x3c4   : > { %v3782_v22 = vpop.eup %3781  ;;  %v1273_v39 = vmul.f32 1.442695, %v1271_v16 }
 0x3c5   : > { %v3784_v6 = vpop.eup %3783  ;;  %v1092_v7 = vsel %vm944_vm10, %v3782_v22, 0.0 }
 0x3c6   : > { %3785 = vpow2.f32 %v1273_v39  ;;  %1093 = vadd.xlane.f32.xlu0 %v1092_v7  ;;  %v1160_v10 = vsel %vm944_vm10, %v3784_v6, 0.0 }
 0x3c7   : > { %1161 = vadd.xlane.f32.xlu2 %v1160_v10 }
 0x3cc   : > { %v3786_v19 = vpop.eup %3785 }
 0x3cd   : > { %v1277_v23 = vsel %vm944_vm10, %v3786_v19, 0.0 }
 0x3ce   : > { %1278 = vadd.xlane.f32.xlu0 %v1277_v23 }
 0x3cf   : > { %1223 = vmax.xlane.f32.xlu2 %v1222_v59  ;;  %v3664_v59 = vld [vmem:[%s4121_s26 + $0xe8] sm:$0xff] }
 0x3d0   : > { %1540 = vmatpush.bf16.msrb.mxu0 %v3664_v59 }
 0x3d4   : > { %1541 = vmatpush.bf16.msrb.mxu0 %v3663_v2 }
 0x3d6   : > { %1226 = vmax.xlane.f32.xlu0 %v1225_v61  ;;  %v3659_v61 = vld [vmem:[%s4121_s26 + $0xc0] sm:$0xff] }
 0x3d8   : > { %1542 = vmatpush.bf16.msrb.mxu0 %v3662_v3 }
 0x3de   : > { %1355 = vmax.xlane.f32.xlu0 %v1354_v5 }
 0x431   : > { %v1091_v14 = vpop.xlane.xlu2 %1090 }
 0x432   : > { %3787 = vrcp.f32 %v1091_v14 }
 0x438   : > { %v3788_v25 = vpop.eup %3787 }
 0x439   : > { %v1094_v29 = vpop.xlane.xlu0 %1093  ;;  %v1097_v38 = vmul.f32 %v3788_v25, %v3780_v48 }
 0x43a   : > { %3789 = vrcp.f32 %v1094_v29  ;;  %v1162_v9 = vpop.xlane.xlu2 %1161  ;;  %v1055_v29 = vadd.f32 %v4455_v12, %v4451_v37 }
 0x43b   : > { %3791 = vrcp.f32 %v1282_v24 }
 0x440   : > { %v3790_v32 = vpop.eup %3789 }
 0x441   : > { %v1098_v40 = vmul.f32 %v3790_v32, %v3782_v22  ;;  %v1279_v28 = vpop.xlane.xlu0 %1278  ;;  %v3792_v17 = vpop.eup %3791  ;;  %v882_v22 = vpack.c.bf16 %v878_v33, %v878_v33 }
 0x442   : > { %3793 = vrcp.f32 %v1279_v28  ;;  %v1286_v41 = vmul.f32 %v3792_v17, %v4415_v51  ;;  %v1224_v24 = vpop.xlane.xlu2 %1223 }
 0x443   : > { %v1099_v47 = vpack.c.bf16 %v1098_v40, %v1097_v38  ;;  %3795 = vrcp.f32 %v1162_v9  ;;  %v1404_v49 = vunpack.c.l.b16 %v882_v22  ;;  %v1228_v9 = vsub.f32 %v4475_v18, %v1224_v24 }
 0x444   : > { %3797 = vrcp.f32 %v1159_v13 }
 0x445   : > { %3298 = vmatmul.msk.bf16.vlgmr.msrb.gmra.mxu3 %vm944_vm10, %v1099_v47 }
 0x446   : > { %1327 = vmatpush.bf16.msrb.mxu3 %v1315_v21 }
 0x448   : > { %v3794_v46 = vpop.eup %3793 }
 0x449   : > { %v1285_v43 = vmul.f32 %v3794_v46, %v3786_v19  ;;  %v1227_v50 = vpop.xlane.xlu0 %1226  ;;  %v3796_v55 = vpop.eup %3795 }
 0x44a   : > { %v1229_v1 = vsub.f32 %v1220_v60, %v1227_v50  ;;  %v3798_v57 = vpop.eup %3797  ;;  %v1166_v0 = vmul.f32 %v3796_v55, %v3784_v6  ;;  %v3660_v60 = vld [vmem:[%s4121_s26 + $0xc8] sm:$0xff] }
 0x44b   : > { %v1287_v48 = vpack.c.bf16 %v1286_v41, %v1285_v43  ;;  %v1165_v21 = vmul.f32 %v3798_v57, %v4401_v8  ;;  %v1405_v8 = vunpack.c.l.b16 %v883_v56  ;;  %v1351_v41 = vpop.f32.mrf.mxu0  ;;  %v1230_v43 = vmul.f32 1.442695, %v1228_v9  ;;  %v3680_v9 = vld [vmem:[%s4121_s26 + $0x168] sm:$0xff] }
 0x44c   : > { %v1232_v54 = vmul.f32 1.442695, %v1229_v1  ;;  %v1352_v37 = vadd.f32 %v4348_v42, %v1351_v41 }
 0x44d   : > { %3302 = vmatmul.msk.bf16.vlgmr.msra.gmra.mxu2 %vm944_vm10, %v1287_v48  ;;  %v1167_v39 = vpack.c.bf16 %v1166_v0, %v1165_v21  ;;  %v1406_v6 = vpack.c.b16 %v1405_v8, %v1404_v49 }
 0x44e   : > { %3799 = vpow2.f32 %v1232_v54  ;;  %v1357_v1 = vsel %vm944_vm10, %v1352_v37, -inf }
 0x451   : > { %v1356_v51 = vpop.xlane.xlu0 %1355 }
 0x452   : > { %v1360_v16 = vsub.f32 %v1350_v20, %v1356_v51 }
 0x454   : > { %v4496_v7 = vpop.eup %3799  ;;  %v1362_v10 = vmul.f32 1.442695, %v1360_v16 }
 0x455   : > { %3299 = vmatmul.msk.bf16.vlgmr.msra.gmra.mxu3 %vm944_vm10, %v1167_v39  ;;  %v1237_v31 = vsel %vm944_vm10, %v4496_v7, 0.0  ;;  %v4532_v39 = vperm.slane %v4237_v36, 3 }
 0x456   : > { %3801 = vpow2.f32 %v1362_v10  ;;  %1461 = vmatpush.bf16.msra.mxu3 %v1449_v4  ;;  %1238 = vadd.xlane.f32.xlu0 %v1237_v31  ;;  %v3661_v4 = vld [vmem:[%s4121_s26 + $0xd0] sm:$0xff] }
 0x457   : > { %1543 = vmatpush.bf16.msrb.mxu0 %v3661_v4  ;;  %3803 = vpow2.f32 %v1230_v43  ;;  %v4542_v4 = vsel %vm563_vm3, 1.0, %v3985_v44 }
 0x45b   : > { %1544 = vmatpush.bf16.msrb.mxu0 %v3660_v60 }
 0x45c   : > { %v4504_v19 = vpop.eup %3801 }
 0x45d   : > { %1416 = vmatmul.bf16.vlgmr.msrb.gmra.mxu2 %v1406_v6  ;;  %v1366_v23 = vsel %vm944_vm10, %v4504_v19, 0.0 }
 0x45e   : > { %1367 = vadd.xlane.f32.xlu0 %v1366_v23 }
 0x45f   : > { %1545 = vmatpush.bf16.msrb.mxu0 %v3659_v61 }
 0x4c8   : > { %v1118_v62 = vpop.f32.mrf.mxu3 }
 0x4c9   : > { %v1123_v25 = vadd.f32 %v1118_v62, %v4453_v11  ;;  %v1239_v22 = vpop.xlane.xlu0 %1238 }
 0x4d0   : > { %v1120_v20 = vpop.f32.mrf.mxu3  ;;  %v4515_v5 = vpop.f32.mrf.mxu2 }
 0x4d1   : > { %v1124_v30 = vadd.f32 %v1120_v20, %v1055_v29  ;;  %v1368_v44 = vpop.xlane.xlu0 %1367 }
 0x4d8   : > { %v1186_v13 = vpop.f32.mrf.mxu3  ;;  %v4517_v14 = vpop.f32.mrf.mxu2 }
 0x4d9   : > { %v1191_v40 = vadd.f32 %v1186_v13, %v1123_v25  ;;  %v3689_v25 = vld [vmem:[%s4121_s26 + $0x1b0] sm:$0xff] }
 0x4e0   : > { %v1188_v32 = vpop.f32.mrf.mxu3  ;;  %v1417_v38 = vpop.f32.mrf.mxu2 }
 0x4e1   : > { %v1192_v28 = vadd.f32 %v1188_v32, %v1124_v30  ;;  %v1418_v47 = vadd.f32 %v4466_v34, %v1417_v38  ;;  %v3804_v34 = vpop.eup %3803  ;;  %v3681_v30 = vld [vmem:[%s4121_s26 + $0x170] sm:$0xff] }
 0x4e2   : > { %v1234_v18 = vsel %vm944_vm10, %v3804_v34, 0.0 }
 0x4e3   : > { %v1470_v17 = vpack.c.bf16 %v1192_v28, %v1191_v40  ;;  %v1422_v46 = vsel %vm944_vm10, %v1418_v47, -inf }
 0x4e4   : > { %1423 = vmax.xlane.f32.xlu1 %v1422_v46 }
 0x4e5   : > { %1546 = vmatmul.bf16.vlgmr.msrb.gmra.mxu0 %v1470_v17 }
 0x4e8   : > { %v1419_v12 = vpop.f32.mrf.mxu2 }
 0x4e9   : > { %v1420_v11 = vadd.f32 %v4348_v42, %v1419_v12 }
 0x4eb   : > { %v1425_v50 = vsel %vm944_vm10, %v1420_v11, -inf }
 0x4ec   : > { %1426 = vmax.xlane.f32.xlu2 %v1425_v50  ;;  %1358 = vmax.xlane.f32.xlu1 %v1357_v1 }
 0x4f4   : > { %1235 = vadd.xlane.f32.xlu2 %v1234_v18 }
 0x557   : > { %v1424_v48 = vpop.xlane.xlu1 %1423 }
 0x558   : > { %v1428_v55 = vsub.f32 %v1418_v47, %v1424_v48  ;;  %v3688_v47 = vld [vmem:[%s4121_s26 + $0x1a8] sm:$0xff]  ;;  %v3687_v48 = vld [vmem:[%s4121_s26 + $0x1a0] sm:$0xff] }
 0x55a   : > { %v1430_v54 = vmul.f32 1.442695, %v1428_v55 }
 0x55c   : > { %3805 = vpow2.f32 %v1430_v54 }
 0x55f   : > { %v1427_v57 = vpop.xlane.xlu2 %1426  ;;  %v1359_v33 = vpop.xlane.xlu1 %1358 }
 0x560   : > { %v1429_v63 = vsub.f32 %v1420_v11, %v1427_v57  ;;  %v1361_v0 = vsub.f32 %v1352_v37, %v1359_v33  ;;  %v3679_v57 = vld [vmem:[%s4121_s26 + $0x160] sm:$0xff] }
 0x562   : > { %v3806_v42 = vpop.eup %3805  ;;  %v1432_v21 = vmul.f32 1.442695, %v1429_v63  ;;  %v1364_v51 = vmul.f32 1.442695, %v1361_v0  ;;  %v1547_v16 = vpop.f32.mrf.mxu0  ;;  %v3686_v63 = vld [vmem:[%s4121_s26 + $0x198] sm:$0xff] }
 0x563   : > { %v1434_v56 = vsel %vm944_vm10, %v3806_v42, 0.0  ;;  %v1548_v49 = vadd.f32 %v1547_v16, %v4532_v39  ;;  %v3684_v16 = vld [vmem:[%s4121_s26 + $0x188] sm:$0xff] }
 0x564   : > { %3807 = vpow2.f32 %v1432_v21  ;;  %1435 = vadd.xlane.f32.xlu1 %v1434_v56  ;;  %v3685_v21 = vld [vmem:[%s4121_s26 + $0x190] sm:$0xff]  ;;  %v3683_v56 = vld [vmem:[%s4121_s26 + $0x180] sm:$0xff] }
 0x565   : > { %3809 = vpow2.f32 %v1364_v51  ;;  %v1557_v60 = vadd.f32 %v1548_v49, %v4217_v26  ;;  %v3690_v26 = vld [vmem:[%s4121_s26 + $0x1b8] sm:$0xff]  ;;  %v3677_v51 = vld [vmem:[%s4121_s26 + $0x150] sm:$0xff] }
 0x566   : > { %3811 = vrcp.f32 %v1239_v22  ;;  %v3676_v22 = vld [vmem:[%s4121_s26 + $0x148] sm:$0xff]  ;;  %v3674_v49 = vld [vmem:[%s4121_s26 + $0x138] sm:$0xff] }
 0x567   : > { %v1236_v10 = vpop.xlane.xlu2 %1235  ;;  %1727 = vmatpush.bf16.msrb.mxu1 %v3674_v49 }
 0x568   : > { %3813 = vrcp.f32 %v1236_v10  ;;  %v3675_v10 = vld [vmem:[%s4121_s26 + $0x140] sm:$0xff] }
 0x56a   : > { %v3808_v31 = vpop.eup %3807  ;;  %v1549_v8 = vpop.f32.mrf.mxu0 }
 0x56b   : > { %v3810_v6 = vpop.eup %3809  ;;  %v1550_v23 = vadd.f32 %v1549_v8, %v4532_v39  ;;  %v1437_v58 = vsel %vm944_vm10, %v3808_v31, 0.0  ;;  %v3673_v8 = vld [vmem:[%s4121_s26 + $0x130] sm:$0xff] }
 0x56c   : > { %v3812_v59 = vpop.eup %3811  ;;  %1438 = vadd.xlane.f32.xlu2 %v1437_v58  ;;  %v1369_v2 = vsel %vm944_vm10, %v3810_v6, 0.0  ;;  %1728 = vmatpush.bf16.msrb.mxu1 %v3673_v8  ;;  %v3670_v58 = vld [vmem:[%s4121_s26 + $0x118] sm:$0xff] }
 0x56d   : > { %v1558_v3 = vadd.f32 %v1550_v23, %v4222_v27  ;;  %1370 = vadd.xlane.f32.xlu1 %v1369_v2  ;;  %v1243_v61 = vmul.f32 %v3812_v59, %v4496_v7  ;;  %v1561_v27 = vmul.f32 %v4542_v4, %v1557_v60  ;;  %v3682_v7 = vld [vmem:[%s4121_s26 + $0x178] sm:$0xff]  ;;  %v3671_v23 = vld [vmem:[%s4121_s26 + $0x120] sm:$0xff]  ;;  %v3669_v59 = vld [vmem:[%s4121_s26 + $0x110] sm:$0xff] }
 0x56e   : > { %v3814_v36 = vpop.eup %3813  ;;  %1824 = vmatpush.bf16.msra.mxu2 %v3682_v7  ;;  %v3668_v2 = vld [vmem:[%s4121_s26 + $0x108] sm:$0xff] }
 0x56f   : > { %v1242_v62 = vmul.f32 %v3814_v36, %v3804_v34  ;;  %v1562_v20 = vmul.f32 %v4542_v4, %v1558_v3  ;;  %v3667_v36 = vld [vmem:[%s4121_s26 + $0x100] sm:$0xff] }
 0x571   : > { %v1244_v13 = vpack.c.bf16 %v1243_v61, %v1242_v62  ;;  %1567 = vadd.xlane.f32.xlu0 %v1562_v20 }
 0x572   : > { %1825 = vmatpush.bf16.msra.mxu2 %v3681_v30 }
 0x573   : > { %3303 = vmatmul.msk.bf16.vlgmr.msrb.gmra.mxu3 %vm944_vm10, %v1244_v13 }
 0x574   : > { %1565 = vadd.xlane.f32.xlu2 %v1561_v27  ;;  %1909 = vmatpush.bf16.msrb.mxu3 %v3690_v26 }
 0x576   : > { %1826 = vmatpush.bf16.msra.mxu2 %v3680_v9 }
 0x578   : > { %1910 = vmatpush.bf16.msrb.mxu3 %v3689_v25 }
 0x57a   : > { %1827 = vmatpush.bf16.msra.mxu2 %v3679_v57 }
 0x57c   : > { %1911 = vmatpush.bf16.msrb.mxu3 %v3688_v47 }
 0x580   : > { %1912 = vmatpush.bf16.msrb.mxu3 %v3687_v48 }
 0x584   : > { %1913 = vmatpush.bf16.msrb.mxu3 %v3686_v63 }
 0x588   : > { %1914 = vmatpush.bf16.msrb.mxu3 %v3685_v21 }
 0x58c   : > { %1915 = vmatpush.bf16.msrb.mxu3 %v3684_v16  ;;  %v3911_v16 = vld [vmem:[%s4136_s16] sm:$0xff] }
 0x590   : > { %1916 = vmatpush.bf16.msrb.mxu3 %v3683_v56  ;;  %v4612_v56 = vperm.slane %v3911_v16, 5 }
 0x5d7   : > { %v1436_v35 = vpop.xlane.xlu1 %1435 }
 0x5d8   : > { %3815 = vrcp.f32 %v1436_v35 }
 0x5d9   : > { %3817 = vrcp.f32 %v1368_v44 }
 0x5de   : > { %v3816_v32 = vpop.eup %3815 }
 0x5df   : > { %v1439_v29 = vpop.xlane.xlu2 %1438  ;;  %v3818_v40 = vpop.eup %3817  ;;  %v1442_v41 = vmul.f32 %v3816_v32, %v3806_v42  ;;  %v3678_v42 = vld [vmem:[%s4121_s26 + $0x158] sm:$0xff] }
 0x5e0   : > { %3819 = vrcp.f32 %v1439_v29  ;;  %v1371_v24 = vpop.xlane.xlu1 %1370  ;;  %v1374_v11 = vmul.f32 %v3818_v40, %v4504_v19  ;;  %1828 = vmatpush.bf16.msra.mxu2 %v3678_v42 }
 0x5e1   : > { %3821 = vrcp.f32 %v1371_v24 }
 0x5e4   : > { %v1568_v38 = vpop.xlane.xlu0 %1567  ;;  %1829 = vmatpush.bf16.msra.mxu2 %v3677_v51 }
 0x5e5   : > { %v1574_v28 = vmul.f32 0.03125, %v1568_v38 }
 0x5e6   : > { %v3820_v17 = vpop.eup %3819 }
 0x5e7   : > { %v3822_v46 = vpop.eup %3821  ;;  %v1443_v43 = vmul.f32 %v3820_v17, %v3808_v31  ;;  %v1578_v37 = vsub.f32 %v1562_v20, %v1574_v28  ;;  %v1566_v12 = vpop.xlane.xlu2 %1565  ;;  %v3633_v31 = vld [vmem:[%s5009_s1] sm:$0xff] }
 0x5e8   : > { %v1375_v50 = vmul.f32 %v3822_v46, %v3810_v6  ;;  %v1573_v1 = vmul.f32 0.03125, %v1566_v12  ;;  %1830 = vmatpush.bf16.msra.mxu2 %v3676_v22  ;;  %v3672_v6 = vld [vmem:[%s4121_s26 + $0x128] sm:$0xff]  ;;  %v586_v46 = vld [vmem:[%s4141_s30] sm:$0x7]  ;;  %v4610_v22 = vperm.slane %v3911_v16, 6 }
 0x5e9   : > { %v1444_v34 = vpack.c.bf16 %v1443_v43, %v1442_v41  ;;  %v4557_v18 = vmul.f32 %v4542_v4, %v1578_v37  ;;  %1729 = vmatpush.bf16.msrb.mxu1 %v3672_v6 }
 0x5ea   : > { %v1376_v55 = vpack.c.bf16 %v1375_v50, %v1374_v11  ;;  %v1577_v54 = vsub.f32 %v1561_v27, %v1573_v1  ;;  %v4592_v1 = vperm.slane %v586_v46, 0 }
 0x5eb   : > { %3305 = vmatmul.msk.bf16.vlgmr.msra.gmra.mxu3 %vm944_vm10, %v1444_v34  ;;  %v1586_v19 = vmul.f32 %v4557_v18, %v4557_v18 }
 0x5ec   : > { %3304 = vmatmul.msk.bf16.vlgmr.msra.gmra.mxu1 %vm944_vm10, %v1376_v55  ;;  %v4566_v33 = vmul.f32 %v4542_v4, %v1577_v54  ;;  %1831 = vmatpush.bf16.msra.mxu2 %v3675_v10  ;;  %v587_v55 = vld [vmem:[%s4146_s19] sm:$0x7] }
 0x5ed   : > { %1591 = vadd.xlane.f32.xlu2 %v1586_v19  ;;  %1730 = vmatpush.bf16.msrb.mxu1 %v3671_v23 }
 0x5ee   : > { %v1585_v0 = vmul.f32 %v4566_v33, %v4566_v33 }
 0x5ef   : > { %1832 = vmatmul.bf16.vlgmr.msra.gmra.mxu2 %v3633_v31 }
 0x5f0   : > { %1589 = vadd.xlane.f32.xlu1 %v1585_v0  ;;  %v4598_v0 = vperm.slane %v587_v55, 0 }
 0x5f1   : > { %1731 = vmatpush.bf16.msrb.mxu1 %v3670_v58 }
 0x5f5   : > { %1732 = vmatpush.bf16.msrb.mxu1 %v3669_v59 }
 0x5f6   : > { %v1329_v3 = vpop.f32.mrf.mxu3 }
 0x5f7   : > { %v1330_v47 = vadd.f32 %v1329_v3, %v4515_v5 }
 0x5f9   : > { %1733 = vmatpush.bf16.msrb.mxu1 %v3668_v2 }
 0x5fb   : > { %1917 = vmatmul.bf16.vlgmr.msrb.gmra.mxu3 %v3633_v31 }
 0x5fd   : > { %1734 = vmatpush.bf16.msrb.mxu1 %v3667_v36 }
 0x5fe   : > { %v1331_v27 = vpop.f32.mrf.mxu3 }
 0x5ff   : > { %v1332_v9 = vadd.f32 %v1331_v27, %v4517_v14 }
 0x660   : > { %v1592_v60 = vpop.xlane.xlu2 %1591 }
 0x661   : > { %v1598_v61 = vmul.f32 0.03125, %v1592_v60 }
 0x663   : > { %v1602_v62 = vadd.f32 1e-05, %v1598_v61  ;;  %v1590_v20 = vpop.xlane.xlu1 %1589 }
 0x664   : > { %v1597_v13 = vmul.f32 0.03125, %v1590_v20 }
 0x665   : > { %3823 = vrsqrt.f32 %v1602_v62  ;;  %vm1621_vm12 = vweird.f32 %v1602_v62 }
 0x666   : > { %v1601_v35 = vadd.f32 1e-05, %v1597_v13 }
 0x668   : > { %3825 = vrsqrt.f32 %v1601_v35  ;;  %vm1611_vm15 = vweird.f32 %v1601_v35 }
 0x669   : > { %v1395_v44 = vpop.f32.mrf.mxu1 }
 0x66a   : > { %v1400_v37 = vadd.f32 %v1395_v44, %v1330_v47 }
 0x66b   : > { %v3824_v29 = vpop.eup %3823 }
 0x66c   : > { %v1616_v26 = vmul.f32 %v3824_v29, %v1602_v62  ;;  %vm1622_vm11 = vweird.f32 %v3824_v29 }
 0x66d   : > { %vm1623_vm13 = vmor %vm1621_vm12, %vm1622_vm11 }
 0x66e   : > { %v3826_v7 = vpop.eup %3825  ;;  %v1617_v24 = vmul.f32 %v3824_v29, %v1616_v26  ;;  %v1463_v25 = vpop.f32.mrf.mxu3 }
 0x66f   : > { %v1606_v30 = vmul.f32 %v3826_v7, %v1601_v35  ;;  %vm1612_vm14 = vweird.f32 %v3826_v7  ;;  %v1468_v14 = vadd.f32 %v1463_v25, %v1400_v37  ;;  %v4630_v25 = vperm.slane %v3911_v16, 4 }
 0x670   : > { %v1618_v32 = vmul.f32 0.5, %v1617_v24  ;;  %vm1613_vm0 = vmor %vm1611_vm15, %vm1612_vm14 }
 0x671   : > { %v1607_v38 = vmul.f32 %v3826_v7, %v1606_v30  ;;  %v1397_v28 = vpop.f32.mrf.mxu1 }
 0x672   : > { %v1619_v40 = vsub.f32 1.5, %v1618_v32  ;;  %v1401_v12 = vadd.f32 %v1397_v28, %v1332_v9  ;;  %v1833_v31 = vpop.f32.mrf.mxu2  ;;  %v3913_v9 = vld [vmem:[%s5020_s12 + $0x18] sm:$0xff] }
 0x673   : > { %v1608_v17 = vmul.f32 0.5, %v1607_v38  ;;  %v1834_v49 = vadd.f32 %v1833_v31, %v4612_v56 }
 0x674   : > { %v1620_v41 = vmul.f32 %v3824_v29, %v1619_v40 }
 0x675   : > { %v1609_v43 = vsub.f32 1.5, %v1608_v17  ;;  %v1928_v6 = vpack.c.bf16 %v1834_v49, %v1834_v49 }
 0x676   : > { %v1624_v11 = vsel %vm1623_vm13, %v3824_v29, %v1620_v41  ;;  %v1465_v50 = vpop.f32.mrf.mxu3 }
 0x677   : > { %v1646_v34 = vmul.f32 %v1624_v11, %v4557_v18  ;;  %v1610_v5 = vmul.f32 %v3826_v7, %v1609_v43  ;;  %v1469_v48 = vadd.f32 %v1465_v50, %v1401_v12  ;;  %v2010_v60 = vunpack.c.l.b16 %v1928_v6 }
 0x679   : > { %v1614_v54 = vsel %vm1613_vm0, %v3826_v7, %v1610_v5  ;;  %v1471_v57 = vpack.c.bf16 %v1469_v48, %v1468_v14  ;;  %v1651_v63 = vmul.f32 %v4592_v1, %v1646_v34  ;;  %v3912_v7 = vld [vmem:[%s5020_s12 + $0x10] sm:$0xff] }
 0x67a   : > { %v1645_v19 = vmul.f32 %v1614_v54, %v4566_v33  ;;  %v1835_v2 = vpop.f32.mrf.mxu2 }
 0x67b   : > { %1551 = vmatmul.bf16.gmra.mxu0 %v1471_v57  ;;  %v4605_v18 = vadd.f32 %v4598_v0, %v1651_v63  ;;  %v1836_v3 = vadd.f32 %v1835_v2, %v4612_v56 }
 0x67c   : > { %v1650_v42 = vmul.f32 %v4592_v1, %v1645_v19 }
 0x67d   : > { %v1929_v61 = vpack.c.bf16 %v1836_v3, %v1836_v3 }
 0x67e   : > { %v4602_v21 = vadd.f32 %v4598_v0, %v1650_v42  ;;  %v1918_v33 = vpop.f32.mrf.mxu3 }
 0x67f   : > { %v4615_v10 = vadd.f32 %v1918_v33, %v4610_v22  ;;  %v2011_v13 = vunpack.c.l.b16 %v1929_v61 }
 0x680   : > { %v1659_v51 = vpack.c.bf16 %v4605_v18, %v4602_v21 }
 0x681   : > { %v1976_v8 = vmul.f32 %v4285_v15, %v4615_v10  ;;  %v2012_v35 = vpack.c.b16 %v2011_v13, %v2010_v60 }
 0x682   : > { %1735 = vmatmul.bf16.vlgmr.msrb.gmra.mxu1 %v1659_v51 }
 0x683   : > { %v1980_v58 = vpack.c.bf16 %v1976_v8, %v1976_v8  ;;  %2021 = vmatpush.bf16.xpose.msra.mxu0 %v2012_v35  ;;  %2064 = vmatpush.bf16.xpose.msra.mxu1 %v2012_v35 }
 0x685   : > { %v2096_v20 = vunpack.c.l.b16 %v1980_v58 }
 0x686   : > { %v1920_v23 = vpop.f32.mrf.mxu3 }
 0x687   : > { %v4621_v59 = vadd.f32 %v1920_v23, %v4610_v22 }
 0x689   : > { %v1977_v36 = vmul.f32 %v4285_v15, %v4621_v59 }
 0x68b   : > { %v1981_v62 = vpack.c.bf16 %v1977_v36, %v1977_v36  ;;  %2153 = vmatpush.bf16.xpose.msrb.mxu0 %v2012_v35 }
 0x68d   : > { %v2097_v27 = vunpack.c.l.b16 %v1981_v62 }
 0x68f   : > { %v2098_v44 = vpack.c.b16 %v2097_v27, %v2096_v20 }
 0x691   : > { %2110 = vmatpush.bf16.msrb.mxu2 %v2098_v44 }
 0x695   : > { %2221 = vmatpush.bf16.xpose.msra.mxu2 %v2012_v35 }
 0x6f8   : > { %v1552_v29 = vpop.f32.mrf.mxu0 }
 0x6f9   : > { %v1553_v26 = vadd.f32 %v1552_v29, %v4532_v39 }
 0x6fb   : > { %v1559_v24 = vadd.f32 %v3912_v7, %v1553_v26 }
 0x6fd   : > { %v1563_v30 = vmul.f32 %v4542_v4, %v1559_v24 }
 0x6ff   : > { %1569 = vadd.xlane.f32.xlu0 %v1563_v30  ;;  %v1736_v32 = vpop.f32.mrf.mxu1 }
 0x700   : > { %v1737_v38 = vadd.f32 %v1736_v32, %v4630_v25  ;;  %v1554_v40 = vpop.f32.mrf.mxu0 }
 0x701   : > { %v1555_v28 = vadd.f32 %v1554_v40, %v4532_v39  ;;  %v4669_v40 = vld [vmem:[%s5011_s3] sm:$0xff] }
 0x702   : > { %v1932_v47 = vmul.f32 0.35355338, %v1737_v38 }
 0x703   : > { %v1560_v17 = vadd.f32 %v3913_v9, %v1555_v28  ;;  %v4676_v9 = vld [vmem:[%s5011_s3 + $0x8] sm:$0xff] }
 0x704   : > { %v1936_v41 = vmul.f32 %v4261_v52, %v1932_v47  ;;  %v1944_v43 = vmul.f32 %v4285_v15, %v1932_v47  ;;  %v1960_v12 = vmul.f32 %v4264_v53, %v1932_v47  ;;  %v1952_v58 = vmul.f32 %v4252_v45, %v1932_v47 }
 0x705   : > { %v1564_v46 = vmul.f32 %v4542_v4, %v1560_v17 }
 0x706   : > { %v1940_v39 = vpack.c.bf16 %v1936_v41, %v1936_v41  ;;  %v1948_v34 = vpack.c.bf16 %v1944_v43, %v1944_v43  ;;  %v1964_v5 = vpack.c.bf16 %v1960_v12, %v1960_v12  ;;  %v1956_v3 = vpack.c.bf16 %v1952_v58, %v1952_v58  ;;  %v3634_v43 = vld [vmem:[%s5009_s1 + $0x8] sm:$0xff] }
 0x707   : > { %1571 = vadd.xlane.f32.xlu1 %v1564_v46  ;;  %v1738_v37 = vpop.f32.mrf.mxu1  ;;  %1837 = vmatmul.bf16.gmra.mxu2 %v3634_v43 }
 0x708   : > { %v1739_v11 = vadd.f32 %v1738_v37, %v4630_v25  ;;  %v2004_v63 = vunpack.c.l.b16 %v1940_v39  ;;  %v4646_v42 = vunpack.c.l.b16 %v1948_v34  ;;  %v4650_v33 = vunpack.c.l.b16 %v1964_v5  ;;  %1922 = vmatmul.bf16.gmra.mxu3 %v3634_v43 }
 0x709   : > { %v2142_v60 = vunpack.c.l.b16 %v1956_v3 }
 0x70a   : > { %v1933_v50 = vmul.f32 0.35355338, %v1739_v11 }
 0x70c   : > { %v1937_v14 = vmul.f32 %v4261_v52, %v1933_v50  ;;  %v1945_v48 = vmul.f32 %v4285_v15, %v1933_v50  ;;  %v1961_v55 = vmul.f32 %v4264_v53, %v1933_v50  ;;  %v1953_v23 = vmul.f32 %v4252_v45, %v1933_v50 }
 0x70e   : > { %v1941_v54 = vpack.c.bf16 %v1937_v14, %v1937_v14  ;;  %v1949_v57 = vpack.c.bf16 %v1945_v48, %v1945_v48  ;;  %v1965_v19 = vpack.c.bf16 %v1961_v55, %v1961_v55  ;;  %v1957_v2 = vpack.c.bf16 %v1953_v23, %v1953_v23 }
 0x710   : > { %v2005_v51 = vunpack.c.l.b16 %v1941_v54  ;;  %v4648_v16 = vunpack.c.l.b16 %v1949_v57  ;;  %v4652_v31 = vunpack.c.l.b16 %v1965_v19  ;;  %v2143_v36 = vunpack.c.l.b16 %v1957_v2 }
 0x712   : > { %v2006_v49 = vpack.c.b16 %v2005_v51, %v2004_v63  ;;  %v2055_v8 = vpack.c.b16 %v4648_v16, %v4646_v42  ;;  %v2212_v6 = vpack.c.b16 %v4652_v31, %v4650_v33  ;;  %v2144_v61 = vpack.c.b16 %v2143_v36, %v2142_v60 }
 0x713   : > { %v1985_v42 = vmul.f32 %v4252_v45, %v4621_v59  ;;  %v1992_v16 = vmul.f32 %v4264_v53, %v4615_v10 }
 0x714   : > { %2022 = vmatmul.bf16.vlgmr.msra.gmra.mxu0 %v2006_v49 }
 0x724   : > { %2154 = vmatmul.bf16.vlgmr.msrb.gmra.mxu0 %v2144_v61 }
 0x772   : > { %v1570_v62 = vpop.xlane.xlu0 %1569 }
 0x773   : > { %v1575_v20 = vmul.f32 0.03125, %v1570_v62 }
 0x775   : > { %v1579_v13 = vsub.f32 %v1563_v30, %v1575_v20 }
 0x777   : > { %v1583_v27 = vmul.f32 %v4542_v4, %v1579_v13 }
 0x779   : > { %v1587_v35 = vmul.f32 %v1583_v27, %v1583_v27 }
 0x77a   : > { %v1572_v44 = vpop.xlane.xlu1 %1571 }
 0x77b   : > { %v1576_v29 = vmul.f32 0.03125, %v1572_v44  ;;  %1593 = vadd.xlane.f32.xlu2 %v1587_v35 }
 0x77d   : > { %v1580_v26 = vsub.f32 %v1564_v46, %v1576_v29 }
 0x77f   : > { %v1584_v7 = vmul.f32 %v4542_v4, %v1580_v26 }
 0x781   : > { %v1588_v24 = vmul.f32 %v1584_v7, %v1584_v7 }
 0x783   : > { %1595 = vadd.xlane.f32.xlu0 %v1588_v24 }
 0x791   : > { %v4662_v32 = vpop.f32.mrf.mxu0 }
 0x799   : > { %v4664_v38 = vpop.f32.mrf.mxu0 }
 0x7a1   : > { %v2155_v30 = vpop.f32.mrf.mxu0 }
 0x7a2   : > { %v2156_v28 = vadd.f32 %v2155_v30, %v4669_v40 }
 0x7a4   : > { %v2160_v47 = vsel %vm944_vm10, %v2156_v28, -inf }
 0x7a5   : > { %2161 = vmax.xlane.f32.xlu1 %v2160_v47  ;;  %v1838_v47 = vpop.f32.mrf.mxu2 }
 0x7a6   : > { %v1839_v43 = vadd.f32 %v1838_v47, %v4612_v56 }
 0x7a9   : > { %v2157_v17 = vpop.f32.mrf.mxu0 }
 0x7aa   : > { %v2158_v46 = vadd.f32 %v2157_v17, %v4676_v9  ;;  %v1968_v17 = vmul.f32 %v4261_v52, %v4615_v10 }
 0x7ac   : > { %v2163_v41 = vsel %vm944_vm10, %v2158_v46, -inf }
 0x7ad   : > { %2164 = vmax.xlane.f32.xlu2 %v2163_v41  ;;  %v1969_v41 = vmul.f32 %v4261_v52, %v4621_v59 }
 0x7ee   : > { %v1594_v37 = vpop.xlane.xlu2 %1593 }
 0x7ef   : > { %v1599_v12 = vmul.f32 0.03125, %v1594_v37  ;;  %v1972_v37 = vpack.c.bf16 %v1968_v17, %v1968_v17 }
 0x7f1   : > { %v1603_v11 = vadd.f32 1e-05, %v1599_v12 }
 0x7f3   : > { %3827 = vrsqrt.f32 %v1603_v11  ;;  %vm1631_vm2 = vweird.f32 %v1603_v11 }
 0x7f6   : > { %v1596_v50 = vpop.xlane.xlu0 %1595 }
 0x7f7   : > { %v1600_v39 = vmul.f32 0.03125, %v1596_v50  ;;  %v1989_v50 = vpack.c.bf16 %v1985_v42, %v1985_v42 }
 0x7f9   : > { %v3828_v34 = vpop.eup %3827  ;;  %v1604_v5 = vadd.f32 1e-05, %v1600_v39  ;;  %v1996_v39 = vpack.c.bf16 %v1992_v16, %v1992_v16 }
 0x7fa   : > { %v1626_v14 = vmul.f32 %v3828_v34, %v1603_v11  ;;  %vm1632_vm1 = vweird.f32 %v3828_v34  ;;  %v1973_v11 = vpack.c.bf16 %v1969_v41, %v1969_v41 }
 0x7fb   : > { %3829 = vrsqrt.f32 %v1604_v5  ;;  %vm1633_vm3 = vmor %vm1631_vm2, %vm1632_vm1  ;;  %vm1641_vm5 = vweird.f32 %v1604_v5 }
 0x7fc   : > { %v1627_v48 = vmul.f32 %v3828_v34, %v1626_v14  ;;  %v1840_v14 = vpop.f32.mrf.mxu2 }
 0x7fe   : > { %v1628_v55 = vmul.f32 0.5, %v1627_v48  ;;  %v2119_v48 = vunpack.c.l.b16 %v1972_v37 }
 0x800   : > { %v1629_v54 = vsub.f32 1.5, %v1628_v55  ;;  %v2120_v55 = vunpack.c.l.b16 %v1973_v11 }
 0x801   : > { %v3830_v57 = vpop.eup %3829 }
 0x802   : > { %v1630_v19 = vmul.f32 %v3828_v34, %v1629_v54  ;;  %v1636_v63 = vmul.f32 %v3830_v57, %v1604_v5  ;;  %vm1642_vm4 = vweird.f32 %v3830_v57  ;;  %v1930_v5 = vpack.c.bf16 %v1839_v43, %v1839_v43 }
 0x803   : > { %vm1643_vm6 = vmor %vm1641_vm5, %vm1642_vm4 }
 0x804   : > { %v1637_v51 = vmul.f32 %v3830_v57, %v1636_v63  ;;  %v1634_v23 = vsel %vm1633_vm3, %v3828_v34, %v1630_v19  ;;  %v2253_v19 = vunpack.c.l.b16 %v1996_v39 }
 0x805   : > { %v1647_v2 = vmul.f32 %v1634_v23, %v1583_v27 }
 0x806   : > { %v1638_v49 = vmul.f32 0.5, %v1637_v51  ;;  %v2121_v51 = vpack.c.b16 %v2120_v55, %v2119_v48 }
 0x807   : > { %v1652_v61 = vmul.f32 %v4592_v1, %v1647_v2 }
 0x808   : > { %v1639_v58 = vsub.f32 1.5, %v1638_v49  ;;  %v2287_v49 = vunpack.c.l.b16 %v1930_v5  ;;  %2133 = vmatpush.bf16.msra.mxu3 %v2121_v51 }
 0x809   : > { %v4686_v20 = vadd.f32 %v4598_v0, %v1652_v61 }
 0x80a   : > { %v1640_v3 = vmul.f32 %v3830_v57, %v1639_v58 }
 0x80c   : > { %v1644_v36 = vsel %vm1643_vm6, %v3830_v57, %v1640_v3  ;;  %v2186_v57 = vunpack.c.l.b16 %v1989_v50 }
 0x80d   : > { %v1648_v60 = vmul.f32 %v1644_v36, %v1584_v7 }
 0x80f   : > { %v1653_v62 = vmul.f32 %v4592_v1, %v1648_v60 }
 0x811   : > { %v4689_v13 = vadd.f32 %v4598_v0, %v1653_v62 }
 0x813   : > { %v1660_v35 = vpack.c.bf16 %v4689_v13, %v4686_v20 }
 0x815   : > { %1740 = vmatmul.bf16.gmra.mxu1 %v1660_v35 }
 0x818   : > { %v2162_v27 = vpop.xlane.xlu1 %2161 }
 0x819   : > { %v2166_v44 = vsub.f32 %v2156_v28, %v2162_v27 }
 0x81b   : > { %v2168_v29 = vmul.f32 1.442695, %v2166_v44 }
 0x81d   : > { %3831 = vpow2.f32 %v2168_v29 }
 0x820   : > { %v2165_v26 = vpop.xlane.xlu2 %2164 }
 0x821   : > { %v2167_v7 = vsub.f32 %v2158_v46, %v2165_v26  ;;  %v1984_v46 = vmul.f32 %v4252_v45, %v4615_v10  ;;  %v1841_v10 = vadd.f32 %v1840_v14, %v4612_v56 }
 0x823   : > { %v4693_v24 = vpop.eup %3831  ;;  %v2170_v30 = vmul.f32 1.442695, %v2167_v7  ;;  %v1988_v12 = vpack.c.bf16 %v1984_v46, %v1984_v46  ;;  %v1931_v58 = vpack.c.bf16 %v1841_v10, %v1841_v10 }
 0x824   : > { %v2172_v1 = vsel %vm944_vm10, %v4693_v24, 0.0 }
 0x825   : > { %3833 = vpow2.f32 %v2170_v30  ;;  %2065 = vmatmul.bf16.vlgmr.msra.gmra.mxu1 %v2055_v8  ;;  %2173 = vadd.xlane.f32.xlu0 %v2172_v1  ;;  %v1993_v8 = vmul.f32 %v4264_v53, %v4621_v59  ;;  %v2185_v54 = vunpack.c.l.b16 %v1988_v12  ;;  %v2288_v2 = vunpack.c.l.b16 %v1931_v58 }
 0x827   : > { %v1997_v34 = vpack.c.bf16 %v1993_v8, %v1993_v8  ;;  %v2187_v59 = vpack.c.b16 %v2186_v57, %v2185_v54  ;;  %v4718_v3 = vpack.c.b16 %v2288_v2, %v2287_v49 }
 0x829   : > { %v2254_v63 = vunpack.c.l.b16 %v1997_v34  ;;  %2199 = vmatpush.bf16.msrb.mxu1 %v2187_v59  ;;  %2298 = vmatpush.bf16.xpose.msra.mxu0 %v4718_v3 }
 0x82b   : > { %v4700_v0 = vpop.eup %3833  ;;  %v2255_v23 = vpack.c.b16 %v2254_v63, %v2253_v19 }
 0x82c   : > { %v2175_v28 = vsel %vm944_vm10, %v4700_v0, 0.0 }
 0x82d   : > { %2176 = vadd.xlane.f32.xlu1 %v2175_v28  ;;  %2267 = vmatpush.bf16.msrb.mxu3 %v2255_v23 }
 0x82e   : > { %2341 = vmatpush.bf16.xpose.msra.mxu1 %v4718_v3 }
 0x831   : > { %2430 = vmatpush.bf16.xpose.msrb.mxu0 %v4718_v3 }
 0x892   : > { %v1741_v36 = vpop.f32.mrf.mxu1 }
 0x893   : > { %v1742_v56 = vadd.f32 %v1741_v36, %v4630_v25 }
 0x895   : > { %v1934_v60 = vmul.f32 0.35355338, %v1742_v56 }
 0x897   : > { %v1938_v62 = vmul.f32 %v4261_v52, %v1934_v60  ;;  %v1962_v27 = vmul.f32 %v4264_v53, %v1934_v60  ;;  %v1954_v48 = vmul.f32 %v4252_v45, %v1934_v60 }
 0x898   : > { %v2174_v44 = vpop.xlane.xlu0 %2173 }
 0x899   : > { %v1942_v26 = vpack.c.bf16 %v1938_v62, %v1938_v62  ;;  %v1966_v1 = vpack.c.bf16 %v1962_v27, %v1962_v27  ;;  %3835 = vrcp.f32 %v2174_v44  ;;  %v1958_v63 = vpack.c.bf16 %v1954_v48, %v1954_v48 }
 0x89a   : > { %v1743_v61 = vpop.f32.mrf.mxu1 }
 0x89b   : > { %v1744_v35 = vadd.f32 %v1743_v61, %v4630_v25  ;;  %v2281_v42 = vunpack.c.l.b16 %v1942_v26  ;;  %v4730_v16 = vunpack.c.l.b16 %v1966_v1 }
 0x89d   : > { %v1935_v29 = vmul.f32 0.35355338, %v1744_v35 }
 0x89f   : > { %v1939_v7 = vmul.f32 %v4261_v52, %v1935_v29  ;;  %v1963_v30 = vmul.f32 %v4264_v53, %v1935_v29  ;;  %v3836_v12 = vpop.eup %3835  ;;  %v1955_v34 = vmul.f32 %v4252_v45, %v1935_v29  ;;  %v1947_v10 = vmul.f32 %v4285_v15, %v1935_v29 }
 0x8a0   : > { %v2177_v28 = vpop.xlane.xlu1 %2176  ;;  %v2180_v39 = vmul.f32 %v3836_v12, %v4693_v24  ;;  %v1946_v24 = vmul.f32 %v4285_v15, %v1934_v60 }
 0x8a1   : > { %v1943_v47 = vpack.c.bf16 %v1939_v7, %v1939_v7  ;;  %v1967_v17 = vpack.c.bf16 %v1963_v30, %v1963_v30  ;;  %3837 = vrcp.f32 %v2177_v28  ;;  %v1959_v57 = vpack.c.bf16 %v1955_v34, %v1955_v34  ;;  %v4754_v30 = vld [vmem:[%s5011_s3 + $0x10] sm:$0xff] }
 0x8a2   : > { %v2066_v46 = vpop.f32.mrf.mxu1  ;;  %v1951_v59 = vpack.c.bf16 %v1947_v10, %v1947_v10  ;;  %v1950_v49 = vpack.c.bf16 %v1946_v24, %v1946_v24 }
 0x8a3   : > { %v2067_v41 = vadd.f32 %v2066_v46, %v4669_v40  ;;  %v2282_v25 = vunpack.c.l.b16 %v1943_v47  ;;  %v4732_v8 = vunpack.c.l.b16 %v1967_v17  ;;  %v2420_v51 = vunpack.c.l.b16 %v1959_v57  ;;  %v4761_v46 = vld [vmem:[%s5011_s3 + $0x18] sm:$0xff] }
 0x8a4   : > { %v2331_v58 = vunpack.c.l.b16 %v1951_v59  ;;  %v2330_v2 = vunpack.c.l.b16 %v1950_v49 }
 0x8a5   : > { %v2071_v43 = vsel %vm944_vm10, %v2067_v41, -inf  ;;  %v2283_v37 = vpack.c.b16 %v2282_v25, %v2281_v42  ;;  %v2489_v11 = vpack.c.b16 %v4732_v8, %v4730_v16 }
 0x8a6   : > { %2072 = vmax.xlane.f32.xlu2 %v2071_v43  ;;  %v2332_v36 = vpack.c.b16 %v2331_v58, %v2330_v2 }
 0x8a7   : > { %2299 = vmatmul.bf16.vlgmr.msra.gmra.mxu0 %v2283_v37  ;;  %v3838_v50 = vpop.eup %3837  ;;  %v4768_v37 = vadd.f32 %v4662_v32, %v4669_v40 }
 0x8a8   : > { %v2181_v5 = vmul.f32 %v3838_v50, %v4700_v0  ;;  %v2419_v0 = vunpack.c.l.b16 %v1958_v63  ;;  %v1923_v50 = vpop.f32.mrf.mxu3 }
 0x8a9   : > { %v2028_v12 = vsel %vm944_vm10, %v4768_v37, -inf  ;;  %v1924_v34 = vadd.f32 %v1923_v50, %v4610_v22 }
 0x8aa   : > { %v2068_v14 = vpop.f32.mrf.mxu1  ;;  %v2182_v55 = vpack.c.bf16 %v2181_v5, %v2180_v39  ;;  %v2421_v23 = vpack.c.b16 %v2420_v51, %v2419_v0 }
 0x8ab   : > { %v2069_v54 = vadd.f32 %v2068_v14, %v4676_v9  ;;  %v1986_v14 = vmul.f32 %v4252_v45, %v1924_v34  ;;  %v1978_v51 = vmul.f32 %v4285_v15, %v1924_v34 }
 0x8ac   : > { %3508 = vmatmul.msk.bf16.vlgmr.msrb.gmra.mxu1 %vm944_vm10, %v2182_v55 }
 0x8ad   : > { %v2074_v19 = vsel %vm944_vm10, %v2069_v54, -inf  ;;  %v1990_v57 = vpack.c.bf16 %v1986_v14, %v1986_v14 }
 0x8ae   : > { %2075 = vmax.xlane.f32.xlu0 %v2074_v19 }
 0x8af   : > { %v2462_v10 = vunpack.c.l.b16 %v1990_v57 }
 0x8b0   : > { %v1925_v39 = vpop.f32.mrf.mxu3 }
 0x8b1   : > { %v1926_v5 = vadd.f32 %v1925_v39, %v4610_v22 }
 0x8b3   : > { %v1987_v48 = vmul.f32 %v4252_v45, %v1926_v5  ;;  %v1979_v59 = vmul.f32 %v4285_v15, %v1926_v5  ;;  %v1982_v45 = vpack.c.bf16 %v1978_v51, %v1978_v51  ;;  %v4781_v15 = vadd.f32 %v4664_v38, %v4676_v9 }
 0x8b4   : > { %v1995_v50 = vmul.f32 %v4264_v53, %v1926_v5 }
 0x8b5   : > { %v1991_v19 = vpack.c.bf16 %v1987_v48, %v1987_v48  ;;  %v1983_v58 = vpack.c.bf16 %v1979_v59, %v1979_v59 }
 0x8b7   : > { %2431 = vmatmul.bf16.vlgmr.msrb.gmra.mxu0 %v2421_v23  ;;  %v2463_v24 = vunpack.c.l.b16 %v1991_v19 }
 0x8b9   : > { %v2464_v0 = vpack.c.b16 %v2463_v24, %v2462_v10 }
 0x8bb   : > { %2476 = vmatpush.bf16.msrb.mxu1 %v2464_v0 }
 0x8bc   : > { %2342 = vmatmul.bf16.vlgmr.msra.gmra.mxu1 %v2332_v36 }
 0x919   : > { %v2073_v56 = vpop.xlane.xlu2 %2072 }
 0x91a   : > { %v2077_v61 = vsub.f32 %v2067_v41, %v2073_v56 }
 0x91c   : > { %v2079_v62 = vmul.f32 1.442695, %v2077_v61 }
 0x91e   : > { %3839 = vpow2.f32 %v2079_v62  ;;  %v2373_v62 = vunpack.c.l.b16 %v1982_v45 }
 0x921   : > { %v2076_v60 = vpop.xlane.xlu0 %2075 }
 0x922   : > { %v2078_v26 = vsub.f32 %v2069_v54, %v2076_v60 }
 0x924   : > { %v3840_v35 = vpop.eup %3839  ;;  %v2081_v7 = vmul.f32 1.442695, %v2078_v26 }
 0x925   : > { %v2083_v27 = vsel %vm944_vm10, %v3840_v35, 0.0 }
 0x926   : > { %2084 = vadd.xlane.f32.xlu0 %v2083_v27  ;;  %3841 = vpow2.f32 %v2081_v7  ;;  %v2374_v27 = vunpack.c.l.b16 %v1983_v58 }
 0x929   : > { %v4747_v44 = vpop.f32.mrf.mxu1 }
 0x92c   : > { %v3842_v17 = vpop.eup %3841 }
 0x92d   : > { %v2086_v43 = vsel %vm944_vm10, %v3842_v17, 0.0 }
 0x931   : > { %v4749_v29 = vpop.f32.mrf.mxu1 }
 0x939   : > { %v2343_v1 = vpop.f32.mrf.mxu1 }
 0x93a   : > { %v2344_v28 = vadd.f32 %v4754_v30, %v2343_v1 }
 0x93c   : > { %v2348_v47 = vsel %vm944_vm10, %v2344_v28, -inf }
 0x93d   : > { %2349 = vmax.xlane.f32.xlu1 %v2348_v47 }
 0x941   : > { %v2345_v41 = vpop.f32.mrf.mxu1 }
 0x942   : > { %v2346_v42 = vadd.f32 %v4761_v46, %v2345_v41 }
 0x944   : > { %v2351_v25 = vsel %vm944_vm10, %v2346_v42, -inf }
 0x945   : > { %2352 = vmax.xlane.f32.xlu2 %v2351_v25  ;;  %2087 = vadd.xlane.f32.xlu1 %v2086_v43  ;;  %v2300_v25 = vpop.f32.mrf.mxu0 }
 0x946   : > { %v2301_v43 = vadd.f32 %v4754_v30, %v2300_v25 }
 0x948   : > { %v2305_v38 = vsel %vm944_vm10, %v2301_v43, -inf }
 0x94d   : > { %2029 = vmax.xlane.f32.xlu1 %v2028_v12  ;;  %v1971_v12 = vmul.f32 %v4261_v52, %v1926_v5  ;;  %v2302_v59 = vpop.f32.mrf.mxu0 }
 0x94f   : > { %v1975_v48 = vpack.c.bf16 %v1971_v12, %v1971_v12 }
 0x951   : > { %v4799_v57 = vunpack.c.l.b16 %v1975_v48 }
 0x999   : > { %v2085_v63 = vpop.xlane.xlu0 %2084 }
 0x9b0   : > { %v2350_v55 = vpop.xlane.xlu1 %2349 }
 0x9b1   : > { %v2354_v54 = vsub.f32 %v2344_v28, %v2350_v55  ;;  %v2375_v28 = vpack.c.b16 %v2374_v27, %v2373_v62  ;;  %v1999_v55 = vpack.c.bf16 %v1995_v50, %v1995_v50 }
 0x9b3   : > { %v2356_v32 = vmul.f32 1.442695, %v2354_v54  ;;  %v4803_v31 = vunpack.c.l.b16 %v1999_v55 }
 0x9b5   : > { %3843 = vpow2.f32 %v2356_v32 }
 0x9b6   : > { %3845 = vrcp.f32 %v2085_v63 }
 0x9b8   : > { %v2353_v22 = vpop.xlane.xlu2 %2352  ;;  %v2088_v49 = vpop.xlane.xlu1 %2087 }
 0x9b9   : > { %v2355_v23 = vsub.f32 %v2346_v42, %v2353_v22  ;;  %3847 = vrcp.f32 %v2088_v49  ;;  %v2031_v42 = vsel %vm944_vm10, %v4781_v15, -inf }
 0x9bb   : > { %v3844_v2 = vpop.eup %3843  ;;  %v2358_v36 = vmul.f32 1.442695, %v2355_v23 }
 0x9bc   : > { %v2360_v56 = vsel %vm944_vm10, %v3844_v2, 0.0  ;;  %v3846_v61 = vpop.eup %3845 }
 0x9bd   : > { %3849 = vpow2.f32 %v2358_v36  ;;  %2361 = vadd.xlane.f32.xlu2 %v2360_v56  ;;  %v2091_v26 = vmul.f32 %v3846_v61, %v3840_v35  ;;  %v1970_v35 = vmul.f32 %v4261_v52, %v1924_v34  ;;  %v2432_v61 = vpop.f32.mrf.mxu0 }
 0x9bf   : > { %v3848_v60 = vpop.eup %3847  ;;  %v1974_v39 = vpack.c.bf16 %v1970_v35, %v1970_v35 }
 0x9c0   : > { %v2092_v7 = vmul.f32 %v3848_v60, %v3842_v17  ;;  %v1994_v17 = vmul.f32 %v4264_v53, %v1924_v34  ;;  %v2030_v51 = vpop.xlane.xlu1 %2029 }
 0x9c1   : > { %v4797_v54 = vunpack.c.l.b16 %v1974_v39  ;;  %v2034_v49 = vsub.f32 %v4768_v37, %v2030_v51 }
 0x9c2   : > { %v2093_v1 = vpack.c.bf16 %v2092_v7, %v2091_v26  ;;  %v1998_v14 = vpack.c.bf16 %v1994_v17, %v1994_v17 }
 0x9c3   : > { %v3850_v47 = vpop.eup %3849  ;;  %v2036_v58 = vmul.f32 1.442695, %v2034_v49 }
 0x9c4   : > { %3506 = vmatmul.msk.bf16.vlgmr.msrb.gmra.mxu2 %vm944_vm10, %v2093_v1  ;;  %v2363_v41 = vsel %vm944_vm10, %v3850_v47, 0.0  ;;  %v4801_v33 = vunpack.c.l.b16 %v1998_v14 }
 0x9c5   : > { %2364 = vadd.xlane.f32.xlu0 %v2363_v41  ;;  %2032 = vmax.xlane.f32.xlu2 %v2031_v42  ;;  %v2434_v27 = vpop.f32.mrf.mxu0 }
 0x9c6   : > { %2387 = vmatpush.bf16.msrb.mxu2 %v2375_v28  ;;  %v2532_v52 = vpack.c.b16 %v4803_v31, %v4801_v33  ;;  %v3695_v33 = vld [vmem:[%s4121_s26 + $0x1e0] sm:$0xff] }
 0x9cd   : > { %2306 = vmax.xlane.f32.xlu2 %v2305_v38 }
 0x9d4   : > { %2222 = vmatmul.bf16.vlgmr.msra.gmra.mxu2 %v2212_v6  ;;  %v2398_v6 = vpack.c.b16 %v4799_v57, %v4797_v54 }
 0x9d5   : > { %2498 = vmatpush.bf16.xpose.msra.mxu2 %v4718_v3 }
 0xa30   : > { %v2362_v3 = vpop.xlane.xlu2 %2361 }
 0xa31   : > { %3851 = vrcp.f32 %v2362_v3 }
 0xa37   : > { %v3852_v34 = vpop.eup %3851 }
 0xa38   : > { %v2365_v53 = vpop.xlane.xlu0 %2364  ;;  %v2368_v19 = vmul.f32 %v3852_v34, %v3844_v2  ;;  %v2033_v45 = vpop.xlane.xlu2 %2032  ;;  %v2303_v2 = vadd.f32 %v4761_v46, %v2302_v59 }
 0xa39   : > { %3853 = vrcp.f32 %v2365_v53  ;;  %v2035_v41 = vsub.f32 %v4781_v15, %v2033_v45 }
 0xa3a   : > { %3855 = vpow2.f32 %v2036_v58  ;;  %v2308_v8 = vsel %vm944_vm10, %v2303_v2, -inf }
 0xa3b   : > { %v2038_v25 = vmul.f32 1.442695, %v2035_v41 }
 0xa3f   : > { %v3854_v5 = vpop.eup %3853 }
 0xa40   : > { %v2369_v32 = vmul.f32 %v3854_v5, %v3850_v47 }
 0xa42   : > { %v2370_v63 = vpack.c.bf16 %v2369_v32, %v2368_v19  ;;  %v2433_v32 = vadd.f32 %v4754_v30, %v2432_v61 }
 0xa44   : > { %3512 = vmatmul.msk.bf16.vlgmr.msrb.gmra.mxu2 %vm944_vm10, %v2370_v63  ;;  %v2437_v51 = vsel %vm944_vm10, %v2433_v32, -inf }
 0xa47   : > { %v4810_v10 = vpop.f32.mrf.mxu2 }
 0xa4f   : > { %v4812_v24 = vpop.f32.mrf.mxu2 }
 0xa54   : > { %2499 = vmatmul.bf16.vlgmr.msra.gmra.mxu2 %v2489_v11  ;;  %v4824_v11 = vpop.eup %3855 }
 0xa55   : > { %v2040_v62 = vsel %vm944_vm10, %v4824_v11, 0.0 }
 0xa57   : > { %v2223_v0 = vpop.f32.mrf.mxu2 }
 0xa58   : > { %v2224_v22 = vadd.f32 %v2223_v0, %v4669_v40  ;;  %v2307_v40 = vpop.xlane.xlu2 %2306 }
 0xa59   : > { %v2311_v37 = vsub.f32 %v2301_v43, %v2307_v40 }
 0xa5a   : > { %v2228_v23 = vsel %vm944_vm10, %v2224_v22, -inf }
 0xa5b   : > { %2229 = vmax.xlane.f32.xlu0 %v2228_v23  ;;  %v2313_v60 = vmul.f32 1.442695, %v2311_v37 }
 0xa5d   : > { %3857 = vpow2.f32 %v2313_v60 }
 0xa5e   : > { %3859 = vpow2.f32 %v2038_v25 }
 0xa5f   : > { %v2225_v36 = vpop.f32.mrf.mxu2 }
 0xa60   : > { %v2226_v56 = vadd.f32 %v2225_v36, %v4676_v9  ;;  %v2435_v9 = vadd.f32 %v4761_v46, %v2434_v27 }
 0xa62   : > { %v2231_v16 = vsel %vm944_vm10, %v2226_v56, -inf  ;;  %v2440_v26 = vsel %vm944_vm10, %v2435_v9, -inf }
 0xa63   : > { %2232 = vmax.xlane.f32.xlu1 %v2231_v16  ;;  %2309 = vmax.xlane.f32.xlu0 %v2308_v8  ;;  %v4830_v7 = vpop.eup %3857 }
 0xa64   : > { %v2317_v1 = vsel %vm944_vm10, %v4830_v7, 0.0  ;;  %v3860_v14 = vpop.eup %3859 }
 0xa65   : > { %v2043_v34 = vsel %vm944_vm10, %v3860_v14, 0.0 }
 0xa6b   : > { %2041 = vadd.xlane.f32.xlu0 %v2040_v62 }
 0xa73   : > { %2441 = vmax.xlane.f32.xlu0 %v2440_v26 }
 0xa7b   : > { %2318 = vadd.xlane.f32.xlu0 %v2317_v1 }
 0xac7   : > { %v4834_v28 = vpop.f32.mrf.mxu2 }
 0xace   : > { %v2230_v42 = vpop.xlane.xlu0 %2229 }
 0xacf   : > { %v4836_v47 = vpop.f32.mrf.mxu2  ;;  %v2234_v35 = vsub.f32 %v2224_v22, %v2230_v42 }
 0xad1   : > { %v2236_v12 = vmul.f32 1.442695, %v2234_v35 }
 0xad3   : > { %3861 = vpow2.f32 %v2236_v12 }
 0xad6   : > { %v2310_v50 = vpop.xlane.xlu0 %2309  ;;  %v2233_v39 = vpop.xlane.xlu1 %2232 }
 0xad7   : > { %v2500_v43 = vpop.f32.mrf.mxu2  ;;  %v2312_v55 = vsub.f32 %v2303_v2, %v2310_v50  ;;  %v2235_v15 = vsub.f32 %v2226_v56, %v2233_v39 }
 0xad8   : > { %v2501_v38 = vadd.f32 %v4754_v30, %v2500_v43 }
 0xad9   : > { %v2315_v5 = vmul.f32 1.442695, %v2312_v55  ;;  %v2238_v19 = vmul.f32 1.442695, %v2235_v15  ;;  %v3862_v63 = vpop.eup %3861 }
 0xada   : > { %v2505_v17 = vsel %vm944_vm10, %v2501_v38, -inf  ;;  %v2240_v59 = vsel %vm944_vm10, %v3862_v63, 0.0 }
 0xadb   : > { %2506 = vmax.xlane.f32.xlu1 %v2505_v17  ;;  %3863 = vpow2.f32 %v2315_v5 }
 0xadc   : > { %3865 = vpow2.f32 %v2238_v19 }
 0xade   : > { %v2042_v23 = vpop.xlane.xlu0 %2041 }
 0xadf   : > { %v2502_v48 = vpop.f32.mrf.mxu2 }
 0xae0   : > { %v2503_v3 = vadd.f32 %v4761_v46, %v2502_v48 }
 0xae1   : > { %v3864_v46 = vpop.eup %3863 }
 0xae2   : > { %v2508_v53 = vsel %vm944_vm10, %v2503_v3, -inf  ;;  %v3866_v0 = vpop.eup %3865  ;;  %v2320_v22 = vsel %vm944_vm10, %v3864_v46, 0.0 }
 0xae3   : > { %2509 = vmax.xlane.f32.xlu2 %v2508_v53  ;;  %2044 = vadd.xlane.f32.xlu1 %v2043_v34  ;;  %v2243_v49 = vsel %vm944_vm10, %v3866_v0, 0.0 }
 0xae6   : > { %v2442_v30 = vpop.xlane.xlu0 %2441 }
 0xae7   : > { %v2444_v36 = vsub.f32 %v2435_v9, %v2442_v30 }
 0xae9   : > { %v2447_v56 = vmul.f32 1.442695, %v2444_v36 }
 0xaeb   : > { %2438 = vmax.xlane.f32.xlu2 %v2437_v51  ;;  %2241 = vadd.xlane.f32.xlu1 %v2240_v59  ;;  %v3696_v51 = vld [vmem:[%s4121_s26 + $0x1e8] sm:$0xff] }
 0xaf3   : > { %2321 = vadd.xlane.f32.xlu1 %v2320_v22  ;;  %2244 = vadd.xlane.f32.xlu2 %v2243_v49 }
 0xb4e   : > { %v2507_v45 = vpop.xlane.xlu1 %2506 }
 0xb4f   : > { %v2511_v58 = vsub.f32 %v2501_v38, %v2507_v45 }
 0xb51   : > { %v2513_v2 = vmul.f32 1.442695, %v2511_v58  ;;  %v3691_v58 = vld [vmem:[%s4121_s26 + $0x1c0] sm:$0xff] }
 0xb53   : > { %3867 = vpow2.f32 %v2513_v2 }
 0xb54   : > { %3869 = vrcp.f32 %v2042_v23 }
 0xb56   : > { %v2510_v61 = vpop.xlane.xlu2 %2509  ;;  %v2045_v16 = vpop.xlane.xlu1 %2044 }
 0xb57   : > { %v2512_v8 = vsub.f32 %v2503_v3, %v2510_v61  ;;  %3871 = vrcp.f32 %v2045_v16 }
 0xb58   : > { %3873 = vpow2.f32 %v2447_v56 }
 0xb59   : > { %v4849_v40 = vpop.eup %3867  ;;  %v2515_v37 = vmul.f32 1.442695, %v2512_v8 }
 0xb5a   : > { %v2517_v62 = vsel %vm944_vm10, %v4849_v40, 0.0  ;;  %v3870_v27 = vpop.eup %3869 }
 0xb5b   : > { %3875 = vpow2.f32 %v2515_v37  ;;  %2518 = vadd.xlane.f32.xlu2 %v2517_v62  ;;  %v2048_v9 = vmul.f32 %v3870_v27, %v4824_v11 }
 0xb5d   : > { %v3872_v60 = vpop.eup %3871 }
 0xb5e   : > { %v2049_v26 = vmul.f32 %v3872_v60, %v3860_v14  ;;  %v2439_v1 = vpop.xlane.xlu2 %2438  ;;  %v4854_v42 = vpop.eup %3873 }
 0xb5f   : > { %v2443_v41 = vsub.f32 %v2433_v32, %v2439_v1  ;;  %v2242_v35 = vpop.xlane.xlu1 %2241  ;;  %v2452_v11 = vsel %vm944_vm10, %v4854_v42, 0.0  ;;  %v3698_v32 = vld [vmem:[%s4121_s26 + $0x1f8] sm:$0xff] }
 0xb60   : > { %v2050_v25 = vpack.c.bf16 %v2049_v26, %v2048_v9  ;;  %2621 = vmatpush.bf16.msra.mxu0 %v3698_v32 }
 0xb61   : > { %v3876_v43 = vpop.eup %3875  ;;  %v2445_v38 = vmul.f32 1.442695, %v2443_v41 }
 0xb62   : > { %3507 = vmatmul.msk.bf16.vlgmr.msra.gmra.mxu3 %vm944_vm10, %v2050_v25  ;;  %v2520_v17 = vsel %vm944_vm10, %v3876_v43, 0.0 }
 0xb63   : > { %3877 = vpow2.f32 %v2445_v38  ;;  %2410 = vmatpush.bf16.msra.mxu3 %v2398_v6  ;;  %2521 = vadd.xlane.f32.xlu0 %v2520_v17  ;;  %v2319_v6 = vpop.xlane.xlu0 %2318 }
 0xb64   : > { %2453 = vadd.xlane.f32.xlu2 %v2452_v11  ;;  %3879 = vrcp.f32 %v2242_v35 }
 0xb66   : > { %v2245_v12 = vpop.xlane.xlu2 %2244 }
 0xb67   : > { %3881 = vrcp.f32 %v2245_v12  ;;  %v2322_v57 = vpop.xlane.xlu1 %2321 }
 0xb68   : > { %3883 = vrcp.f32 %v2322_v57 }
 0xb69   : > { %v3878_v50 = vpop.eup %3877  ;;  %3885 = vrcp.f32 %v2319_v6 }
 0xb6a   : > { %v2449_v39 = vsel %vm944_vm10, %v3878_v50, 0.0  ;;  %v3880_v14 = vpop.eup %3879 }
 0xb6b   : > { %2450 = vadd.xlane.f32.xlu1 %v2449_v39  ;;  %v2248_v55 = vmul.f32 %v3880_v14, %v3862_v63  ;;  %v3697_v63 = vld [vmem:[%s4121_s26 + $0x1f0] sm:$0xff] }
 0xb6c   : > { %2622 = vmatpush.bf16.msra.mxu0 %v3697_v63 }
 0xb6d   : > { %v3882_v48 = vpop.eup %3881 }
 0xb6e   : > { %v2249_v3 = vmul.f32 %v3882_v48, %v3866_v0  ;;  %v3884_v15 = vpop.eup %3883  ;;  %v3914_v48 = vld [vmem:[%s4136_s16] sm:$0xff] }
 0xb6f   : > { %v3886_v53 = vpop.eup %3885  ;;  %v2326_v34 = vmul.f32 %v3884_v15, %v3864_v46  ;;  %v3692_v46 = vld [vmem:[%s4121_s26 + $0x1c8] sm:$0xff] }
 0xb70   : > { %v2250_v54 = vpack.c.bf16 %v2249_v3, %v2248_v55  ;;  %v2325_v5 = vmul.f32 %v3886_v53, %v4830_v7  ;;  %2623 = vmatpush.bf16.msra.mxu0 %v3696_v51  ;;  %v3693_v7 = vld [vmem:[%s4121_s26 + $0x1d0] sm:$0xff]  ;;  %v2572_v55 = vperm.slane %v3914_v48, 7 }
 0xb72   : > { %3509 = vmatmul.msk.bf16.vlgmr.msrb.gmra.mxu3 %vm944_vm10, %v2250_v54  ;;  %v2327_v19 = vpack.c.bf16 %v2326_v34, %v2325_v5 }
 0xb73   : > { %2544 = vmatpush.bf16.msrb.mxu3 %v2532_v52  ;;  %v3694_v52 = vld [vmem:[%s4121_s26 + $0x1d8] sm:$0xff] }
 0xb74   : > { %2624 = vmatpush.bf16.msra.mxu0 %v3695_v33 }
 0xb78   : > { %2625 = vmatpush.bf16.msra.mxu0 %v3694_v52 }
 0xb7c   : > { %2626 = vmatpush.bf16.msra.mxu0 %v3693_v7 }
 0xb80   : > { %2627 = vmatpush.bf16.msra.mxu0 %v3692_v46 }
 0xb82   : > { %3513 = vmatmul.msk.bf16.vlgmr.msra.gmra.mxu3 %vm944_vm10, %v2327_v19 }
 0xb84   : > { %2628 = vmatpush.bf16.msra.mxu0 %v3691_v58  ;;  %v3702_v58 = vld [vmem:[%s4152_s4 + $0x18] sm:$0xff] }
 0xbce   : > { %v2519_v31 = vpop.xlane.xlu2 %2518 }
 0xbcf   : > { %3887 = vrcp.f32 %v2519_v31 }
 0xbd5   : > { %v3888_v22 = vpop.eup %3887 }
 0xbd6   : > { %v2522_v59 = vpop.xlane.xlu0 %2521  ;;  %v2525_v23 = vmul.f32 %v3888_v22, %v4849_v40 }
 0xbd7   : > { %3889 = vrcp.f32 %v2522_v59  ;;  %v2454_v0 = vpop.xlane.xlu2 %2453 }
 0xbd8   : > { %3891 = vrcp.f32 %v2454_v0 }
 0xbdd   : > { %v3890_v49 = vpop.eup %3889 }
 0xbde   : > { %v2526_v45 = vmul.f32 %v3890_v49, %v3876_v43  ;;  %v2451_v30 = vpop.xlane.xlu1 %2450  ;;  %v3892_v36 = vpop.eup %3891  ;;  %v3706_v49 = vld [vmem:[%s4152_s4 + $0x38] sm:$0xff] }
 0xbdf   : > { %3893 = vrcp.f32 %v2451_v30  ;;  %v2458_v16 = vmul.f32 %v3892_v36, %v4854_v42  ;;  %2812 = vmatpush.bf16.msra.mxu1 %v3706_v49  ;;  %v3703_v30 = vld [vmem:[%s4152_s4 + $0x20] sm:$0xff] }
 0xbe0   : > { %v2527_v2 = vpack.c.bf16 %v2526_v45, %v2525_v23  ;;  %v3705_v23 = vld [vmem:[%s4152_s4 + $0x30] sm:$0xff]  ;;  %v3704_v45 = vld [vmem:[%s4152_s4 + $0x28] sm:$0xff] }
 0xbe2   : > { %3515 = vmatmul.msk.bf16.vlgmr.msrb.gmra.mxu3 %vm944_vm10, %v2527_v2 }
 0xbe3   : > { %2813 = vmatpush.bf16.msra.mxu1 %v3705_v23 }
 0xbe5   : > { %v3894_v56 = vpop.eup %3893  ;;  %v2135_v61 = vpop.f32.mrf.mxu3 }
 0xbe6   : > { %v2457_v8 = vmul.f32 %v3894_v56, %v3878_v50  ;;  %v2136_v40 = vadd.f32 %v2135_v61, %v4810_v10  ;;  %v3701_v61 = vld [vmem:[%s4152_s4 + $0x10] sm:$0xff] }
 0xbe7   : > { %2814 = vmatpush.bf16.msra.mxu1 %v3704_v45 }
 0xbe8   : > { %v2459_v37 = vpack.c.bf16 %v2458_v16, %v2457_v8  ;;  %v2206_v9 = vadd.f32 %v4747_v44, %v2136_v40 }
 0xbea   : > { %3514 = vmatmul.msk.bf16.vlgmr.msrb.gmra.mxu1 %vm944_vm10, %v2459_v37  ;;  %v3700_v37 = vld [vmem:[%s4152_s4 + $0x8] sm:$0xff] }
 0xbeb   : > { %2815 = vmatpush.bf16.msra.mxu1 %v3703_v30  ;;  %v3709_v30 = vld [vmem:[%s4161_s17 + $0x10] sm:$0xff] }
 0xbed   : > { %v2137_v62 = vpop.f32.mrf.mxu3 }
 0xbee   : > { %v2138_v60 = vadd.f32 %v2137_v62, %v4812_v24 }
 0xbef   : > { %2816 = vmatpush.bf16.msra.mxu1 %v3702_v58 }
 0xbf0   : > { %v2207_v26 = vadd.f32 %v4749_v29, %v2138_v60 }
 0xbf3   : > { %2817 = vmatpush.bf16.msra.mxu1 %v3701_v61 }
 0xbf5   : > { %v2269_v27 = vpop.f32.mrf.mxu3 }
 0xbf6   : > { %v2274_v41 = vadd.f32 %v2269_v27, %v2206_v9  ;;  %v3699_v9 = vld [vmem:[%s4152_s4] sm:$0xff] }
 0xbf7   : > { %2818 = vmatpush.bf16.msra.mxu1 %v3700_v37 }
 0xbfb   : > { %2819 = vmatpush.bf16.msra.mxu1 %v3699_v9 }
 0xbfd   : > { %v2271_v1 = vpop.f32.mrf.mxu3 }
 0xbfe   : > { %v2275_v25 = vadd.f32 %v2271_v1, %v2207_v26 }
 0xc00   : > { %v2553_v43 = vpack.c.bf16 %v2275_v25, %v2274_v41 }
 0xc02   : > { %2629 = vmatmul.bf16.vlgmr.msra.gmra.mxu0 %v2553_v43 }
 0xc05   : > { %v2412_v42 = vpop.f32.mrf.mxu3 }
 0xc06   : > { %v2413_v11 = vadd.f32 %v2412_v42, %v4834_v28 }
 0xc0d   : > { %v2414_v38 = vpop.f32.mrf.mxu3 }
 0xc0e   : > { %v2415_v10 = vadd.f32 %v2414_v38, %v4836_v47 }
 0xc65   : > { %v2546_v35 = vpop.f32.mrf.mxu3 }
 0xc67   : > { %v2478_v17 = vpop.f32.mrf.mxu1 }
 0xc68   : > { %v2483_v12 = vadd.f32 %v2478_v17, %v2413_v11 }
 0xc6a   : > { %v2551_v39 = vadd.f32 %v2546_v35, %v2483_v12 }
 0xc6d   : > { %v2548_v44 = vpop.f32.mrf.mxu3 }
 0xc6f   : > { %v2480_v24 = vpop.f32.mrf.mxu1 }
 0xc70   : > { %v2484_v50 = vadd.f32 %v2480_v24, %v2415_v10 }
 0xc72   : > { %v2552_v29 = vadd.f32 %v2548_v44, %v2484_v50 }
 0xc74   : > { %v2554_v14 = vpack.c.bf16 %v2552_v29, %v2551_v39 }
 0xc76   : > { %2634 = vmatmul.bf16.gmra.mxu0 %v2554_v14 }
 0xc7f   : > { %v2630_v3 = vpop.f32.mrf.mxu0 }
 0xc80   : > { %v2631_v54 = vadd.f32 %v2630_v3, %v2572_v55  ;;  %v4927_v3 = vld [vmem:[%s4141_s30] sm:$0x7] }
 0xc82   : > { %v2640_v57 = vadd.f32 %v2631_v54, %v4602_v21  ;;  %v2732_v54 = vperm.slane %v4927_v3, 1 }
 0xc84   : > { %v2644_v6 = vmul.f32 %v4542_v4, %v2640_v57 }
 0xc86   : > { %2648 = vadd.xlane.f32.xlu0 %v2644_v6 }
 0xc87   : > { %v2632_v28 = vpop.f32.mrf.mxu0 }
 0xc88   : > { %v2633_v15 = vadd.f32 %v2632_v28, %v2572_v55 }
 0xc8a   : > { %v2641_v47 = vadd.f32 %v2633_v15, %v4605_v18 }
 0xc8c   : > { %v2645_v53 = vmul.f32 %v4542_v4, %v2641_v47  ;;  %v4932_v47 = vld [vmem:[%s4146_s19] sm:$0x7] }
 0xc8e   : > { %2650 = vadd.xlane.f32.xlu1 %v2645_v53 }
 0xcf3   : > { %v2635_v34 = vpop.f32.mrf.mxu0 }
 0xcf4   : > { %v2636_v5 = vadd.f32 %v2635_v34, %v2572_v55 }
 0xcf6   : > { %v2642_v19 = vadd.f32 %v2636_v5, %v4686_v20 }
 0xcf8   : > { %v2646_v32 = vmul.f32 %v4542_v4, %v2642_v19 }
 0xcf9   : > { %v2649_v63 = vpop.xlane.xlu0 %2648 }
 0xcfa   : > { %v2656_v51 = vmul.f32 0.03125, %v2649_v63  ;;  %2652 = vadd.xlane.f32.xlu2 %v2646_v32  ;;  %v3714_v63 = vld [vmem:[%s4161_s17 + $0x38] sm:$0xff] }
 0xcfb   : > { %v2637_v21 = vpop.f32.mrf.mxu0  ;;  %2905 = vmatpush.bf16.msrb.mxu2 %v3714_v63 }
 0xcfc   : > { %v2660_v33 = vsub.f32 %v2644_v6, %v2656_v51  ;;  %v2638_v31 = vadd.f32 %v2637_v21, %v2572_v55  ;;  %v3713_v51 = vld [vmem:[%s4161_s17 + $0x30] sm:$0xff] }
 0xcfe   : > { %v2643_v52 = vadd.f32 %v2638_v31, %v4689_v13  ;;  %v4897_v18 = vmul.f32 %v4542_v4, %v2660_v33 }
 0xcff   : > { %2906 = vmatpush.bf16.msrb.mxu2 %v3713_v51 }
 0xd00   : > { %v2668_v59 = vmul.f32 %v4897_v18, %v4897_v18  ;;  %v2647_v20 = vmul.f32 %v4542_v4, %v2643_v52  ;;  %v3712_v52 = vld [vmem:[%s4161_s17 + $0x28] sm:$0xff] }
 0xd01   : > { %v2651_v7 = vpop.xlane.xlu1 %2650 }
 0xd02   : > { %v2657_v46 = vmul.f32 0.03125, %v2651_v7  ;;  %2672 = vadd.xlane.f32.xlu1 %v2668_v59  ;;  %2654 = vadd.xlane.f32.xlu0 %v2647_v20 }
 0xd03   : > { %2907 = vmatpush.bf16.msrb.mxu2 %v3712_v52 }
 0xd04   : > { %v2661_v0 = vsub.f32 %v2645_v53, %v2657_v46  ;;  %v2737_v53 = vperm.slane %v4932_v47, 1 }
 0xd06   : > { %v4903_v22 = vmul.f32 %v4542_v4, %v2661_v0 }
 0xd08   : > { %v2669_v13 = vmul.f32 %v4903_v22, %v4903_v22 }
 0xd0a   : > { %2674 = vadd.xlane.f32.xlu2 %v2669_v13  ;;  %v3710_v13 = vld [vmem:[%s4161_s17 + $0x18] sm:$0xff] }
 0xd6d   : > { %v2653_v2 = vpop.xlane.xlu2 %2652 }
 0xd6e   : > { %v2658_v36 = vmul.f32 0.03125, %v2653_v2 }
 0xd70   : > { %v2662_v56 = vsub.f32 %v2646_v32, %v2658_v36 }
 0xd72   : > { %v4914_v16 = vmul.f32 %v4542_v4, %v2662_v56  ;;  %v3708_v56 = vld [vmem:[%s4161_s17 + $0x8] sm:$0xff] }
 0xd74   : > { %v2670_v8 = vmul.f32 %v4914_v16, %v4914_v16 }
 0xd75   : > { %v2655_v62 = vpop.xlane.xlu0 %2654  ;;  %v2673_v27 = vpop.xlane.xlu1 %2672 }
 0xd76   : > { %v2659_v40 = vmul.f32 0.03125, %v2655_v62  ;;  %v2680_v60 = vmul.f32 0.03125, %v2673_v27  ;;  %2676 = vadd.xlane.f32.xlu0 %v2670_v8  ;;  %v3707_v27 = vld [vmem:[%s4161_s17] sm:$0xff] }
 0xd78   : > { %v2663_v26 = vsub.f32 %v2647_v20, %v2659_v40  ;;  %v2684_v1 = vadd.f32 1e-05, %v2680_v60  ;;  %v3711_v20 = vld [vmem:[%s4161_s17 + $0x20] sm:$0xff] }
 0xd79   : > { %2908 = vmatpush.bf16.msrb.mxu2 %v3711_v20 }
 0xd7a   : > { %3895 = vrsqrt.f32 %v2684_v1  ;;  %v4921_v41 = vmul.f32 %v4542_v4, %v2663_v26  ;;  %vm2694_vm8 = vweird.f32 %v2684_v1 }
 0xd7c   : > { %v2671_v25 = vmul.f32 %v4921_v41, %v4921_v41 }
 0xd7d   : > { %v2675_v43 = vpop.xlane.xlu2 %2674  ;;  %2909 = vmatpush.bf16.msrb.mxu2 %v3710_v13 }
 0xd7e   : > { %v2681_v42 = vmul.f32 0.03125, %v2675_v43  ;;  %2678 = vadd.xlane.f32.xlu1 %v2671_v25 }
 0xd80   : > { %v3896_v38 = vpop.eup %3895  ;;  %v2685_v35 = vadd.f32 1e-05, %v2681_v42 }
 0xd81   : > { %v2689_v17 = vmul.f32 %v3896_v38, %v2684_v1  ;;  %vm2695_vm7 = vweird.f32 %v3896_v38  ;;  %2910 = vmatpush.bf16.msrb.mxu2 %v3709_v30 }
 0xd82   : > { %3897 = vrsqrt.f32 %v2685_v35  ;;  %vm2696_vm9 = vmor %vm2694_vm8, %vm2695_vm7  ;;  %vm2704_vm11 = vweird.f32 %v2685_v35 }
 0xd83   : > { %v2690_v11 = vmul.f32 %v3896_v38, %v2689_v17 }
 0xd85   : > { %v2691_v10 = vmul.f32 0.5, %v2690_v11  ;;  %2911 = vmatpush.bf16.msrb.mxu2 %v3708_v56 }
 0xd87   : > { %v2692_v12 = vsub.f32 1.5, %v2691_v10 }
 0xd88   : > { %v3898_v24 = vpop.eup %3897 }
 0xd89   : > { %v2693_v50 = vmul.f32 %v3896_v38, %v2692_v12  ;;  %v2699_v44 = vmul.f32 %v3898_v24, %v2685_v35  ;;  %vm2705_vm10 = vweird.f32 %v3898_v24  ;;  %2912 = vmatpush.bf16.msrb.mxu2 %v3707_v27 }
 0xd8a   : > { %vm2706_vm12 = vmor %vm2704_vm11, %vm2705_vm10 }
 0xd8b   : > { %v2700_v39 = vmul.f32 %v3898_v24, %v2699_v44  ;;  %v2697_v29 = vsel %vm2696_vm9, %v3896_v38, %v2693_v50 }
 0xd8c   : > { %v2728_v55 = vmul.f32 %v2697_v29, %v4897_v18 }
 0xd8d   : > { %v2701_v14 = vmul.f32 0.5, %v2700_v39 }
 0xd8e   : > { %v2733_v15 = vmul.f32 %v2732_v54, %v2728_v55  ;;  %v3758_v55 = vld [vmem:[%s539_s21] ss:$0 sm:$0xff] }
 0xd8f   : > { %v2702_v48 = vsub.f32 1.5, %v2701_v14 }
 0xd90   : > { %v4935_v5 = vadd.f32 %v2737_v53, %v2733_v15 }
 0xd91   : > { %v2703_v57 = vmul.f32 %v3898_v24, %v2702_v48 }
 0xd93   : > { %v2707_v6 = vsel %vm2706_vm12, %v3898_v24, %v2703_v57 }
 0xd94   : > { %v2729_v28 = vmul.f32 %v2707_v6, %v4903_v22 }
 0xd96   : > { %v2734_v34 = vmul.f32 %v2732_v54, %v2729_v28 }
 0xd98   : > { %v4937_v19 = vadd.f32 %v2737_v53, %v2734_v34 }
 0xd9a   : > { %v2742_v32 = vpack.c.bf16 %v4937_v19, %v4935_v5 }
 0xd9c   : > { %2820 = vmatmul.bf16.vlgmr.msra.gmra.mxu1 %v2742_v32 }
 0xde9   : > { %v2677_v21 = vpop.xlane.xlu0 %2676 }
 0xdea   : > { %v2682_v33 = vmul.f32 0.03125, %v2677_v21 }
 0xdec   : > { %v2686_v31 = vadd.f32 1e-05, %v2682_v33 }
 0xdee   : > { %3899 = vrsqrt.f32 %v2686_v31  ;;  %vm2714_vm14 = vweird.f32 %v2686_v31 }
 0xdf1   : > { %v2679_v18 = vpop.xlane.xlu1 %2678 }
 0xdf2   : > { %v2683_v59 = vmul.f32 0.03125, %v2679_v18 }
 0xdf4   : > { %v3900_v7 = vpop.eup %3899  ;;  %v2687_v46 = vadd.f32 1e-05, %v2683_v59 }
 0xdf5   : > { %v2709_v0 = vmul.f32 %v3900_v7, %v2686_v31  ;;  %vm2715_vm13 = vweird.f32 %v3900_v7 }
 0xdf6   : > { %3901 = vrsqrt.f32 %v2687_v46  ;;  %vm2716_vm15 = vmor %vm2714_vm14, %vm2715_vm13  ;;  %vm2724_vm1 = vweird.f32 %v2687_v46 }
 0xdf7   : > { %v2710_v22 = vmul.f32 %v3900_v7, %v2709_v0 }
 0xdf9   : > { %v2711_v49 = vmul.f32 0.5, %v2710_v22 }
 0xdfb   : > { %v2712_v23 = vsub.f32 1.5, %v2711_v49 }
 0xdfc   : > { %v3902_v45 = vpop.eup %3901 }
 0xdfd   : > { %v2713_v58 = vmul.f32 %v3900_v7, %v2712_v23  ;;  %v2719_v2 = vmul.f32 %v3902_v45, %v2687_v46  ;;  %vm2725_vm0 = vweird.f32 %v3902_v45 }
 0xdfe   : > { %vm2726_vm2 = vmor %vm2724_vm1, %vm2725_vm0 }
 0xdff   : > { %v2720_v36 = vmul.f32 %v3902_v45, %v2719_v2  ;;  %v2717_v8 = vsel %vm2716_vm15, %v3900_v7, %v2713_v58 }
 0xe00   : > { %v2730_v62 = vmul.f32 %v2717_v8, %v4914_v16  ;;  %v3757_v16 = vld [vmem:[%s531_s24] ss:$0 sm:$0xff] }
 0xe01   : > { %v2721_v61 = vmul.f32 0.5, %v2720_v36 }
 0xe02   : > { %v2735_v26 = vmul.f32 %v2732_v54, %v2730_v62 }
 0xe03   : > { %v2722_v37 = vsub.f32 1.5, %v2721_v61 }
 0xe04   : > { %v2740_v25 = vadd.f32 %v2737_v53, %v2735_v26 }
 0xe05   : > { %v2723_v40 = vmul.f32 %v3902_v45, %v2722_v37 }
 0xe07   : > { %v2727_v60 = vsel %vm2726_vm2, %v3902_v45, %v2723_v40 }
 0xe08   : > { %v2731_v9 = vmul.f32 %v2727_v60, %v4921_v41 }
 0xe0a   : > { %v2736_v1 = vmul.f32 %v2732_v54, %v2731_v9 }
 0xe0c   : > { %v2741_v43 = vadd.f32 %v2737_v53, %v2736_v1 }
 0xe0e   : > { %v2743_v42 = vpack.c.bf16 %v2741_v43, %v2740_v25 }
 0xe10   : > { %2825 = vmatmul.bf16.gmra.mxu1 %v2743_v42 }
 0xe19   : > { %v2821_v38 = vpop.f32.mrf.mxu1 }
 0xe1a   : > { %v2822_v35 = vadd.f32 %v3757_v16, %v2821_v38 }
 0xe1c   : > { %v2831_v10 = vmax.f32 %v2822_v35, 0.0 }
 0xe21   : > { %v2823_v17 = vpop.f32.mrf.mxu1 }
 0xe22   : > { %v2824_v11 = vadd.f32 %v3757_v16, %v2823_v17 }
 0xe24   : > { %v2832_v12 = vmax.f32 %v2824_v11, 0.0 }
 0xe26   : > { %v2835_v24 = vpack.c.bf16 %v2832_v12, %v2831_v10 }
 0xe28   : > { %2913 = vmatmul.bf16.vlgmr.msrb.gmra.mxu2 %v2835_v24  ;;  %v3021_v24 = vperm.slane %v4932_v47, 2 }
 0xe8d   : > { %v2826_v41 = vpop.f32.mrf.mxu1 }
 0xe8e   : > { %v2827_v50 = vadd.f32 %v3757_v16, %v2826_v41 }
 0xe90   : > { %v2833_v29 = vmax.f32 %v2827_v50, 0.0 }
 0xe95   : > { %v2828_v44 = vpop.f32.mrf.mxu1 }
 0xe96   : > { %v2829_v39 = vadd.f32 %v3757_v16, %v2828_v44 }
 0xe98   : > { %v2834_v14 = vmax.f32 %v2829_v39, 0.0 }
 0xe9a   : > { %v2836_v48 = vpack.c.bf16 %v2834_v14, %v2833_v29 }
 0xe9c   : > { %2918 = vmatmul.bf16.gmra.mxu2 %v2836_v48 }
 0xeab   : > { %v2914_v54 = vpop.f32.mrf.mxu2 }
 0xeac   : > { %v2915_v57 = vadd.f32 %v3758_v55, %v2914_v54 }
 0xeae   : > { %v2924_v6 = vadd.f32 %v2915_v57, %v4935_v5 }
 0xeb0   : > { %v2928_v28 = vmul.f32 %v4542_v4, %v2924_v6 }
 0xeb2   : > { %2932 = vadd.xlane.f32.xlu2 %v2928_v28 }
 0xeb3   : > { %v2916_v15 = vpop.f32.mrf.mxu2 }
 0xeb4   : > { %v2917_v53 = vadd.f32 %v3758_v55, %v2916_v15 }
 0xeb6   : > { %v2925_v34 = vadd.f32 %v2917_v53, %v4937_v19 }
 0xeb8   : > { %v2929_v32 = vmul.f32 %v4542_v4, %v2925_v34 }
 0xeba   : > { %2934 = vadd.xlane.f32.xlu0 %v2929_v32 }
 0xf1f   : > { %v2919_v63 = vpop.f32.mrf.mxu2 }
 0xf20   : > { %v2920_v51 = vadd.f32 %v3758_v55, %v2919_v63 }
 0xf22   : > { %v2926_v21 = vadd.f32 %v2920_v51, %v2740_v25 }
 0xf24   : > { %v2930_v33 = vmul.f32 %v4542_v4, %v2926_v21 }
 0xf25   : > { %v2933_v31 = vpop.xlane.xlu2 %2932 }
 0xf26   : > { %v2940_v52 = vmul.f32 0.03125, %v2933_v31  ;;  %2936 = vadd.xlane.f32.xlu1 %v2930_v33 }
 0xf27   : > { %v2921_v18 = vpop.f32.mrf.mxu2 }
 0xf28   : > { %v2944_v5 = vsub.f32 %v2928_v28, %v2940_v52  ;;  %v2922_v59 = vadd.f32 %v3758_v55, %v2921_v18 }
 0xf2a   : > { %v2927_v20 = vadd.f32 %v2922_v59, %v2741_v43  ;;  %v2948_v7 = vmul.f32 %v4542_v4, %v2944_v5 }
 0xf2c   : > { %v2952_v46 = vmul.f32 %v2948_v7, %v2948_v7  ;;  %v2931_v19 = vmul.f32 %v4542_v4, %v2927_v20 }
 0xf2d   : > { %v2935_v0 = vpop.xlane.xlu0 %2934 }
 0xf2e   : > { %v2941_v22 = vmul.f32 0.03125, %v2935_v0  ;;  %2956 = vadd.xlane.f32.xlu0 %v2952_v46  ;;  %2938 = vadd.xlane.f32.xlu2 %v2931_v19 }
 0xf30   : > { %v2945_v13 = vsub.f32 %v2929_v32, %v2941_v22 }
 0xf32   : > { %v2949_v49 = vmul.f32 %v4542_v4, %v2945_v13 }
 0xf34   : > { %v2953_v23 = vmul.f32 %v2949_v49, %v2949_v49 }
 0xf36   : > { %2958 = vadd.xlane.f32.xlu1 %v2953_v23 }
 0xf99   : > { %v2937_v45 = vpop.xlane.xlu1 %2936 }
 0xf9a   : > { %v2942_v30 = vmul.f32 0.03125, %v2937_v45 }
 0xf9c   : > { %v2946_v58 = vsub.f32 %v2930_v33, %v2942_v30 }
 0xf9e   : > { %v4970_v2 = vmul.f32 %v4542_v4, %v2946_v58 }
 0xfa0   : > { %v2954_v36 = vmul.f32 %v4970_v2, %v4970_v2 }
 0xfa1   : > { %v2957_v56 = vpop.xlane.xlu0 %2956  ;;  %v2939_v61 = vpop.xlane.xlu2 %2938 }
 0xfa2   : > { %v2964_v8 = vmul.f32 0.03125, %v2957_v56  ;;  %v2943_v37 = vmul.f32 0.03125, %v2939_v61  ;;  %2960 = vadd.xlane.f32.xlu2 %v2954_v36 }
 0xfa4   : > { %v2968_v62 = vadd.f32 1e-05, %v2964_v8  ;;  %v2947_v27 = vsub.f32 %v2931_v19, %v2943_v37 }
 0xfa6   : > { %3903 = vrsqrt.f32 %v2968_v62  ;;  %v4975_v40 = vmul.f32 %v4542_v4, %v2947_v27  ;;  %vm2978_vm4 = vweird.f32 %v2968_v62  ;;  %v3016_v4 = vperm.slane %v4927_v3, 2 }
 0xfa8   : > { %v2955_v60 = vmul.f32 %v4975_v40, %v4975_v40 }
 0xfa9   : > { %v2959_v9 = vpop.xlane.xlu1 %2958 }
 0xfaa   : > { %v2965_v26 = vmul.f32 0.03125, %v2959_v9  ;;  %2962 = vadd.xlane.f32.xlu0 %v2955_v60 }
 0xfac   : > { %v3904_v1 = vpop.eup %3903  ;;  %v2969_v25 = vadd.f32 1e-05, %v2965_v26 }
 0xfad   : > { %v2973_v43 = vmul.f32 %v3904_v1, %v2968_v62  ;;  %vm2979_vm3 = vweird.f32 %v3904_v1 }
 0xfae   : > { %3905 = vrsqrt.f32 %v2969_v25  ;;  %vm2980_vm5 = vmor %vm2978_vm4, %vm2979_vm3  ;;  %vm2988_vm7 = vweird.f32 %v2969_v25 }
 0xfaf   : > { %v2974_v42 = vmul.f32 %v3904_v1, %v2973_v43 }
 0xfb1   : > { %v2975_v38 = vmul.f32 0.5, %v2974_v42 }
 0xfb3   : > { %v2976_v16 = vsub.f32 1.5, %v2975_v38 }
 0xfb4   : > { %v3906_v35 = vpop.eup %3905 }
 0xfb5   : > { %v2977_v17 = vmul.f32 %v3904_v1, %v2976_v16  ;;  %v2983_v11 = vmul.f32 %v3906_v35, %v2969_v25  ;;  %vm2989_vm6 = vweird.f32 %v3906_v35 }
 0xfb6   : > { %vm2990_vm8 = vmor %vm2988_vm7, %vm2989_vm6 }
 0xfb7   : > { %v2981_v10 = vsel %vm2980_vm5, %v3904_v1, %v2977_v17  ;;  %v2984_v12 = vmul.f32 %v3906_v35, %v2983_v11 }
 0xfb8   : > { %v3012_v41 = vmul.f32 %v2981_v10, %v2948_v7 }
 0xfb9   : > { %v2985_v50 = vmul.f32 0.5, %v2984_v12 }
 0xfba   : > { %v3017_v44 = vmul.f32 %v3016_v4, %v3012_v41 }
 0xfbb   : > { %v2986_v39 = vsub.f32 1.5, %v2985_v50 }
 0xfbc   : > { %v3022_v29 = vadd.f32 %v3021_v24, %v3017_v44 }
 0xfbd   : > { %v2987_v14 = vmul.f32 %v3906_v35, %v2986_v39 }
 0xfbe   : > { %3026 = vst [vmem:[%s5020_s12] sm:$0xff] %v3022_v29 }
 0xfbf   : > { %v2991_v48 = vsel %vm2990_vm8, %v3906_v35, %v2987_v14 }
 0xfc0   : > { %v3013_v3 = vmul.f32 %v2991_v48, %v2949_v49 }
 0xfc2   : > { %v3018_v55 = vmul.f32 %v3016_v4, %v3013_v3 }
 0xfc4   : > { %v3023_v54 = vadd.f32 %v3021_v24, %v3018_v55 }
 0xfc6   : > { %3027 = vst [vmem:[%s5020_s12 + $0x8] sm:$0xff] %v3023_v54 }
0x1015   : > { %v2961_v47 = vpop.xlane.xlu2 %2960 }
0x1016   : > { %v2966_v57 = vmul.f32 0.03125, %v2961_v47 }
0x1018   : > { %v2970_v6 = vadd.f32 1e-05, %v2966_v57 }
0x101a   : > { %3907 = vrsqrt.f32 %v2970_v6  ;;  %vm2998_vm10 = vweird.f32 %v2970_v6 }
0x101d   : > { %v2963_v28 = vpop.xlane.xlu0 %2962 }
0x101e   : > { %v2967_v15 = vmul.f32 0.03125, %v2963_v28 }
0x1020   : > { %v3908_v53 = vpop.eup %3907  ;;  %v2971_v34 = vadd.f32 1e-05, %v2967_v15 }
0x1021   : > { %v2993_v32 = vmul.f32 %v3908_v53, %v2970_v6  ;;  %vm2999_vm9 = vweird.f32 %v3908_v53 }
0x1022   : > { %3909 = vrsqrt.f32 %v2971_v34  ;;  %vm3000_vm11 = vmor %vm2998_vm10, %vm2999_vm9  ;;  %vm3008_vm13 = vweird.f32 %v2971_v34 }
0x1023   : > { %v2994_v63 = vmul.f32 %v3908_v53, %v2993_v32 }
0x1025   : > { %v2995_v51 = vmul.f32 0.5, %v2994_v63 }
0x1027   : > { %v2996_v21 = vsub.f32 1.5, %v2995_v51 }
0x1028   : > { %v3910_v33 = vpop.eup %3909 }
0x1029   : > { %v2997_v31 = vmul.f32 %v3908_v53, %v2996_v21  ;;  %v3003_v52 = vmul.f32 %v3910_v33, %v2971_v34  ;;  %vm3009_vm12 = vweird.f32 %v3910_v33 }
0x102a   : > { %vm3010_vm14 = vmor %vm3008_vm13, %vm3009_vm12 }
0x102b   : > { %v3001_v18 = vsel %vm3000_vm11, %v3908_v53, %v2997_v31  ;;  %v3004_v5 = vmul.f32 %v3910_v33, %v3003_v52 }
0x102c   : > { %v3014_v59 = vmul.f32 %v3001_v18, %v4970_v2 }
0x102d   : > { %v3005_v20 = vmul.f32 0.5, %v3004_v5 }
0x102e   : > { %v3019_v7 = vmul.f32 %v3016_v4, %v3014_v59 }
0x102f   : > { %v3006_v46 = vsub.f32 1.5, %v3005_v20 }
0x1030   : > { %v3024_v19 = vadd.f32 %v3021_v24, %v3019_v7 }
0x1031   : > { %v3007_v0 = vmul.f32 %v3910_v33, %v3006_v46 }
0x1032   : > { %3028 = vst [vmem:[%s5020_s12 + $0x10] sm:$0xff] %v3024_v19 }
0x1033   : > { %v3011_v22 = vsel %vm3010_vm14, %v3910_v33, %v3007_v0 }
0x1034   : > { %v3015_v13 = vmul.f32 %v3011_v22, %v4975_v40 }
0x1036   : > { %v3020_v49 = vmul.f32 %v3016_v4, %v3015_v13 }
0x1038   : > { %v3025_v23 = vadd.f32 %v3021_v24, %v3020_v49 }
0x103a   : > { %3029 = vst [vmem:[%s5020_s12 + $0x18] sm:$0xff] %v3025_v23 }
0x103b PF: > { %s5038_s24 = sld [smem:[#allocation7_spill]] }
0x103c   : > { %s5039_s21 = sld [smem:[#allocation5_spill]] }
0x103d   : > { %s5040_s22 = sld [smem:[#allocation6_spill]] }
0x103e   : > { %s5041_s23 = sld [smem:[#allocation8_spill]] }
0x1041   : > { %p22_p8 = scmp.ge.s32.totalorder %s5038_s24, 4  }
0x1043   :  { %24 = sbr.rel (!%p22_p8) target bundleno = 7 (0x7), region = 138 }
0x1048   :  { %3041 = vsyncpa [#allocation3], 1 }
0x1049   :  { %3043 = vsyncpa [#allocation3 + $0x1], 1 }

</bundles_post_ra>
